<compile_context>
chip_gen: v6e
topology: v6e:2x2x1
jax: 0.10.0
libtpu: 0.0.40
codegen_flags: <defaults>
</compile_context>

<pallas_src>
import numpy as np
import jax
import jax.numpy as jnp
from jax.experimental import pallas as pl
from jax.experimental.pallas import tpu as pltpu

CHANNELS = [3, 24, 16, 12]
KERNEL_SIZE = 5
OUT_CHANNELS = 8
PADDING = 2
STRIDE = 2
OUTPUT_PADDING = 1
SLOP = 0.01


def _relu(x):
    return jnp.maximum(x, 0.0)


def _double_relu(x, slop=SLOP):
    # algebraically identical to relu(x) - relu(x-1) - slop*relu(-x) + slop*relu(x-1)
    y = jnp.clip(x, 0.0, 1.0)
    return y + slop * (x - y)


_ACTS = {"relu": _relu, "double_relu": _double_relu}


def _layer(in_ref, taps_ref, bias_ref, out_ref, *, hin, win, cout, act, final):
    """One ConvTranspose2d(k=5, s=2, p=2, op=1) + fused activation.

    in_ref  : (hin+2, win+2, Cin)  input with a 1-pixel zero halo
    taps_ref: (9, Cin, 4*Cout)     per-(dy,dx) sub-kernels, 4 phase blocks in N
    bias_ref: (1, Cout)
    out_ref : intermediate -> (2*hin+2, 2*win+2, Cout) haloed VMEM buffer
              final        -> (2*hin,   2*win,   Cout) output block
    """
    ow = 2 * win
    pad = 0 if final else 1
    nrow = ow + 2 * pad
    act_fn = _ACTS[act]

    # 0/1 interleave matrices: scatter even/odd column-phase results into a
    # full-resolution output row (zero halo columns come out exactly 0).
    jj = jax.lax.broadcasted_iota(jnp.int32, (nrow, win), 0)
    cc = jax.lax.broadcasted_iota(jnp.int32, (nrow, win), 1)
    p_even = (jj == 2 * cc + pad).astype(jnp.float32)
    p_odd = (jj == 2 * cc + 1 + pad).astype(jnp.float32)

    bias = jnp.broadcast_to(bias_ref[...], (win, cout))   # hoisted broadcast
    w_taps = [taps_ref[k] for k in range(9)]               # hoisted weight loads

    def row_body(r, carry):
        # input rows r, r+1, r+2 (haloed) -> output rows 2r and 2r+1
        acc = jnp.zeros((win, 4 * cout), jnp.float32)
        for dy in range(3):
            row = in_ref[r + dy]                            # (win+2, Cin)
            for dx in range(3):
                acc = acc + jnp.dot(row[dx:dx + win, :], w_taps[dy * 3 + dx],
                                    preferred_element_type=jnp.float32)
        for py in range(2):
            e = act_fn(acc[:, (2 * py) * cout:(2 * py + 1) * cout] + bias)
            o = act_fn(acc[:, (2 * py + 1) * cout:(2 * py + 2) * cout] + bias)
            row_out = (jnp.dot(p_even, e, preferred_element_type=jnp.float32)
                       + jnp.dot(p_odd, o, preferred_element_type=jnp.float32))
            out_ref[pad + 2 * r + py] = row_out.astype(out_ref.dtype)
        return carry

    jax.lax.fori_loop(0, hin, row_body, 0)


def prepare_params(params):
    """Repack PyTorch ConvTranspose2d weights (Cin, Cout, 5, 5) into per-(dy,dx)
    phase taps of shape (9, Cin, 4*Cout); biases to (1, Cout).  Done once."""
    prepped = []
    for w, b in params:
        w_np = np.asarray(jax.device_get(w)).astype(np.float32)
        b_np = np.asarray(jax.device_get(b)).astype(np.float32)
        cin, cout = int(w_np.shape[0]), int(w_np.shape[1])
        taps = np.zeros((3, 3, cin, 4, cout), np.float32)
        for dy in range(3):
            for py in range(2):
                ky = py + 4 - 2 * dy
                if not 0 <= ky < KERNEL_SIZE:
                    continue
                for dx in range(3):
                    for px in range(2):
                        kx = px + 4 - 2 * dx
                        if not 0 <= kx < KERNEL_SIZE:
                            continue
                        taps[dy, dx, :, 2 * py + px, :] = w_np[:, :, ky, kx]
        prepped.append((jnp.asarray(taps.reshape(9, cin, 4 * cout)),
                        jnp.asarray(b_np.reshape(1, cout))))
    return prepped


def decoder_forward(img_nchw, prepped):
    """Decoder.forward: 4 x (ConvTranspose2d [+ReLU]) then doubleRelu (fused)."""
    n, c0, h0, w0 = img_nchw.shape
    assert c0 == OUT_CHANNELS
    x = jnp.transpose(img_nchw, (0, 2, 3, 1)).astype(jnp.float32)  # NCHW -> NHWC
    x = jnp.pad(x, ((0, 0), (1, 1), (1, 1), (0, 0)))               # layer-1 halo

    cns = list(reversed(CHANNELS))             # [12, 16, 24, 3]
    in_chs = [OUT_CHANNELS] + cns[:-1]         # [8, 12, 16, 24]
    hs = [h0 * (2 ** i) for i in range(4)]     # per-layer input heights
    ws = [w0 * (2 ** i) for i in range(4)]
    oh, ow = h0 * 16, w0 * 16
    acts = ("relu", "relu", "relu", "double_relu")

    def kernel(x_ref, t1_ref, b1_ref, t2_ref, b2_ref, t3_ref, b3_ref,
               t4_ref, b4_ref, o_ref, buf2, buf3, buf4):
        # zero the haloed intermediate buffers (interiors are fully rewritten)
        for b in (buf2, buf3, buf4):
            b[...] = jnp.zeros_like(b)
        srcs = (x_ref, buf2, buf3, buf4)
        dsts = (buf2, buf3, buf4, o_ref)
        taps = (t1_ref, t2_ref, t3_ref, t4_ref)
        biases = (b1_ref, b2_ref, b3_ref, b4_ref)
        for li in range(4):
            _layer(srcs[li], taps[li], biases[li], dsts[li],
                   hin=hs[li], win=ws[li], cout=cns[li],
                   act=acts[li], final=(li == 3))

    in_specs = [pl.BlockSpec((pl.Squeezed(), h0 + 2, w0 + 2, OUT_CHANNELS),
                             lambda i: (i, 0, 0, 0))]
    flat_params = []
    for taps_arr, bias_arr in prepped:
        in_specs.append(pl.BlockSpec(taps_arr.shape, lambda i: (0, 0, 0)))
        in_specs.append(pl.BlockSpec(bias_arr.shape, lambda i: (0, 0)))
        flat_params.extend((taps_arr, bias_arr))

    scratch = [pltpu.VMEM((2 * hs[li] + 2, 2 * ws[li] + 2, cns[li]), jnp.float32)
               for li in range(3)]

    out = pl.pallas_call(
        kernel,
        out_shape=jax.ShapeDtypeStruct((n, oh, ow, CHANNELS[0]), jnp.float32),
        grid=(n,),
        in_specs=in_specs,
        out_specs=pl.BlockSpec((pl.Squeezed(), oh, ow, CHANNELS[0]),
                               lambda i: (i, 0, 0, 0)),
        scratch_shapes=scratch,
        compiler_params=pltpu.CompilerParams(
            dimension_semantics=("parallel",)),
    )(x, *flat_params)

    return jnp.transpose(out, (0, 3, 1, 2))                        # NHWC -> NCHW


def reference_forward(img_nchw, params):
    """Pure-JAX reference (lax fractionally-strided conv), mirrors torch exactly."""
    x = jnp.transpose(img_nchw, (0, 2, 3, 1)).astype(jnp.float32)
    acts = [_relu, _relu, _relu,
            lambda v: _relu(v) - _relu(v - 1.0) - _relu(-v) * SLOP
            + _relu(v - 1.0) * SLOP]
    lo = KERNEL_SIZE - 1 - PADDING
    hi = lo + OUTPUT_PADDING
    for (wt, bs), act in zip(params, acts):
        w_hwio = jnp.transpose(wt[:, :, ::-1, ::-1], (2, 3, 0, 1))
        y = jax.lax.conv_general_dilated(
            x, w_hwio, window_strides=(1, 1),
            padding=[(lo, hi), (lo, hi)], lhs_dilation=(STRIDE, STRIDE),
            dimension_numbers=("NHWC", "HWIO", "NHWC"),
            precision=jax.lax.Precision.HIGHEST)
        x = act(y + bs)
    return jnp.transpose(x, (0, 3, 1, 2))


if __name__ == "__main__":
    key = jax.random.PRNGKey(0)
    n, c0, h0, w0 = 2, OUT_CHANNELS, 4, 4
    key, k_img = jax.random.split(key)
    img = jax.random.normal(k_img, (n, c0, h0, w0), jnp.float32)

    # decodeLayers(): ConvTranspose2d chain 8 -> 12 -> 16 -> 24 -> 3
    cns = list(reversed(CHANNELS))        # [12, 16, 24, 3]
    in_chs = [OUT_CHANNELS] + cns[:-1]    # [8, 12, 16, 24]
    params = []
    for ci, co in zip(in_chs, cns):
        key, kw_k, kb_k = jax.random.split(key, 3)
        bound = 1.0 / float(np.sqrt(ci * KERNEL_SIZE * KERNEL_SIZE))
        wt = jax.random.uniform(kw_k, (ci, co, KERNEL_SIZE, KERNEL_SIZE),
                                jnp.float32, -bound, bound)
        bs = jax.random.uniform(kb_k, (co,), jnp.float32, -bound, bound)
        params.append((wt, bs))

    prepped = prepare_params(params)
    fwd = jax.jit(decoder_forward)
    out = jax.block_until_ready(fwd(img, prepped))
    ref = jax.block_until_ready(reference_forward(img, params))

    assert out.shape == (n, CHANNELS[0], h0 * 16, w0 * 16), out.shape
    err = float(jnp.max(jnp.abs(out - ref)))
    if not np.isfinite(err) or err > 1e-2:
        raise SystemExit(f"mismatch: max abs err {err}")
    print("KERNEL_OK")
</pallas_src>

<mosaic_0001>
module attributes {stable_mosaic.version = 11 : i64} {
  func.func @kernel(%arg0: i32, %arg1: memref<1x6x6x8xf32, #tpu.memory_space<vmem>>, %arg2: memref<9x8x48xf32, #tpu.memory_space<vmem>>, %arg3: memref<1x12xf32, #tpu.memory_space<vmem>>, %arg4: memref<9x12x64xf32, #tpu.memory_space<vmem>>, %arg5: memref<1x16xf32, #tpu.memory_space<vmem>>, %arg6: memref<9x16x96xf32, #tpu.memory_space<vmem>>, %arg7: memref<1x24xf32, #tpu.memory_space<vmem>>, %arg8: memref<9x24x12xf32, #tpu.memory_space<vmem>>, %arg9: memref<1x3xf32, #tpu.memory_space<vmem>>, %arg10: memref<1x64x64x3xf32, #tpu.memory_space<vmem>>, %arg11: memref<10x10x12xf32, #tpu.memory_space<vmem>>, %arg12: memref<18x18x16xf32, #tpu.memory_space<vmem>>, %arg13: memref<34x34x24xf32, #tpu.memory_space<vmem>>) attributes {dimension_semantics = [#tpu.dimension_semantics<parallel>], iteration_bounds = array<i64: 2>, scalar_prefetch = 0 : i64, scratch_operands = 3 : i64, tpu.core_type = #tpu.core_type<tc>, window_params = [{transform_indices = @transform_0, window_bounds = array<i64: 1, 6, 6, 8>}, {pipeline_mode = #tpu.pipeline_mode<synchronous>, transform_indices = @transform_1, window_bounds = array<i64: 9, 8, 48>}, {pipeline_mode = #tpu.pipeline_mode<synchronous>, transform_indices = @transform_2, window_bounds = array<i64: 1, 12>}, {pipeline_mode = #tpu.pipeline_mode<synchronous>, transform_indices = @transform_3, window_bounds = array<i64: 9, 12, 64>}, {pipeline_mode = #tpu.pipeline_mode<synchronous>, transform_indices = @transform_4, window_bounds = array<i64: 1, 16>}, {pipeline_mode = #tpu.pipeline_mode<synchronous>, transform_indices = @transform_5, window_bounds = array<i64: 9, 16, 96>}, {pipeline_mode = #tpu.pipeline_mode<synchronous>, transform_indices = @transform_6, window_bounds = array<i64: 1, 24>}, {pipeline_mode = #tpu.pipeline_mode<synchronous>, transform_indices = @transform_7, window_bounds = array<i64: 9, 24, 12>}, {pipeline_mode = #tpu.pipeline_mode<synchronous>, transform_indices = @transform_8, window_bounds = array<i64: 1, 3>}, {transform_indices = @transform_9, window_bounds = array<i64: 1, 64, 64, 3>}]} {
    %cst = arith.constant 0.000000e+00 : f32
    %0 = vector.broadcast %cst : f32 to vector<10x10x12xf32>
    %c0 = arith.constant 0 : index
    %c0_0 = arith.constant 0 : index
    %c0_1 = arith.constant 0 : index
    %1 = vector.load %arg11[%c0, %c0_0, %c0_1] : memref<10x10x12xf32, #tpu.memory_space<vmem>>, vector<10x10x12xf32>
    tpu.vector_store %arg11[%c0, %c0_0, %c0_1], %0 {strides = array<i32>} : memref<10x10x12xf32, #tpu.memory_space<vmem>>, vector<10x10x12xf32>,
    %cst_2 = arith.constant 0.000000e+00 : f32
    %2 = vector.broadcast %cst_2 : f32 to vector<18x18x16xf32>
    %c0_3 = arith.constant 0 : index
    %c0_4 = arith.constant 0 : index
    %c0_5 = arith.constant 0 : index
    %3 = vector.load %arg12[%c0_3, %c0_4, %c0_5] : memref<18x18x16xf32, #tpu.memory_space<vmem>>, vector<18x18x16xf32>
    tpu.vector_store %arg12[%c0_3, %c0_4, %c0_5], %2 {strides = array<i32>} : memref<18x18x16xf32, #tpu.memory_space<vmem>>, vector<18x18x16xf32>,
    %cst_6 = arith.constant 0.000000e+00 : f32
    %4 = vector.broadcast %cst_6 : f32 to vector<34x34x24xf32>
    %c0_7 = arith.constant 0 : index
    %c0_8 = arith.constant 0 : index
    %c0_9 = arith.constant 0 : index
    %5 = vector.load %arg13[%c0_7, %c0_8, %c0_9] : memref<34x34x24xf32, #tpu.memory_space<vmem>>, vector<34x34x24xf32>
    tpu.vector_store %arg13[%c0_7, %c0_8, %c0_9], %4 {strides = array<i32>} : memref<34x34x24xf32, #tpu.memory_space<vmem>>, vector<34x34x24xf32>,
    %6 = tpu.iota {dimensions = array<i32: 0>} : vector<10x4xi32>
    %7 = tpu.iota {dimensions = array<i32: 1>} : vector<10x4xi32>
    %c2_i32 = arith.constant 2 : i32
    %8 = vector.broadcast %c2_i32 : i32 to vector<10x4xi32>
    %9 = arith.muli %8, %7 : vector<10x4xi32>
    %c1_i32 = arith.constant 1 : i32
    %10 = vector.broadcast %c1_i32 : i32 to vector<10x4xi32>
    %11 = arith.addi %9, %10 : vector<10x4xi32>
    %12 = arith.cmpi eq, %6, %11 : vector<10x4xi32>
    %13 = arith.extui %12 : vector<10x4xi1> to vector<10x4xi32>
    %14 = arith.sitofp %13 : vector<10x4xi32> to vector<10x4xf32>
    %c2_i32_10 = arith.constant 2 : i32
    %15 = vector.broadcast %c2_i32_10 : i32 to vector<10x4xi32>
    %16 = arith.muli %15, %7 : vector<10x4xi32>
    %c1_i32_11 = arith.constant 1 : i32
    %17 = vector.broadcast %c1_i32_11 : i32 to vector<10x4xi32>
    %18 = arith.addi %16, %17 : vector<10x4xi32>
    %c1_i32_12 = arith.constant 1 : i32
    %19 = vector.broadcast %c1_i32_12 : i32 to vector<10x4xi32>
    %20 = arith.addi %18, %19 : vector<10x4xi32>
    %21 = arith.cmpi eq, %6, %20 : vector<10x4xi32>
    %22 = arith.extui %21 : vector<10x4xi1> to vector<10x4xi32>
    %23 = arith.sitofp %22 : vector<10x4xi32> to vector<10x4xf32>
    %c0_13 = arith.constant 0 : index
    %c0_14 = arith.constant 0 : index
    %24 = vector.load %arg3[%c0_13, %c0_14] : memref<1x12xf32, #tpu.memory_space<vmem>>, vector<1x12xf32>
    %25 = vector.shape_cast %24 : vector<1x12xf32> to vector<1x12xf32>
    %26 = vector.broadcast %25 : vector<1x12xf32> to vector<4x12xf32>
    %c0_15 = arith.constant 0 : index
    %c0_16 = arith.constant 0 : index
    %c0_17 = arith.constant 0 : index
    %27 = vector.load %arg2[%c0_15, %c0_16, %c0_17] : memref<9x8x48xf32, #tpu.memory_space<vmem>>, vector<1x8x48xf32>
    %28 = vector.shape_cast %27 : vector<1x8x48xf32> to vector<8x48xf32>
    %c1 = arith.constant 1 : index
    %c0_18 = arith.constant 0 : index
    %c0_19 = arith.constant 0 : index
    %29 = vector.load %arg2[%c1, %c0_18, %c0_19] : memref<9x8x48xf32, #tpu.memory_space<vmem>>, vector<1x8x48xf32>
    %30 = vector.shape_cast %29 : vector<1x8x48xf32> to vector<8x48xf32>
    %c2 = arith.constant 2 : index
    %c0_20 = arith.constant 0 : index
    %c0_21 = arith.constant 0 : index
    %31 = vector.load %arg2[%c2, %c0_20, %c0_21] : memref<9x8x48xf32, #tpu.memory_space<vmem>>, vector<1x8x48xf32>
    %32 = vector.shape_cast %31 : vector<1x8x48xf32> to vector<8x48xf32>
    %c3 = arith.constant 3 : index
    %c0_22 = arith.constant 0 : index
    %c0_23 = arith.constant 0 : index
    %33 = vector.load %arg2[%c3, %c0_22, %c0_23] : memref<9x8x48xf32, #tpu.memory_space<vmem>>, vector<1x8x48xf32>
    %34 = vector.shape_cast %33 : vector<1x8x48xf32> to vector<8x48xf32>
    %c4 = arith.constant 4 : index
    %c0_24 = arith.constant 0 : index
    %c0_25 = arith.constant 0 : index
    %35 = vector.load %arg2[%c4, %c0_24, %c0_25] : memref<9x8x48xf32, #tpu.memory_space<vmem>>, vector<1x8x48xf32>
    %36 = vector.shape_cast %35 : vector<1x8x48xf32> to vector<8x48xf32>
    %c5 = arith.constant 5 : index
    %c0_26 = arith.constant 0 : index
    %c0_27 = arith.constant 0 : index
    %37 = vector.load %arg2[%c5, %c0_26, %c0_27] : memref<9x8x48xf32, #tpu.memory_space<vmem>>, vector<1x8x48xf32>
    %38 = vector.shape_cast %37 : vector<1x8x48xf32> to vector<8x48xf32>
    %c6 = arith.constant 6 : index
    %c0_28 = arith.constant 0 : index
    %c0_29 = arith.constant 0 : index
    %39 = vector.load %arg2[%c6, %c0_28, %c0_29] : memref<9x8x48xf32, #tpu.memory_space<vmem>>, vector<1x8x48xf32>
    %40 = vector.shape_cast %39 : vector<1x8x48xf32> to vector<8x48xf32>
    %c7 = arith.constant 7 : index
    %c0_30 = arith.constant 0 : index
    %c0_31 = arith.constant 0 : index
    %41 = vector.load %arg2[%c7, %c0_30, %c0_31] : memref<9x8x48xf32, #tpu.memory_space<vmem>>, vector<1x8x48xf32>
    %42 = vector.shape_cast %41 : vector<1x8x48xf32> to vector<8x48xf32>
    %c8 = arith.constant 8 : index
    %c0_32 = arith.constant 0 : index
    %c0_33 = arith.constant 0 : index
    %43 = vector.load %arg2[%c8, %c0_32, %c0_33] : memref<9x8x48xf32, #tpu.memory_space<vmem>>, vector<1x8x48xf32>
    %44 = vector.shape_cast %43 : vector<1x8x48xf32> to vector<8x48xf32>
    %c0_i32 = arith.constant 0 : i32
    %c4_i32 = arith.constant 4 : i32
    %45 = arith.addi %c0_i32, %c4_i32 : i32
    %c1_i32_34 = arith.constant 1 : i32
    scf.for %arg14 = %c0_i32 to %45 step %c1_i32_34  : i32 {
      %cst_147 = arith.constant 0.000000e+00 : f32
      %166 = vector.broadcast %cst_147 : f32 to vector<4x48xf32>
      %c0_i32_148 = arith.constant 0 : i32
      %167 = arith.addi %arg14, %c0_i32_148 : i32
      %c0_149 = arith.constant 0 : index
      %168 = arith.index_cast %167 : i32 to index
      %c0_150 = arith.constant 0 : index
      %c0_151 = arith.constant 0 : index
      %169 = vector.load %arg1[%c0_149, %168, %c0_150, %c0_151] : memref<1x6x6x8xf32, #tpu.memory_space<vmem>>, vector<1x1x6x8xf32>
      %170 = vector.shape_cast %169 : vector<1x1x6x8xf32> to vector<6x8xf32>
      %171 = vector.extract_strided_slice %170 {offsets = [0, 0], sizes = [4, 8], strides = [1, 1]} : vector<6x8xf32> to vector<4x8xf32>
      %cst_152 = arith.constant dense<0.000000e+00> : vector<4x48xf32>
      %172 = tpu.matmul %171, %28, %cst_152 {dimension_numbers = #tpu.dot_dimension_numbers<[1], [0], [0], [1], [0, 0, 1, 1], [], []>} : vector<4x8xf32>, vector<8x48xf32>, vector<4x48xf32> -> vector<4x48xf32>
      %173 = arith.addf %166, %172 : vector<4x48xf32>
      %174 = vector.extract_strided_slice %170 {offsets = [1, 0], sizes = [4, 8], strides = [1, 1]} : vector<6x8xf32> to vector<4x8xf32>
      %cst_153 = arith.constant dense<0.000000e+00> : vector<4x48xf32>
      %175 = tpu.matmul %174, %30, %cst_153 {dimension_numbers = #tpu.dot_dimension_numbers<[1], [0], [0], [1], [0, 0, 1, 1], [], []>} : vector<4x8xf32>, vector<8x48xf32>, vector<4x48xf32> -> vector<4x48xf32>
      %176 = arith.addf %173, %175 : vector<4x48xf32>
      %177 = vector.extract_strided_slice %170 {offsets = [2, 0], sizes = [4, 8], strides = [1, 1]} : vector<6x8xf32> to vector<4x8xf32>
      %cst_154 = arith.constant dense<0.000000e+00> : vector<4x48xf32>
      %178 = tpu.matmul %177, %32, %cst_154 {dimension_numbers = #tpu.dot_dimension_numbers<[1], [0], [0], [1], [0, 0, 1, 1], [], []>} : vector<4x8xf32>, vector<8x48xf32>, vector<4x48xf32> -> vector<4x48xf32>
      %179 = arith.addf %176, %178 : vector<4x48xf32>
      %c1_i32_155 = arith.constant 1 : i32
      %180 = arith.addi %arg14, %c1_i32_155 : i32
      %c0_156 = arith.constant 0 : index
      %181 = arith.index_cast %180 : i32 to index
      %c0_157 = arith.constant 0 : index
      %c0_158 = arith.constant 0 : index
      %182 = vector.load %arg1[%c0_156, %181, %c0_157, %c0_158] : memref<1x6x6x8xf32, #tpu.memory_space<vmem>>, vector<1x1x6x8xf32>
      %183 = vector.shape_cast %182 : vector<1x1x6x8xf32> to vector<6x8xf32>
      %184 = vector.extract_strided_slice %183 {offsets = [0, 0], sizes = [4, 8], strides = [1, 1]} : vector<6x8xf32> to vector<4x8xf32>
      %cst_159 = arith.constant dense<0.000000e+00> : vector<4x48xf32>
      %185 = tpu.matmul %184, %34, %cst_159 {dimension_numbers = #tpu.dot_dimension_numbers<[1], [0], [0], [1], [0, 0, 1, 1], [], []>} : vector<4x8xf32>, vector<8x48xf32>, vector<4x48xf32> -> vector<4x48xf32>
      %186 = arith.addf %179, %185 : vector<4x48xf32>
      %187 = vector.extract_strided_slice %183 {offsets = [1, 0], sizes = [4, 8], strides = [1, 1]} : vector<6x8xf32> to vector<4x8xf32>
      %cst_160 = arith.constant dense<0.000000e+00> : vector<4x48xf32>
      %188 = tpu.matmul %187, %36, %cst_160 {dimension_numbers = #tpu.dot_dimension_numbers<[1], [0], [0], [1], [0, 0, 1, 1], [], []>} : vector<4x8xf32>, vector<8x48xf32>, vector<4x48xf32> -> vector<4x48xf32>
      %189 = arith.addf %186, %188 : vector<4x48xf32>
      %190 = vector.extract_strided_slice %183 {offsets = [2, 0], sizes = [4, 8], strides = [1, 1]} : vector<6x8xf32> to vector<4x8xf32>
      %cst_161 = arith.constant dense<0.000000e+00> : vector<4x48xf32>
      %191 = tpu.matmul %190, %38, %cst_161 {dimension_numbers = #tpu.dot_dimension_numbers<[1], [0], [0], [1], [0, 0, 1, 1], [], []>} : vector<4x8xf32>, vector<8x48xf32>, vector<4x48xf32> -> vector<4x48xf32>
      %192 = arith.addf %189, %191 : vector<4x48xf32>
      %c2_i32_162 = arith.constant 2 : i32
      %193 = arith.addi %arg14, %c2_i32_162 : i32
      %c0_163 = arith.constant 0 : index
      %194 = arith.index_cast %193 : i32 to index
      %c0_164 = arith.constant 0 : index
      %c0_165 = arith.constant 0 : index
      %195 = vector.load %arg1[%c0_163, %194, %c0_164, %c0_165] : memref<1x6x6x8xf32, #tpu.memory_space<vmem>>, vector<1x1x6x8xf32>
      %196 = vector.shape_cast %195 : vector<1x1x6x8xf32> to vector<6x8xf32>
      %197 = vector.extract_strided_slice %196 {offsets = [0, 0], sizes = [4, 8], strides = [1, 1]} : vector<6x8xf32> to vector<4x8xf32>
      %cst_166 = arith.constant dense<0.000000e+00> : vector<4x48xf32>
      %198 = tpu.matmul %197, %40, %cst_166 {dimension_numbers = #tpu.dot_dimension_numbers<[1], [0], [0], [1], [0, 0, 1, 1], [], []>} : vector<4x8xf32>, vector<8x48xf32>, vector<4x48xf32> -> vector<4x48xf32>
      %199 = arith.addf %192, %198 : vector<4x48xf32>
      %200 = vector.extract_strided_slice %196 {offsets = [1, 0], sizes = [4, 8], strides = [1, 1]} : vector<6x8xf32> to vector<4x8xf32>
      %cst_167 = arith.constant dense<0.000000e+00> : vector<4x48xf32>
      %201 = tpu.matmul %200, %42, %cst_167 {dimension_numbers = #tpu.dot_dimension_numbers<[1], [0], [0], [1], [0, 0, 1, 1], [], []>} : vector<4x8xf32>, vector<8x48xf32>, vector<4x48xf32> -> vector<4x48xf32>
      %202 = arith.addf %199, %201 : vector<4x48xf32>
      %203 = vector.extract_strided_slice %196 {offsets = [2, 0], sizes = [4, 8], strides = [1, 1]} : vector<6x8xf32> to vector<4x8xf32>
      %cst_168 = arith.constant dense<0.000000e+00> : vector<4x48xf32>
      %204 = tpu.matmul %203, %44, %cst_168 {dimension_numbers = #tpu.dot_dimension_numbers<[1], [0], [0], [1], [0, 0, 1, 1], [], []>} : vector<4x8xf32>, vector<8x48xf32>, vector<4x48xf32> -> vector<4x48xf32>
      %205 = arith.addf %202, %204 : vector<4x48xf32>
      %206 = vector.extract_strided_slice %205 {offsets = [0, 0], sizes = [4, 12], strides = [1, 1]} : vector<4x48xf32> to vector<4x12xf32>
      %207 = arith.addf %206, %26 : vector<4x12xf32>
      %cst_169 = arith.constant 0.000000e+00 : f32
      %208 = vector.broadcast %cst_169 : f32 to vector<4x12xf32>
      %209 = arith.maximumf %207, %208 : vector<4x12xf32>
      %210 = vector.extract_strided_slice %205 {offsets = [0, 12], sizes = [4, 12], strides = [1, 1]} : vector<4x48xf32> to vector<4x12xf32>
      %211 = arith.addf %210, %26 : vector<4x12xf32>
      %cst_170 = arith.constant 0.000000e+00 : f32
      %212 = vector.broadcast %cst_170 : f32 to vector<4x12xf32>
      %213 = arith.maximumf %211, %212 : vector<4x12xf32>
      %cst_171 = arith.constant dense<0.000000e+00> : vector<10x12xf32>
      %214 = tpu.matmul %14, %209, %cst_171 {dimension_numbers = #tpu.dot_dimension_numbers<[1], [0], [0], [1], [0, 0, 1, 1], [], []>} : vector<10x4xf32>, vector<4x12xf32>, vector<10x12xf32> -> vector<10x12xf32>
      %cst_172 = arith.constant dense<0.000000e+00> : vector<10x12xf32>
      %215 = tpu.matmul %23, %213, %cst_172 {dimension_numbers = #tpu.dot_dimension_numbers<[1], [0], [0], [1], [0, 0, 1, 1], [], []>} : vector<10x4xf32>, vector<4x12xf32>, vector<10x12xf32> -> vector<10x12xf32>
      %216 = arith.addf %214, %215 : vector<10x12xf32>
      %c2_i32_173 = arith.constant 2 : i32
      %217 = arith.muli %c2_i32_173, %arg14 : i32
      %c1_i32_174 = arith.constant 1 : i32
      %218 = arith.addi %c1_i32_174, %217 : i32
      %c0_i32_175 = arith.constant 0 : i32
      %219 = arith.addi %218, %c0_i32_175 : i32
      %220 = arith.index_cast %219 : i32 to index
      %c0_176 = arith.constant 0 : index
      %c0_177 = arith.constant 0 : index
      %221 = vector.load %arg11[%220, %c0_176, %c0_177] : memref<10x10x12xf32, #tpu.memory_space<vmem>>, vector<1x10x12xf32>
      %222 = vector.shape_cast %221 : vector<1x10x12xf32> to vector<10x12xf32>
      %223 = vector.shape_cast %216 : vector<10x12xf32> to vector<1x10x12xf32>
      tpu.vector_store %arg11[%220, %c0_176, %c0_177], %223 {strides = array<i32>} : memref<10x10x12xf32, #tpu.memory_space<vmem>>, vector<1x10x12xf32>,
      %224 = vector.extract_strided_slice %205 {offsets = [0, 24], sizes = [4, 12], strides = [1, 1]} : vector<4x48xf32> to vector<4x12xf32>
      %225 = arith.addf %224, %26 : vector<4x12xf32>
      %cst_178 = arith.constant 0.000000e+00 : f32
      %226 = vector.broadcast %cst_178 : f32 to vector<4x12xf32>
      %227 = arith.maximumf %225, %226 : vector<4x12xf32>
      %228 = vector.extract_strided_slice %205 {offsets = [0, 36], sizes = [4, 12], strides = [1, 1]} : vector<4x48xf32> to vector<4x12xf32>
      %229 = arith.addf %228, %26 : vector<4x12xf32>
      %cst_179 = arith.constant 0.000000e+00 : f32
      %230 = vector.broadcast %cst_179 : f32 to vector<4x12xf32>
      %231 = arith.maximumf %229, %230 : vector<4x12xf32>
      %cst_180 = arith.constant dense<0.000000e+00> : vector<10x12xf32>
      %232 = tpu.matmul %14, %227, %cst_180 {dimension_numbers = #tpu.dot_dimension_numbers<[1], [0], [0], [1], [0, 0, 1, 1], [], []>} : vector<10x4xf32>, vector<4x12xf32>, vector<10x12xf32> -> vector<10x12xf32>
      %cst_181 = arith.constant dense<0.000000e+00> : vector<10x12xf32>
      %233 = tpu.matmul %23, %231, %cst_181 {dimension_numbers = #tpu.dot_dimension_numbers<[1], [0], [0], [1], [0, 0, 1, 1], [], []>} : vector<10x4xf32>, vector<4x12xf32>, vector<10x12xf32> -> vector<10x12xf32>
      %234 = arith.addf %232, %233 : vector<10x12xf32>
      %c2_i32_182 = arith.constant 2 : i32
      %235 = arith.muli %c2_i32_182, %arg14 : i32
      %c1_i32_183 = arith.constant 1 : i32
      %236 = arith.addi %c1_i32_183, %235 : i32
      %c1_i32_184 = arith.constant 1 : i32
      %237 = arith.addi %236, %c1_i32_184 : i32
      %238 = arith.index_cast %237 : i32 to index
      %c0_185 = arith.constant 0 : index
      %c0_186 = arith.constant 0 : index
      %239 = vector.load %arg11[%238, %c0_185, %c0_186] : memref<10x10x12xf32, #tpu.memory_space<vmem>>, vector<1x10x12xf32>
      %240 = vector.shape_cast %239 : vector<1x10x12xf32> to vector<10x12xf32>
      %241 = vector.shape_cast %234 : vector<10x12xf32> to vector<1x10x12xf32>
      tpu.vector_store %arg11[%238, %c0_185, %c0_186], %241 {strides = array<i32>} : memref<10x10x12xf32, #tpu.memory_space<vmem>>, vector<1x10x12xf32>,
    }
    %c4_i32_35 = arith.constant 4 : i32
    %46 = tpu.iota {dimensions = array<i32: 0>} : vector<18x8xi32>
    %47 = tpu.iota {dimensions = array<i32: 1>} : vector<18x8xi32>
    %c2_i32_36 = arith.constant 2 : i32
    %48 = vector.broadcast %c2_i32_36 : i32 to vector<18x8xi32>
    %49 = arith.muli %48, %47 : vector<18x8xi32>
    %c1_i32_37 = arith.constant 1 : i32
    %50 = vector.broadcast %c1_i32_37 : i32 to vector<18x8xi32>
    %51 = arith.addi %49, %50 : vector<18x8xi32>
    %52 = arith.cmpi eq, %46, %51 : vector<18x8xi32>
    %53 = arith.extui %52 : vector<18x8xi1> to vector<18x8xi32>
    %54 = arith.sitofp %53 : vector<18x8xi32> to vector<18x8xf32>
    %c2_i32_38 = arith.constant 2 : i32
    %55 = vector.broadcast %c2_i32_38 : i32 to vector<18x8xi32>
    %56 = arith.muli %55, %47 : vector<18x8xi32>
    %c1_i32_39 = arith.constant 1 : i32
    %57 = vector.broadcast %c1_i32_39 : i32 to vector<18x8xi32>
    %58 = arith.addi %56, %57 : vector<18x8xi32>
    %c1_i32_40 = arith.constant 1 : i32
    %59 = vector.broadcast %c1_i32_40 : i32 to vector<18x8xi32>
    %60 = arith.addi %58, %59 : vector<18x8xi32>
    %61 = arith.cmpi eq, %46, %60 : vector<18x8xi32>
    %62 = arith.extui %61 : vector<18x8xi1> to vector<18x8xi32>
    %63 = arith.sitofp %62 : vector<18x8xi32> to vector<18x8xf32>
    %c0_41 = arith.constant 0 : index
    %c0_42 = arith.constant 0 : index
    %64 = vector.load %arg5[%c0_41, %c0_42] : memref<1x16xf32, #tpu.memory_space<vmem>>, vector<1x16xf32>
    %65 = vector.shape_cast %64 : vector<1x16xf32> to vector<1x16xf32>
    %66 = vector.broadcast %65 : vector<1x16xf32> to vector<8x16xf32>
    %c0_43 = arith.constant 0 : index
    %c0_44 = arith.constant 0 : index
    %c0_45 = arith.constant 0 : index
    %67 = vector.load %arg4[%c0_43, %c0_44, %c0_45] : memref<9x12x64xf32, #tpu.memory_space<vmem>>, vector<1x12x64xf32>
    %68 = vector.shape_cast %67 : vector<1x12x64xf32> to vector<12x64xf32>
    %c1_46 = arith.constant 1 : index
    %c0_47 = arith.constant 0 : index
    %c0_48 = arith.constant 0 : index
    %69 = vector.load %arg4[%c1_46, %c0_47, %c0_48] : memref<9x12x64xf32, #tpu.memory_space<vmem>>, vector<1x12x64xf32>
    %70 = vector.shape_cast %69 : vector<1x12x64xf32> to vector<12x64xf32>
    %c2_49 = arith.constant 2 : index
    %c0_50 = arith.constant 0 : index
    %c0_51 = arith.constant 0 : index
    %71 = vector.load %arg4[%c2_49, %c0_50, %c0_51] : memref<9x12x64xf32, #tpu.memory_space<vmem>>, vector<1x12x64xf32>
    %72 = vector.shape_cast %71 : vector<1x12x64xf32> to vector<12x64xf32>
    %c3_52 = arith.constant 3 : index
    %c0_53 = arith.constant 0 : index
    %c0_54 = arith.constant 0 : index
    %73 = vector.load %arg4[%c3_52, %c0_53, %c0_54] : memref<9x12x64xf32, #tpu.memory_space<vmem>>, vector<1x12x64xf32>
    %74 = vector.shape_cast %73 : vector<1x12x64xf32> to vector<12x64xf32>
    %c4_55 = arith.constant 4 : index
    %c0_56 = arith.constant 0 : index
    %c0_57 = arith.constant 0 : index
    %75 = vector.load %arg4[%c4_55, %c0_56, %c0_57] : memref<9x12x64xf32, #tpu.memory_space<vmem>>, vector<1x12x64xf32>
    %76 = vector.shape_cast %75 : vector<1x12x64xf32> to vector<12x64xf32>
    %c5_58 = arith.constant 5 : index
    %c0_59 = arith.constant 0 : index
    %c0_60 = arith.constant 0 : index
    %77 = vector.load %arg4[%c5_58, %c0_59, %c0_60] : memref<9x12x64xf32, #tpu.memory_space<vmem>>, vector<1x12x64xf32>
    %78 = vector.shape_cast %77 : vector<1x12x64xf32> to vector<12x64xf32>
    %c6_61 = arith.constant 6 : index
    %c0_62 = arith.constant 0 : index
    %c0_63 = arith.constant 0 : index
    %79 = vector.load %arg4[%c6_61, %c0_62, %c0_63] : memref<9x12x64xf32, #tpu.memory_space<vmem>>, vector<1x12x64xf32>
    %80 = vector.shape_cast %79 : vector<1x12x64xf32> to vector<12x64xf32>
    %c7_64 = arith.constant 7 : index
    %c0_65 = arith.constant 0 : index
    %c0_66 = arith.constant 0 : index
    %81 = vector.load %arg4[%c7_64, %c0_65, %c0_66] : memref<9x12x64xf32, #tpu.memory_space<vmem>>, vector<1x12x64xf32>
    %82 = vector.shape_cast %81 : vector<1x12x64xf32> to vector<12x64xf32>
    %c8_67 = arith.constant 8 : index
    %c0_68 = arith.constant 0 : index
    %c0_69 = arith.constant 0 : index
    %83 = vector.load %arg4[%c8_67, %c0_68, %c0_69] : memref<9x12x64xf32, #tpu.memory_space<vmem>>, vector<1x12x64xf32>
    %84 = vector.shape_cast %83 : vector<1x12x64xf32> to vector<12x64xf32>
    %c0_i32_70 = arith.constant 0 : i32
    %c8_i32 = arith.constant 8 : i32
    %85 = arith.addi %c0_i32_70, %c8_i32 : i32
    %c1_i32_71 = arith.constant 1 : i32
    scf.for %arg14 = %c0_i32_70 to %85 step %c1_i32_71  : i32 {
      %cst_147 = arith.constant 0.000000e+00 : f32
      %166 = vector.broadcast %cst_147 : f32 to vector<8x64xf32>
      %c0_i32_148 = arith.constant 0 : i32
      %167 = arith.addi %arg14, %c0_i32_148 : i32
      %168 = arith.index_cast %167 : i32 to index
      %c0_149 = arith.constant 0 : index
      %c0_150 = arith.constant 0 : index
      %169 = vector.load %arg11[%168, %c0_149, %c0_150] : memref<10x10x12xf32, #tpu.memory_space<vmem>>, vector<1x10x12xf32>
      %170 = vector.shape_cast %169 : vector<1x10x12xf32> to vector<10x12xf32>
      %171 = vector.extract_strided_slice %170 {offsets = [0, 0], sizes = [8, 12], strides = [1, 1]} : vector<10x12xf32> to vector<8x12xf32>
      %cst_151 = arith.constant dense<0.000000e+00> : vector<8x64xf32>
      %172 = tpu.matmul %171, %68, %cst_151 {dimension_numbers = #tpu.dot_dimension_numbers<[1], [0], [0], [1], [0, 0, 1, 1], [], []>} : vector<8x12xf32>, vector<12x64xf32>, vector<8x64xf32> -> vector<8x64xf32>
      %173 = arith.addf %166, %172 : vector<8x64xf32>
      %174 = vector.extract_strided_slice %170 {offsets = [1, 0], sizes = [8, 12], strides = [1, 1]} : vector<10x12xf32> to vector<8x12xf32>
      %cst_152 = arith.constant dense<0.000000e+00> : vector<8x64xf32>
      %175 = tpu.matmul %174, %70, %cst_152 {dimension_numbers = #tpu.dot_dimension_numbers<[1], [0], [0], [1], [0, 0, 1, 1], [], []>} : vector<8x12xf32>, vector<12x64xf32>, vector<8x64xf32> -> vector<8x64xf32>
      %176 = arith.addf %173, %175 : vector<8x64xf32>
      %177 = vector.extract_strided_slice %170 {offsets = [2, 0], sizes = [8, 12], strides = [1, 1]} : vector<10x12xf32> to vector<8x12xf32>
      %cst_153 = arith.constant dense<0.000000e+00> : vector<8x64xf32>
      %178 = tpu.matmul %177, %72, %cst_153 {dimension_numbers = #tpu.dot_dimension_numbers<[1], [0], [0], [1], [0, 0, 1, 1], [], []>} : vector<8x12xf32>, vector<12x64xf32>, vector<8x64xf32> -> vector<8x64xf32>
      %179 = arith.addf %176, %178 : vector<8x64xf32>
      %c1_i32_154 = arith.constant 1 : i32
      %180 = arith.addi %arg14, %c1_i32_154 : i32
      %181 = arith.index_cast %180 : i32 to index
      %c0_155 = arith.constant 0 : index
      %c0_156 = arith.constant 0 : index
      %182 = vector.load %arg11[%181, %c0_155, %c0_156] : memref<10x10x12xf32, #tpu.memory_space<vmem>>, vector<1x10x12xf32>
      %183 = vector.shape_cast %182 : vector<1x10x12xf32> to vector<10x12xf32>
      %184 = vector.extract_strided_slice %183 {offsets = [0, 0], sizes = [8, 12], strides = [1, 1]} : vector<10x12xf32> to vector<8x12xf32>
      %cst_157 = arith.constant dense<0.000000e+00> : vector<8x64xf32>
      %185 = tpu.matmul %184, %74, %cst_157 {dimension_numbers = #tpu.dot_dimension_numbers<[1], [0], [0], [1], [0, 0, 1, 1], [], []>} : vector<8x12xf32>, vector<12x64xf32>, vector<8x64xf32> -> vector<8x64xf32>
      %186 = arith.addf %179, %185 : vector<8x64xf32>
      %187 = vector.extract_strided_slice %183 {offsets = [1, 0], sizes = [8, 12], strides = [1, 1]} : vector<10x12xf32> to vector<8x12xf32>
      %cst_158 = arith.constant dense<0.000000e+00> : vector<8x64xf32>
      %188 = tpu.matmul %187, %76, %cst_158 {dimension_numbers = #tpu.dot_dimension_numbers<[1], [0], [0], [1], [0, 0, 1, 1], [], []>} : vector<8x12xf32>, vector<12x64xf32>, vector<8x64xf32> -> vector<8x64xf32>
      %189 = arith.addf %186, %188 : vector<8x64xf32>
      %190 = vector.extract_strided_slice %183 {offsets = [2, 0], sizes = [8, 12], strides = [1, 1]} : vector<10x12xf32> to vector<8x12xf32>
      %cst_159 = arith.constant dense<0.000000e+00> : vector<8x64xf32>
      %191 = tpu.matmul %190, %78, %cst_159 {dimension_numbers = #tpu.dot_dimension_numbers<[1], [0], [0], [1], [0, 0, 1, 1], [], []>} : vector<8x12xf32>, vector<12x64xf32>, vector<8x64xf32> -> vector<8x64xf32>
      %192 = arith.addf %189, %191 : vector<8x64xf32>
      %c2_i32_160 = arith.constant 2 : i32
      %193 = arith.addi %arg14, %c2_i32_160 : i32
      %194 = arith.index_cast %193 : i32 to index
      %c0_161 = arith.constant 0 : index
      %c0_162 = arith.constant 0 : index
      %195 = vector.load %arg11[%194, %c0_161, %c0_162] : memref<10x10x12xf32, #tpu.memory_space<vmem>>, vector<1x10x12xf32>
      %196 = vector.shape_cast %195 : vector<1x10x12xf32> to vector<10x12xf32>
      %197 = vector.extract_strided_slice %196 {offsets = [0, 0], sizes = [8, 12], strides = [1, 1]} : vector<10x12xf32> to vector<8x12xf32>
      %cst_163 = arith.constant dense<0.000000e+00> : vector<8x64xf32>
      %198 = tpu.matmul %197, %80, %cst_163 {dimension_numbers = #tpu.dot_dimension_numbers<[1], [0], [0], [1], [0, 0, 1, 1], [], []>} : vector<8x12xf32>, vector<12x64xf32>, vector<8x64xf32> -> vector<8x64xf32>
      %199 = arith.addf %192, %198 : vector<8x64xf32>
      %200 = vector.extract_strided_slice %196 {offsets = [1, 0], sizes = [8, 12], strides = [1, 1]} : vector<10x12xf32> to vector<8x12xf32>
      %cst_164 = arith.constant dense<0.000000e+00> : vector<8x64xf32>
      %201 = tpu.matmul %200, %82, %cst_164 {dimension_numbers = #tpu.dot_dimension_numbers<[1], [0], [0], [1], [0, 0, 1, 1], [], []>} : vector<8x12xf32>, vector<12x64xf32>, vector<8x64xf32> -> vector<8x64xf32>
      %202 = arith.addf %199, %201 : vector<8x64xf32>
      %203 = vector.extract_strided_slice %196 {offsets = [2, 0], sizes = [8, 12], strides = [1, 1]} : vector<10x12xf32> to vector<8x12xf32>
      %cst_165 = arith.constant dense<0.000000e+00> : vector<8x64xf32>
      %204 = tpu.matmul %203, %84, %cst_165 {dimension_numbers = #tpu.dot_dimension_numbers<[1], [0], [0], [1], [0, 0, 1, 1], [], []>} : vector<8x12xf32>, vector<12x64xf32>, vector<8x64xf32> -> vector<8x64xf32>
      %205 = arith.addf %202, %204 : vector<8x64xf32>
      %206 = vector.extract_strided_slice %205 {offsets = [0, 0], sizes = [8, 16], strides = [1, 1]} : vector<8x64xf32> to vector<8x16xf32>
      %207 = arith.addf %206, %66 : vector<8x16xf32>
      %cst_166 = arith.constant 0.000000e+00 : f32
      %208 = vector.broadcast %cst_166 : f32 to vector<8x16xf32>
      %209 = arith.maximumf %207, %208 : vector<8x16xf32>
      %210 = vector.extract_strided_slice %205 {offsets = [0, 16], sizes = [8, 16], strides = [1, 1]} : vector<8x64xf32> to vector<8x16xf32>
      %211 = arith.addf %210, %66 : vector<8x16xf32>
      %cst_167 = arith.constant 0.000000e+00 : f32
      %212 = vector.broadcast %cst_167 : f32 to vector<8x16xf32>
      %213 = arith.maximumf %211, %212 : vector<8x16xf32>
      %cst_168 = arith.constant dense<0.000000e+00> : vector<18x16xf32>
      %214 = tpu.matmul %54, %209, %cst_168 {dimension_numbers = #tpu.dot_dimension_numbers<[1], [0], [0], [1], [0, 0, 1, 1], [], []>} : vector<18x8xf32>, vector<8x16xf32>, vector<18x16xf32> -> vector<18x16xf32>
      %cst_169 = arith.constant dense<0.000000e+00> : vector<18x16xf32>
      %215 = tpu.matmul %63, %213, %cst_169 {dimension_numbers = #tpu.dot_dimension_numbers<[1], [0], [0], [1], [0, 0, 1, 1], [], []>} : vector<18x8xf32>, vector<8x16xf32>, vector<18x16xf32> -> vector<18x16xf32>
      %216 = arith.addf %214, %215 : vector<18x16xf32>
      %c2_i32_170 = arith.constant 2 : i32
      %217 = arith.muli %c2_i32_170, %arg14 : i32
      %c1_i32_171 = arith.constant 1 : i32
      %218 = arith.addi %c1_i32_171, %217 : i32
      %c0_i32_172 = arith.constant 0 : i32
      %219 = arith.addi %218, %c0_i32_172 : i32
      %220 = arith.index_cast %219 : i32 to index
      %c0_173 = arith.constant 0 : index
      %c0_174 = arith.constant 0 : index
      %221 = vector.load %arg12[%220, %c0_173, %c0_174] : memref<18x18x16xf32, #tpu.memory_space<vmem>>, vector<1x18x16xf32>
      %222 = vector.shape_cast %221 : vector<1x18x16xf32> to vector<18x16xf32>
      %223 = vector.shape_cast %216 : vector<18x16xf32> to vector<1x18x16xf32>
      tpu.vector_store %arg12[%220, %c0_173, %c0_174], %223 {strides = array<i32>} : memref<18x18x16xf32, #tpu.memory_space<vmem>>, vector<1x18x16xf32>,
      %224 = vector.extract_strided_slice %205 {offsets = [0, 32], sizes = [8, 16], strides = [1, 1]} : vector<8x64xf32> to vector<8x16xf32>
      %225 = arith.addf %224, %66 : vector<8x16xf32>
      %cst_175 = arith.constant 0.000000e+00 : f32
      %226 = vector.broadcast %cst_175 : f32 to vector<8x16xf32>
      %227 = arith.maximumf %225, %226 : vector<8x16xf32>
      %228 = vector.extract_strided_slice %205 {offsets = [0, 48], sizes = [8, 16], strides = [1, 1]} : vector<8x64xf32> to vector<8x16xf32>
      %229 = arith.addf %228, %66 : vector<8x16xf32>
      %cst_176 = arith.constant 0.000000e+00 : f32
      %230 = vector.broadcast %cst_176 : f32 to vector<8x16xf32>
      %231 = arith.maximumf %229, %230 : vector<8x16xf32>
      %cst_177 = arith.constant dense<0.000000e+00> : vector<18x16xf32>
      %232 = tpu.matmul %54, %227, %cst_177 {dimension_numbers = #tpu.dot_dimension_numbers<[1], [0], [0], [1], [0, 0, 1, 1], [], []>} : vector<18x8xf32>, vector<8x16xf32>, vector<18x16xf32> -> vector<18x16xf32>
      %cst_178 = arith.constant dense<0.000000e+00> : vector<18x16xf32>
      %233 = tpu.matmul %63, %231, %cst_178 {dimension_numbers = #tpu.dot_dimension_numbers<[1], [0], [0], [1], [0, 0, 1, 1], [], []>} : vector<18x8xf32>, vector<8x16xf32>, vector<18x16xf32> -> vector<18x16xf32>
      %234 = arith.addf %232, %233 : vector<18x16xf32>
      %c2_i32_179 = arith.constant 2 : i32
      %235 = arith.muli %c2_i32_179, %arg14 : i32
      %c1_i32_180 = arith.constant 1 : i32
      %236 = arith.addi %c1_i32_180, %235 : i32
      %c1_i32_181 = arith.constant 1 : i32
      %237 = arith.addi %236, %c1_i32_181 : i32
      %238 = arith.index_cast %237 : i32 to index
      %c0_182 = arith.constant 0 : index
      %c0_183 = arith.constant 0 : index
      %239 = vector.load %arg12[%238, %c0_182, %c0_183] : memref<18x18x16xf32, #tpu.memory_space<vmem>>, vector<1x18x16xf32>
      %240 = vector.shape_cast %239 : vector<1x18x16xf32> to vector<18x16xf32>
      %241 = vector.shape_cast %234 : vector<18x16xf32> to vector<1x18x16xf32>
      tpu.vector_store %arg12[%238, %c0_182, %c0_183], %241 {strides = array<i32>} : memref<18x18x16xf32, #tpu.memory_space<vmem>>, vector<1x18x16xf32>,
    }
    %c8_i32_72 = arith.constant 8 : i32
    %86 = tpu.iota {dimensions = array<i32: 0>} : vector<34x16xi32>
    %87 = tpu.iota {dimensions = array<i32: 1>} : vector<34x16xi32>
    %c2_i32_73 = arith.constant 2 : i32
    %88 = vector.broadcast %c2_i32_73 : i32 to vector<34x16xi32>
    %89 = arith.muli %88, %87 : vector<34x16xi32>
    %c1_i32_74 = arith.constant 1 : i32
    %90 = vector.broadcast %c1_i32_74 : i32 to vector<34x16xi32>
    %91 = arith.addi %89, %90 : vector<34x16xi32>
    %92 = arith.cmpi eq, %86, %91 : vector<34x16xi32>
    %93 = arith.extui %92 : vector<34x16xi1> to vector<34x16xi32>
    %94 = arith.sitofp %93 : vector<34x16xi32> to vector<34x16xf32>
    %c2_i32_75 = arith.constant 2 : i32
    %95 = vector.broadcast %c2_i32_75 : i32 to vector<34x16xi32>
    %96 = arith.muli %95, %87 : vector<34x16xi32>
    %c1_i32_76 = arith.constant 1 : i32
    %97 = vector.broadcast %c1_i32_76 : i32 to vector<34x16xi32>
    %98 = arith.addi %96, %97 : vector<34x16xi32>
    %c1_i32_77 = arith.constant 1 : i32
    %99 = vector.broadcast %c1_i32_77 : i32 to vector<34x16xi32>
    %100 = arith.addi %98, %99 : vector<34x16xi32>
    %101 = arith.cmpi eq, %86, %100 : vector<34x16xi32>
    %102 = arith.extui %101 : vector<34x16xi1> to vector<34x16xi32>
    %103 = arith.sitofp %102 : vector<34x16xi32> to vector<34x16xf32>
    %c0_78 = arith.constant 0 : index
    %c0_79 = arith.constant 0 : index
    %104 = vector.load %arg7[%c0_78, %c0_79] : memref<1x24xf32, #tpu.memory_space<vmem>>, vector<1x24xf32>
    %105 = vector.shape_cast %104 : vector<1x24xf32> to vector<1x24xf32>
    %106 = vector.broadcast %105 : vector<1x24xf32> to vector<16x24xf32>
    %c0_80 = arith.constant 0 : index
    %c0_81 = arith.constant 0 : index
    %c0_82 = arith.constant 0 : index
    %107 = vector.load %arg6[%c0_80, %c0_81, %c0_82] : memref<9x16x96xf32, #tpu.memory_space<vmem>>, vector<1x16x96xf32>
    %108 = vector.shape_cast %107 : vector<1x16x96xf32> to vector<16x96xf32>
    %c1_83 = arith.constant 1 : index
    %c0_84 = arith.constant 0 : index
    %c0_85 = arith.constant 0 : index
    %109 = vector.load %arg6[%c1_83, %c0_84, %c0_85] : memref<9x16x96xf32, #tpu.memory_space<vmem>>, vector<1x16x96xf32>
    %110 = vector.shape_cast %109 : vector<1x16x96xf32> to vector<16x96xf32>
    %c2_86 = arith.constant 2 : index
    %c0_87 = arith.constant 0 : index
    %c0_88 = arith.constant 0 : index
    %111 = vector.load %arg6[%c2_86, %c0_87, %c0_88] : memref<9x16x96xf32, #tpu.memory_space<vmem>>, vector<1x16x96xf32>
    %112 = vector.shape_cast %111 : vector<1x16x96xf32> to vector<16x96xf32>
    %c3_89 = arith.constant 3 : index
    %c0_90 = arith.constant 0 : index
    %c0_91 = arith.constant 0 : index
    %113 = vector.load %arg6[%c3_89, %c0_90, %c0_91] : memref<9x16x96xf32, #tpu.memory_space<vmem>>, vector<1x16x96xf32>
    %114 = vector.shape_cast %113 : vector<1x16x96xf32> to vector<16x96xf32>
    %c4_92 = arith.constant 4 : index
    %c0_93 = arith.constant 0 : index
    %c0_94 = arith.constant 0 : index
    %115 = vector.load %arg6[%c4_92, %c0_93, %c0_94] : memref<9x16x96xf32, #tpu.memory_space<vmem>>, vector<1x16x96xf32>
    %116 = vector.shape_cast %115 : vector<1x16x96xf32> to vector<16x96xf32>
    %c5_95 = arith.constant 5 : index
    %c0_96 = arith.constant 0 : index
    %c0_97 = arith.constant 0 : index
    %117 = vector.load %arg6[%c5_95, %c0_96, %c0_97] : memref<9x16x96xf32, #tpu.memory_space<vmem>>, vector<1x16x96xf32>
    %118 = vector.shape_cast %117 : vector<1x16x96xf32> to vector<16x96xf32>
    %c6_98 = arith.constant 6 : index
    %c0_99 = arith.constant 0 : index
    %c0_100 = arith.constant 0 : index
    %119 = vector.load %arg6[%c6_98, %c0_99, %c0_100] : memref<9x16x96xf32, #tpu.memory_space<vmem>>, vector<1x16x96xf32>
    %120 = vector.shape_cast %119 : vector<1x16x96xf32> to vector<16x96xf32>
    %c7_101 = arith.constant 7 : index
    %c0_102 = arith.constant 0 : index
    %c0_103 = arith.constant 0 : index
    %121 = vector.load %arg6[%c7_101, %c0_102, %c0_103] : memref<9x16x96xf32, #tpu.memory_space<vmem>>, vector<1x16x96xf32>
    %122 = vector.shape_cast %121 : vector<1x16x96xf32> to vector<16x96xf32>
    %c8_104 = arith.constant 8 : index
    %c0_105 = arith.constant 0 : index
    %c0_106 = arith.constant 0 : index
    %123 = vector.load %arg6[%c8_104, %c0_105, %c0_106] : memref<9x16x96xf32, #tpu.memory_space<vmem>>, vector<1x16x96xf32>
    %124 = vector.shape_cast %123 : vector<1x16x96xf32> to vector<16x96xf32>
    %c0_i32_107 = arith.constant 0 : i32
    %c16_i32 = arith.constant 16 : i32
    %125 = arith.addi %c0_i32_107, %c16_i32 : i32
    %c1_i32_108 = arith.constant 1 : i32
    scf.for %arg14 = %c0_i32_107 to %125 step %c1_i32_108  : i32 {
      %cst_147 = arith.constant 0.000000e+00 : f32
      %166 = vector.broadcast %cst_147 : f32 to vector<16x96xf32>
      %c0_i32_148 = arith.constant 0 : i32
      %167 = arith.addi %arg14, %c0_i32_148 : i32
      %168 = arith.index_cast %167 : i32 to index
      %c0_149 = arith.constant 0 : index
      %c0_150 = arith.constant 0 : index
      %169 = vector.load %arg12[%168, %c0_149, %c0_150] : memref<18x18x16xf32, #tpu.memory_space<vmem>>, vector<1x18x16xf32>
      %170 = vector.shape_cast %169 : vector<1x18x16xf32> to vector<18x16xf32>
      %171 = vector.extract_strided_slice %170 {offsets = [0, 0], sizes = [16, 16], strides = [1, 1]} : vector<18x16xf32> to vector<16x16xf32>
      %cst_151 = arith.constant dense<0.000000e+00> : vector<16x96xf32>
      %172 = tpu.matmul %171, %108, %cst_151 {dimension_numbers = #tpu.dot_dimension_numbers<[1], [0], [0], [1], [0, 0, 1, 1], [], []>} : vector<16x16xf32>, vector<16x96xf32>, vector<16x96xf32> -> vector<16x96xf32>
      %173 = arith.addf %166, %172 : vector<16x96xf32>
      %174 = vector.extract_strided_slice %170 {offsets = [1, 0], sizes = [16, 16], strides = [1, 1]} : vector<18x16xf32> to vector<16x16xf32>
      %cst_152 = arith.constant dense<0.000000e+00> : vector<16x96xf32>
      %175 = tpu.matmul %174, %110, %cst_152 {dimension_numbers = #tpu.dot_dimension_numbers<[1], [0], [0], [1], [0, 0, 1, 1], [], []>} : vector<16x16xf32>, vector<16x96xf32>, vector<16x96xf32> -> vector<16x96xf32>
      %176 = arith.addf %173, %175 : vector<16x96xf32>
      %177 = vector.extract_strided_slice %170 {offsets = [2, 0], sizes = [16, 16], strides = [1, 1]} : vector<18x16xf32> to vector<16x16xf32>
      %cst_153 = arith.constant dense<0.000000e+00> : vector<16x96xf32>
      %178 = tpu.matmul %177, %112, %cst_153 {dimension_numbers = #tpu.dot_dimension_numbers<[1], [0], [0], [1], [0, 0, 1, 1], [], []>} : vector<16x16xf32>, vector<16x96xf32>, vector<16x96xf32> -> vector<16x96xf32>
      %179 = arith.addf %176, %178 : vector<16x96xf32>
      %c1_i32_154 = arith.constant 1 : i32
      %180 = arith.addi %arg14, %c1_i32_154 : i32
      %181 = arith.index_cast %180 : i32 to index
      %c0_155 = arith.constant 0 : index
      %c0_156 = arith.constant 0 : index
      %182 = vector.load %arg12[%181, %c0_155, %c0_156] : memref<18x18x16xf32, #tpu.memory_space<vmem>>, vector<1x18x16xf32>
      %183 = vector.shape_cast %182 : vector<1x18x16xf32> to vector<18x16xf32>
      %184 = vector.extract_strided_slice %183 {offsets = [0, 0], sizes = [16, 16], strides = [1, 1]} : vector<18x16xf32> to vector<16x16xf32>
      %cst_157 = arith.constant dense<0.000000e+00> : vector<16x96xf32>
      %185 = tpu.matmul %184, %114, %cst_157 {dimension_numbers = #tpu.dot_dimension_numbers<[1], [0], [0], [1], [0, 0, 1, 1], [], []>} : vector<16x16xf32>, vector<16x96xf32>, vector<16x96xf32> -> vector<16x96xf32>
      %186 = arith.addf %179, %185 : vector<16x96xf32>
      %187 = vector.extract_strided_slice %183 {offsets = [1, 0], sizes = [16, 16], strides = [1, 1]} : vector<18x16xf32> to vector<16x16xf32>
      %cst_158 = arith.constant dense<0.000000e+00> : vector<16x96xf32>
      %188 = tpu.matmul %187, %116, %cst_158 {dimension_numbers = #tpu.dot_dimension_numbers<[1], [0], [0], [1], [0, 0, 1, 1], [], []>} : vector<16x16xf32>, vector<16x96xf32>, vector<16x96xf32> -> vector<16x96xf32>
      %189 = arith.addf %186, %188 : vector<16x96xf32>
      %190 = vector.extract_strided_slice %183 {offsets = [2, 0], sizes = [16, 16], strides = [1, 1]} : vector<18x16xf32> to vector<16x16xf32>
      %cst_159 = arith.constant dense<0.000000e+00> : vector<16x96xf32>
      %191 = tpu.matmul %190, %118, %cst_159 {dimension_numbers = #tpu.dot_dimension_numbers<[1], [0], [0], [1], [0, 0, 1, 1], [], []>} : vector<16x16xf32>, vector<16x96xf32>, vector<16x96xf32> -> vector<16x96xf32>
      %192 = arith.addf %189, %191 : vector<16x96xf32>
      %c2_i32_160 = arith.constant 2 : i32
      %193 = arith.addi %arg14, %c2_i32_160 : i32
      %194 = arith.index_cast %193 : i32 to index
      %c0_161 = arith.constant 0 : index
      %c0_162 = arith.constant 0 : index
      %195 = vector.load %arg12[%194, %c0_161, %c0_162] : memref<18x18x16xf32, #tpu.memory_space<vmem>>, vector<1x18x16xf32>
      %196 = vector.shape_cast %195 : vector<1x18x16xf32> to vector<18x16xf32>
      %197 = vector.extract_strided_slice %196 {offsets = [0, 0], sizes = [16, 16], strides = [1, 1]} : vector<18x16xf32> to vector<16x16xf32>
      %cst_163 = arith.constant dense<0.000000e+00> : vector<16x96xf32>
      %198 = tpu.matmul %197, %120, %cst_163 {dimension_numbers = #tpu.dot_dimension_numbers<[1], [0], [0], [1], [0, 0, 1, 1], [], []>} : vector<16x16xf32>, vector<16x96xf32>, vector<16x96xf32> -> vector<16x96xf32>
      %199 = arith.addf %192, %198 : vector<16x96xf32>
      %200 = vector.extract_strided_slice %196 {offsets = [1, 0], sizes = [16, 16], strides = [1, 1]} : vector<18x16xf32> to vector<16x16xf32>
      %cst_164 = arith.constant dense<0.000000e+00> : vector<16x96xf32>
      %201 = tpu.matmul %200, %122, %cst_164 {dimension_numbers = #tpu.dot_dimension_numbers<[1], [0], [0], [1], [0, 0, 1, 1], [], []>} : vector<16x16xf32>, vector<16x96xf32>, vector<16x96xf32> -> vector<16x96xf32>
      %202 = arith.addf %199, %201 : vector<16x96xf32>
      %203 = vector.extract_strided_slice %196 {offsets = [2, 0], sizes = [16, 16], strides = [1, 1]} : vector<18x16xf32> to vector<16x16xf32>
      %cst_165 = arith.constant dense<0.000000e+00> : vector<16x96xf32>
      %204 = tpu.matmul %203, %124, %cst_165 {dimension_numbers = #tpu.dot_dimension_numbers<[1], [0], [0], [1], [0, 0, 1, 1], [], []>} : vector<16x16xf32>, vector<16x96xf32>, vector<16x96xf32> -> vector<16x96xf32>
      %205 = arith.addf %202, %204 : vector<16x96xf32>
      %206 = vector.extract_strided_slice %205 {offsets = [0, 0], sizes = [16, 24], strides = [1, 1]} : vector<16x96xf32> to vector<16x24xf32>
      %207 = arith.addf %206, %106 : vector<16x24xf32>
      %cst_166 = arith.constant 0.000000e+00 : f32
      %208 = vector.broadcast %cst_166 : f32 to vector<16x24xf32>
      %209 = arith.maximumf %207, %208 : vector<16x24xf32>
      %210 = vector.extract_strided_slice %205 {offsets = [0, 24], sizes = [16, 24], strides = [1, 1]} : vector<16x96xf32> to vector<16x24xf32>
      %211 = arith.addf %210, %106 : vector<16x24xf32>
      %cst_167 = arith.constant 0.000000e+00 : f32
      %212 = vector.broadcast %cst_167 : f32 to vector<16x24xf32>
      %213 = arith.maximumf %211, %212 : vector<16x24xf32>
      %cst_168 = arith.constant dense<0.000000e+00> : vector<34x24xf32>
      %214 = tpu.matmul %94, %209, %cst_168 {dimension_numbers = #tpu.dot_dimension_numbers<[1], [0], [0], [1], [0, 0, 1, 1], [], []>} : vector<34x16xf32>, vector<16x24xf32>, vector<34x24xf32> -> vector<34x24xf32>
      %cst_169 = arith.constant dense<0.000000e+00> : vector<34x24xf32>
      %215 = tpu.matmul %103, %213, %cst_169 {dimension_numbers = #tpu.dot_dimension_numbers<[1], [0], [0], [1], [0, 0, 1, 1], [], []>} : vector<34x16xf32>, vector<16x24xf32>, vector<34x24xf32> -> vector<34x24xf32>
      %216 = arith.addf %214, %215 : vector<34x24xf32>
      %c2_i32_170 = arith.constant 2 : i32
      %217 = arith.muli %c2_i32_170, %arg14 : i32
      %c1_i32_171 = arith.constant 1 : i32
      %218 = arith.addi %c1_i32_171, %217 : i32
      %c0_i32_172 = arith.constant 0 : i32
      %219 = arith.addi %218, %c0_i32_172 : i32
      %220 = arith.index_cast %219 : i32 to index
      %c0_173 = arith.constant 0 : index
      %c0_174 = arith.constant 0 : index
      %221 = vector.load %arg13[%220, %c0_173, %c0_174] : memref<34x34x24xf32, #tpu.memory_space<vmem>>, vector<1x34x24xf32>
      %222 = vector.shape_cast %221 : vector<1x34x24xf32> to vector<34x24xf32>
      %223 = vector.shape_cast %216 : vector<34x24xf32> to vector<1x34x24xf32>
      tpu.vector_store %arg13[%220, %c0_173, %c0_174], %223 {strides = array<i32>} : memref<34x34x24xf32, #tpu.memory_space<vmem>>, vector<1x34x24xf32>,
      %224 = vector.extract_strided_slice %205 {offsets = [0, 48], sizes = [16, 24], strides = [1, 1]} : vector<16x96xf32> to vector<16x24xf32>
      %225 = arith.addf %224, %106 : vector<16x24xf32>
      %cst_175 = arith.constant 0.000000e+00 : f32
      %226 = vector.broadcast %cst_175 : f32 to vector<16x24xf32>
      %227 = arith.maximumf %225, %226 : vector<16x24xf32>
      %228 = vector.extract_strided_slice %205 {offsets = [0, 72], sizes = [16, 24], strides = [1, 1]} : vector<16x96xf32> to vector<16x24xf32>
      %229 = arith.addf %228, %106 : vector<16x24xf32>
      %cst_176 = arith.constant 0.000000e+00 : f32
      %230 = vector.broadcast %cst_176 : f32 to vector<16x24xf32>
      %231 = arith.maximumf %229, %230 : vector<16x24xf32>
      %cst_177 = arith.constant dense<0.000000e+00> : vector<34x24xf32>
      %232 = tpu.matmul %94, %227, %cst_177 {dimension_numbers = #tpu.dot_dimension_numbers<[1], [0], [0], [1], [0, 0, 1, 1], [], []>} : vector<34x16xf32>, vector<16x24xf32>, vector<34x24xf32> -> vector<34x24xf32>
      %cst_178 = arith.constant dense<0.000000e+00> : vector<34x24xf32>
      %233 = tpu.matmul %103, %231, %cst_178 {dimension_numbers = #tpu.dot_dimension_numbers<[1], [0], [0], [1], [0, 0, 1, 1], [], []>} : vector<34x16xf32>, vector<16x24xf32>, vector<34x24xf32> -> vector<34x24xf32>
      %234 = arith.addf %232, %233 : vector<34x24xf32>
      %c2_i32_179 = arith.constant 2 : i32
      %235 = arith.muli %c2_i32_179, %arg14 : i32
      %c1_i32_180 = arith.constant 1 : i32
      %236 = arith.addi %c1_i32_180, %235 : i32
      %c1_i32_181 = arith.constant 1 : i32
      %237 = arith.addi %236, %c1_i32_181 : i32
      %238 = arith.index_cast %237 : i32 to index
      %c0_182 = arith.constant 0 : index
      %c0_183 = arith.constant 0 : index
      %239 = vector.load %arg13[%238, %c0_182, %c0_183] : memref<34x34x24xf32, #tpu.memory_space<vmem>>, vector<1x34x24xf32>
      %240 = vector.shape_cast %239 : vector<1x34x24xf32> to vector<34x24xf32>
      %241 = vector.shape_cast %234 : vector<34x24xf32> to vector<1x34x24xf32>
      tpu.vector_store %arg13[%238, %c0_182, %c0_183], %241 {strides = array<i32>} : memref<34x34x24xf32, #tpu.memory_space<vmem>>, vector<1x34x24xf32>,
    }
    %c16_i32_109 = arith.constant 16 : i32
    %126 = tpu.iota {dimensions = array<i32: 0>} : vector<64x32xi32>
    %127 = tpu.iota {dimensions = array<i32: 1>} : vector<64x32xi32>
    %c2_i32_110 = arith.constant 2 : i32
    %128 = vector.broadcast %c2_i32_110 : i32 to vector<64x32xi32>
    %129 = arith.muli %128, %127 : vector<64x32xi32>
    %c0_i32_111 = arith.constant 0 : i32
    %130 = vector.broadcast %c0_i32_111 : i32 to vector<64x32xi32>
    %131 = arith.addi %129, %130 : vector<64x32xi32>
    %132 = arith.cmpi eq, %126, %131 : vector<64x32xi32>
    %133 = arith.extui %132 : vector<64x32xi1> to vector<64x32xi32>
    %134 = arith.sitofp %133 : vector<64x32xi32> to vector<64x32xf32>
    %c2_i32_112 = arith.constant 2 : i32
    %135 = vector.broadcast %c2_i32_112 : i32 to vector<64x32xi32>
    %136 = arith.muli %135, %127 : vector<64x32xi32>
    %c1_i32_113 = arith.constant 1 : i32
    %137 = vector.broadcast %c1_i32_113 : i32 to vector<64x32xi32>
    %138 = arith.addi %136, %137 : vector<64x32xi32>
    %c0_i32_114 = arith.constant 0 : i32
    %139 = vector.broadcast %c0_i32_114 : i32 to vector<64x32xi32>
    %140 = arith.addi %138, %139 : vector<64x32xi32>
    %141 = arith.cmpi eq, %126, %140 : vector<64x32xi32>
    %142 = arith.extui %141 : vector<64x32xi1> to vector<64x32xi32>
    %143 = arith.sitofp %142 : vector<64x32xi32> to vector<64x32xf32>
    %c0_115 = arith.constant 0 : index
    %c0_116 = arith.constant 0 : index
    %144 = vector.load %arg9[%c0_115, %c0_116] : memref<1x3xf32, #tpu.memory_space<vmem>>, vector<1x3xf32>
    %145 = vector.shape_cast %144 : vector<1x3xf32> to vector<1x3xf32>
    %146 = vector.broadcast %145 : vector<1x3xf32> to vector<32x3xf32>
    %c0_117 = arith.constant 0 : index
    %c0_118 = arith.constant 0 : index
    %c0_119 = arith.constant 0 : index
    %147 = vector.load %arg8[%c0_117, %c0_118, %c0_119] : memref<9x24x12xf32, #tpu.memory_space<vmem>>, vector<1x24x12xf32>
    %148 = vector.shape_cast %147 : vector<1x24x12xf32> to vector<24x12xf32>
    %c1_120 = arith.constant 1 : index
    %c0_121 = arith.constant 0 : index
    %c0_122 = arith.constant 0 : index
    %149 = vector.load %arg8[%c1_120, %c0_121, %c0_122] : memref<9x24x12xf32, #tpu.memory_space<vmem>>, vector<1x24x12xf32>
    %150 = vector.shape_cast %149 : vector<1x24x12xf32> to vector<24x12xf32>
    %c2_123 = arith.constant 2 : index
    %c0_124 = arith.constant 0 : index
    %c0_125 = arith.constant 0 : index
    %151 = vector.load %arg8[%c2_123, %c0_124, %c0_125] : memref<9x24x12xf32, #tpu.memory_space<vmem>>, vector<1x24x12xf32>
    %152 = vector.shape_cast %151 : vector<1x24x12xf32> to vector<24x12xf32>
    %c3_126 = arith.constant 3 : index
    %c0_127 = arith.constant 0 : index
    %c0_128 = arith.constant 0 : index
    %153 = vector.load %arg8[%c3_126, %c0_127, %c0_128] : memref<9x24x12xf32, #tpu.memory_space<vmem>>, vector<1x24x12xf32>
    %154 = vector.shape_cast %153 : vector<1x24x12xf32> to vector<24x12xf32>
    %c4_129 = arith.constant 4 : index
    %c0_130 = arith.constant 0 : index
    %c0_131 = arith.constant 0 : index
    %155 = vector.load %arg8[%c4_129, %c0_130, %c0_131] : memref<9x24x12xf32, #tpu.memory_space<vmem>>, vector<1x24x12xf32>
    %156 = vector.shape_cast %155 : vector<1x24x12xf32> to vector<24x12xf32>
    %c5_132 = arith.constant 5 : index
    %c0_133 = arith.constant 0 : index
    %c0_134 = arith.constant 0 : index
    %157 = vector.load %arg8[%c5_132, %c0_133, %c0_134] : memref<9x24x12xf32, #tpu.memory_space<vmem>>, vector<1x24x12xf32>
    %158 = vector.shape_cast %157 : vector<1x24x12xf32> to vector<24x12xf32>
    %c6_135 = arith.constant 6 : index
    %c0_136 = arith.constant 0 : index
    %c0_137 = arith.constant 0 : index
    %159 = vector.load %arg8[%c6_135, %c0_136, %c0_137] : memref<9x24x12xf32, #tpu.memory_space<vmem>>, vector<1x24x12xf32>
    %160 = vector.shape_cast %159 : vector<1x24x12xf32> to vector<24x12xf32>
    %c7_138 = arith.constant 7 : index
    %c0_139 = arith.constant 0 : index
    %c0_140 = arith.constant 0 : index
    %161 = vector.load %arg8[%c7_138, %c0_139, %c0_140] : memref<9x24x12xf32, #tpu.memory_space<vmem>>, vector<1x24x12xf32>
    %162 = vector.shape_cast %161 : vector<1x24x12xf32> to vector<24x12xf32>
    %c8_141 = arith.constant 8 : index
    %c0_142 = arith.constant 0 : index
    %c0_143 = arith.constant 0 : index
    %163 = vector.load %arg8[%c8_141, %c0_142, %c0_143] : memref<9x24x12xf32, #tpu.memory_space<vmem>>, vector<1x24x12xf32>
    %164 = vector.shape_cast %163 : vector<1x24x12xf32> to vector<24x12xf32>
    %c0_i32_144 = arith.constant 0 : i32
    %c32_i32 = arith.constant 32 : i32
    %165 = arith.addi %c0_i32_144, %c32_i32 : i32
    %c1_i32_145 = arith.constant 1 : i32
    scf.for %arg14 = %c0_i32_144 to %165 step %c1_i32_145  : i32 {
      %cst_147 = arith.constant 0.000000e+00 : f32
      %166 = vector.broadcast %cst_147 : f32 to vector<32x12xf32>
      %c0_i32_148 = arith.constant 0 : i32
      %167 = arith.addi %arg14, %c0_i32_148 : i32
      %168 = arith.index_cast %167 : i32 to index
      %c0_149 = arith.constant 0 : index
      %c0_150 = arith.constant 0 : index
      %169 = vector.load %arg13[%168, %c0_149, %c0_150] : memref<34x34x24xf32, #tpu.memory_space<vmem>>, vector<1x34x24xf32>
      %170 = vector.shape_cast %169 : vector<1x34x24xf32> to vector<34x24xf32>
      %171 = vector.extract_strided_slice %170 {offsets = [0, 0], sizes = [32, 24], strides = [1, 1]} : vector<34x24xf32> to vector<32x24xf32>
      %cst_151 = arith.constant dense<0.000000e+00> : vector<32x12xf32>
      %172 = tpu.matmul %171, %148, %cst_151 {dimension_numbers = #tpu.dot_dimension_numbers<[1], [0], [0], [1], [0, 0, 1, 1], [], []>} : vector<32x24xf32>, vector<24x12xf32>, vector<32x12xf32> -> vector<32x12xf32>
      %173 = arith.addf %166, %172 : vector<32x12xf32>
      %174 = vector.extract_strided_slice %170 {offsets = [1, 0], sizes = [32, 24], strides = [1, 1]} : vector<34x24xf32> to vector<32x24xf32>
      %cst_152 = arith.constant dense<0.000000e+00> : vector<32x12xf32>
      %175 = tpu.matmul %174, %150, %cst_152 {dimension_numbers = #tpu.dot_dimension_numbers<[1], [0], [0], [1], [0, 0, 1, 1], [], []>} : vector<32x24xf32>, vector<24x12xf32>, vector<32x12xf32> -> vector<32x12xf32>
      %176 = arith.addf %173, %175 : vector<32x12xf32>
      %177 = vector.extract_strided_slice %170 {offsets = [2, 0], sizes = [32, 24], strides = [1, 1]} : vector<34x24xf32> to vector<32x24xf32>
      %cst_153 = arith.constant dense<0.000000e+00> : vector<32x12xf32>
      %178 = tpu.matmul %177, %152, %cst_153 {dimension_numbers = #tpu.dot_dimension_numbers<[1], [0], [0], [1], [0, 0, 1, 1], [], []>} : vector<32x24xf32>, vector<24x12xf32>, vector<32x12xf32> -> vector<32x12xf32>
      %179 = arith.addf %176, %178 : vector<32x12xf32>
      %c1_i32_154 = arith.constant 1 : i32
      %180 = arith.addi %arg14, %c1_i32_154 : i32
      %181 = arith.index_cast %180 : i32 to index
      %c0_155 = arith.constant 0 : index
      %c0_156 = arith.constant 0 : index
      %182 = vector.load %arg13[%181, %c0_155, %c0_156] : memref<34x34x24xf32, #tpu.memory_space<vmem>>, vector<1x34x24xf32>
      %183 = vector.shape_cast %182 : vector<1x34x24xf32> to vector<34x24xf32>
      %184 = vector.extract_strided_slice %183 {offsets = [0, 0], sizes = [32, 24], strides = [1, 1]} : vector<34x24xf32> to vector<32x24xf32>
      %cst_157 = arith.constant dense<0.000000e+00> : vector<32x12xf32>
      %185 = tpu.matmul %184, %154, %cst_157 {dimension_numbers = #tpu.dot_dimension_numbers<[1], [0], [0], [1], [0, 0, 1, 1], [], []>} : vector<32x24xf32>, vector<24x12xf32>, vector<32x12xf32> -> vector<32x12xf32>
      %186 = arith.addf %179, %185 : vector<32x12xf32>
      %187 = vector.extract_strided_slice %183 {offsets = [1, 0], sizes = [32, 24], strides = [1, 1]} : vector<34x24xf32> to vector<32x24xf32>
      %cst_158 = arith.constant dense<0.000000e+00> : vector<32x12xf32>
      %188 = tpu.matmul %187, %156, %cst_158 {dimension_numbers = #tpu.dot_dimension_numbers<[1], [0], [0], [1], [0, 0, 1, 1], [], []>} : vector<32x24xf32>, vector<24x12xf32>, vector<32x12xf32> -> vector<32x12xf32>
      %189 = arith.addf %186, %188 : vector<32x12xf32>
      %190 = vector.extract_strided_slice %183 {offsets = [2, 0], sizes = [32, 24], strides = [1, 1]} : vector<34x24xf32> to vector<32x24xf32>
      %cst_159 = arith.constant dense<0.000000e+00> : vector<32x12xf32>
      %191 = tpu.matmul %190, %158, %cst_159 {dimension_numbers = #tpu.dot_dimension_numbers<[1], [0], [0], [1], [0, 0, 1, 1], [], []>} : vector<32x24xf32>, vector<24x12xf32>, vector<32x12xf32> -> vector<32x12xf32>
      %192 = arith.addf %189, %191 : vector<32x12xf32>
      %c2_i32_160 = arith.constant 2 : i32
      %193 = arith.addi %arg14, %c2_i32_160 : i32
      %194 = arith.index_cast %193 : i32 to index
      %c0_161 = arith.constant 0 : index
      %c0_162 = arith.constant 0 : index
      %195 = vector.load %arg13[%194, %c0_161, %c0_162] : memref<34x34x24xf32, #tpu.memory_space<vmem>>, vector<1x34x24xf32>
      %196 = vector.shape_cast %195 : vector<1x34x24xf32> to vector<34x24xf32>
      %197 = vector.extract_strided_slice %196 {offsets = [0, 0], sizes = [32, 24], strides = [1, 1]} : vector<34x24xf32> to vector<32x24xf32>
      %cst_163 = arith.constant dense<0.000000e+00> : vector<32x12xf32>
      %198 = tpu.matmul %197, %160, %cst_163 {dimension_numbers = #tpu.dot_dimension_numbers<[1], [0], [0], [1], [0, 0, 1, 1], [], []>} : vector<32x24xf32>, vector<24x12xf32>, vector<32x12xf32> -> vector<32x12xf32>
      %199 = arith.addf %192, %198 : vector<32x12xf32>
      %200 = vector.extract_strided_slice %196 {offsets = [1, 0], sizes = [32, 24], strides = [1, 1]} : vector<34x24xf32> to vector<32x24xf32>
      %cst_164 = arith.constant dense<0.000000e+00> : vector<32x12xf32>
      %201 = tpu.matmul %200, %162, %cst_164 {dimension_numbers = #tpu.dot_dimension_numbers<[1], [0], [0], [1], [0, 0, 1, 1], [], []>} : vector<32x24xf32>, vector<24x12xf32>, vector<32x12xf32> -> vector<32x12xf32>
      %202 = arith.addf %199, %201 : vector<32x12xf32>
      %203 = vector.extract_strided_slice %196 {offsets = [2, 0], sizes = [32, 24], strides = [1, 1]} : vector<34x24xf32> to vector<32x24xf32>
      %cst_165 = arith.constant dense<0.000000e+00> : vector<32x12xf32>
      %204 = tpu.matmul %203, %164, %cst_165 {dimension_numbers = #tpu.dot_dimension_numbers<[1], [0], [0], [1], [0, 0, 1, 1], [], []>} : vector<32x24xf32>, vector<24x12xf32>, vector<32x12xf32> -> vector<32x12xf32>
      %205 = arith.addf %202, %204 : vector<32x12xf32>
      %206 = vector.extract_strided_slice %205 {offsets = [0, 0], sizes = [32, 3], strides = [1, 1]} : vector<32x12xf32> to vector<32x3xf32>
      %207 = arith.addf %206, %146 : vector<32x3xf32>
      %cst_166 = arith.constant 0.000000e+00 : f32
      %cst_167 = arith.constant 1.000000e+00 : f32
      %208 = vector.broadcast %cst_166 : f32 to vector<32x3xf32>
      %209 = arith.maximumf %208, %207 : vector<32x3xf32>
      %210 = vector.broadcast %cst_167 : f32 to vector<32x3xf32>
      %211 = arith.minimumf %210, %209 : vector<32x3xf32>
      %212 = arith.subf %207, %211 : vector<32x3xf32>
      %cst_168 = arith.constant 0.00999999977 : f32
      %213 = vector.broadcast %cst_168 : f32 to vector<32x3xf32>
      %214 = arith.mulf %213, %212 : vector<32x3xf32>
      %215 = arith.addf %211, %214 : vector<32x3xf32>
      %216 = vector.extract_strided_slice %205 {offsets = [0, 3], sizes = [32, 3], strides = [1, 1]} : vector<32x12xf32> to vector<32x3xf32>
      %217 = arith.addf %216, %146 : vector<32x3xf32>
      %cst_169 = arith.constant 0.000000e+00 : f32
      %cst_170 = arith.constant 1.000000e+00 : f32
      %218 = vector.broadcast %cst_169 : f32 to vector<32x3xf32>
      %219 = arith.maximumf %218, %217 : vector<32x3xf32>
      %220 = vector.broadcast %cst_170 : f32 to vector<32x3xf32>
      %221 = arith.minimumf %220, %219 : vector<32x3xf32>
      %222 = arith.subf %217, %221 : vector<32x3xf32>
      %cst_171 = arith.constant 0.00999999977 : f32
      %223 = vector.broadcast %cst_171 : f32 to vector<32x3xf32>
      %224 = arith.mulf %223, %222 : vector<32x3xf32>
      %225 = arith.addf %221, %224 : vector<32x3xf32>
      %cst_172 = arith.constant dense<0.000000e+00> : vector<64x3xf32>
      %226 = tpu.matmul %134, %215, %cst_172 {dimension_numbers = #tpu.dot_dimension_numbers<[1], [0], [0], [1], [0, 0, 1, 1], [], []>} : vector<64x32xf32>, vector<32x3xf32>, vector<64x3xf32> -> vector<64x3xf32>
      %cst_173 = arith.constant dense<0.000000e+00> : vector<64x3xf32>
      %227 = tpu.matmul %143, %225, %cst_173 {dimension_numbers = #tpu.dot_dimension_numbers<[1], [0], [0], [1], [0, 0, 1, 1], [], []>} : vector<64x32xf32>, vector<32x3xf32>, vector<64x3xf32> -> vector<64x3xf32>
      %228 = arith.addf %226, %227 : vector<64x3xf32>
      %c2_i32_174 = arith.constant 2 : i32
      %229 = arith.muli %c2_i32_174, %arg14 : i32
      %c0_i32_175 = arith.constant 0 : i32
      %230 = arith.addi %c0_i32_175, %229 : i32
      %c0_i32_176 = arith.constant 0 : i32
      %231 = arith.addi %230, %c0_i32_176 : i32
      %c0_177 = arith.constant 0 : index
      %232 = arith.index_cast %231 : i32 to index
      %c0_178 = arith.constant 0 : index
      %c0_179 = arith.constant 0 : index
      %233 = vector.load %arg10[%c0_177, %232, %c0_178, %c0_179] : memref<1x64x64x3xf32, #tpu.memory_space<vmem>>, vector<1x1x64x3xf32>
      %234 = vector.shape_cast %233 : vector<1x1x64x3xf32> to vector<64x3xf32>
      %235 = vector.shape_cast %228 : vector<64x3xf32> to vector<1x1x64x3xf32>
      tpu.vector_store %arg10[%c0_177, %232, %c0_178, %c0_179], %235 {strides = array<i32>} : memref<1x64x64x3xf32, #tpu.memory_space<vmem>>, vector<1x1x64x3xf32>,
      %236 = vector.extract_strided_slice %205 {offsets = [0, 6], sizes = [32, 3], strides = [1, 1]} : vector<32x12xf32> to vector<32x3xf32>
      %237 = arith.addf %236, %146 : vector<32x3xf32>
      %cst_180 = arith.constant 0.000000e+00 : f32
      %cst_181 = arith.constant 1.000000e+00 : f32
      %238 = vector.broadcast %cst_180 : f32 to vector<32x3xf32>
      %239 = arith.maximumf %238, %237 : vector<32x3xf32>
      %240 = vector.broadcast %cst_181 : f32 to vector<32x3xf32>
      %241 = arith.minimumf %240, %239 : vector<32x3xf32>
      %242 = arith.subf %237, %241 : vector<32x3xf32>
      %cst_182 = arith.constant 0.00999999977 : f32
      %243 = vector.broadcast %cst_182 : f32 to vector<32x3xf32>
      %244 = arith.mulf %243, %242 : vector<32x3xf32>
      %245 = arith.addf %241, %244 : vector<32x3xf32>
      %246 = vector.extract_strided_slice %205 {offsets = [0, 9], sizes = [32, 3], strides = [1, 1]} : vector<32x12xf32> to vector<32x3xf32>
      %247 = arith.addf %246, %146 : vector<32x3xf32>
      %cst_183 = arith.constant 0.000000e+00 : f32
      %cst_184 = arith.constant 1.000000e+00 : f32
      %248 = vector.broadcast %cst_183 : f32 to vector<32x3xf32>
      %249 = arith.maximumf %248, %247 : vector<32x3xf32>
      %250 = vector.broadcast %cst_184 : f32 to vector<32x3xf32>
      %251 = arith.minimumf %250, %249 : vector<32x3xf32>
      %252 = arith.subf %247, %251 : vector<32x3xf32>
      %cst_185 = arith.constant 0.00999999977 : f32
      %253 = vector.broadcast %cst_185 : f32 to vector<32x3xf32>
      %254 = arith.mulf %253, %252 : vector<32x3xf32>
      %255 = arith.addf %251, %254 : vector<32x3xf32>
      %cst_186 = arith.constant dense<0.000000e+00> : vector<64x3xf32>
      %256 = tpu.matmul %134, %245, %cst_186 {dimension_numbers = #tpu.dot_dimension_numbers<[1], [0], [0], [1], [0, 0, 1, 1], [], []>} : vector<64x32xf32>, vector<32x3xf32>, vector<64x3xf32> -> vector<64x3xf32>
      %cst_187 = arith.constant dense<0.000000e+00> : vector<64x3xf32>
      %257 = tpu.matmul %143, %255, %cst_187 {dimension_numbers = #tpu.dot_dimension_numbers<[1], [0], [0], [1], [0, 0, 1, 1], [], []>} : vector<64x32xf32>, vector<32x3xf32>, vector<64x3xf32> -> vector<64x3xf32>
      %258 = arith.addf %256, %257 : vector<64x3xf32>
      %c2_i32_188 = arith.constant 2 : i32
      %259 = arith.muli %c2_i32_188, %arg14 : i32
      %c0_i32_189 = arith.constant 0 : i32
      %260 = arith.addi %c0_i32_189, %259 : i32
      %c1_i32_190 = arith.constant 1 : i32
      %261 = arith.addi %260, %c1_i32_190 : i32
      %c0_191 = arith.constant 0 : index
      %262 = arith.index_cast %261 : i32 to index
      %c0_192 = arith.constant 0 : index
      %c0_193 = arith.constant 0 : index
      %263 = vector.load %arg10[%c0_191, %262, %c0_192, %c0_193] : memref<1x64x64x3xf32, #tpu.memory_space<vmem>>, vector<1x1x64x3xf32>
      %264 = vector.shape_cast %263 : vector<1x1x64x3xf32> to vector<64x3xf32>
      %265 = vector.shape_cast %258 : vector<64x3xf32> to vector<1x1x64x3xf32>
      tpu.vector_store %arg10[%c0_191, %262, %c0_192, %c0_193], %265 {strides = array<i32>} : memref<1x64x64x3xf32, #tpu.memory_space<vmem>>, vector<1x1x64x3xf32>,
    }
    %c32_i32_146 = arith.constant 32 : i32
    return
  }
  func.func @transform_0(%arg0: i32) -> (i32, i32, i32, i32) {
    %c0_i32 = arith.constant 0 : i32
    %c0_i32_0 = arith.constant 0 : i32
    %c0_i32_1 = arith.constant 0 : i32
    %c0_i32_2 = arith.constant 0 : i32
    return %arg0, %c0_i32, %c0_i32_0, %c0_i32_1 : i32, i32, i32, i32
  }
  func.func @transform_1(%arg0: i32) -> (i32, i32, i32) {
    %c0_i32 = arith.constant 0 : i32
    %c0_i32_0 = arith.constant 0 : i32
    %c0_i32_1 = arith.constant 0 : i32
    %c0_i32_2 = arith.constant 0 : i32
    return %c0_i32, %c0_i32_0, %c0_i32_1 : i32, i32, i32
  }
  func.func @transform_2(%arg0: i32) -> (i32, i32) {
    %c0_i32 = arith.constant 0 : i32
    %c0_i32_0 = arith.constant 0 : i32
    %c0_i32_1 = arith.constant 0 : i32
    return %c0_i32, %c0_i32_0 : i32, i32
  }
  func.func @transform_3(%arg0: i32) -> (i32, i32, i32) {
    %c0_i32 = arith.constant 0 : i32
    %c0_i32_0 = arith.constant 0 : i32
    %c0_i32_1 = arith.constant 0 : i32
    %c0_i32_2 = arith.constant 0 : i32
    return %c0_i32, %c0_i32_0, %c0_i32_1 : i32, i32, i32
  }
  func.func @transform_4(%arg0: i32) -> (i32, i32) {
    %c0_i32 = arith.constant 0 : i32
    %c0_i32_0 = arith.constant 0 : i32
    %c0_i32_1 = arith.constant 0 : i32
    return %c0_i32, %c0_i32_0 : i32, i32
  }
  func.func @transform_5(%arg0: i32) -> (i32, i32, i32) {
    %c0_i32 = arith.constant 0 : i32
    %c0_i32_0 = arith.constant 0 : i32
    %c0_i32_1 = arith.constant 0 : i32
    %c0_i32_2 = arith.constant 0 : i32
    return %c0_i32, %c0_i32_0, %c0_i32_1 : i32, i32, i32
  }
  func.func @transform_6(%arg0: i32) -> (i32, i32) {
    %c0_i32 = arith.constant 0 : i32
    %c0_i32_0 = arith.constant 0 : i32
    %c0_i32_1 = arith.constant 0 : i32
    return %c0_i32, %c0_i32_0 : i32, i32
  }
  func.func @transform_7(%arg0: i32) -> (i32, i32, i32) {
    %c0_i32 = arith.constant 0 : i32
    %c0_i32_0 = arith.constant 0 : i32
    %c0_i32_1 = arith.constant 0 : i32
    %c0_i32_2 = arith.constant 0 : i32
    return %c0_i32, %c0_i32_0, %c0_i32_1 : i32, i32, i32
  }
  func.func @transform_8(%arg0: i32) -> (i32, i32) {
    %c0_i32 = arith.constant 0 : i32
    %c0_i32_0 = arith.constant 0 : i32
    %c0_i32_1 = arith.constant 0 : i32
    return %c0_i32, %c0_i32_0 : i32, i32
  }
  func.func @transform_9(%arg0: i32) -> (i32, i32, i32, i32) {
    %c0_i32 = arith.constant 0 : i32
    %c0_i32_0 = arith.constant 0 : i32
    %c0_i32_1 = arith.constant 0 : i32
    %c0_i32_2 = arith.constant 0 : i32
    return %arg0, %c0_i32, %c0_i32_0, %c0_i32_1 : i32, i32, i32, i32
  }
}

</mosaic_0001>

<bundles_post_ra>
// kernel: decoder_forward.1
= control target key start
LH: loop header
LB: loop body
LE: loop exit
PB: predicated region body
PF: predicated region fallthrough
CT: control target
= control target key end

     0   :  { %14 = vsyncpa [#allocation6], 0  ;;  %s9338_s0 = inlined_call_operand.vmem [shape: f32[2,6,6,8], index: 0, kind: input, shape index: {}]   ;;  %s9339_s1 = inlined_call_operand.hbm [shape: f32[9,8,48], index: 1, kind: input, shape index: {}]   ;;  %s9340_s2 = inlined_call_operand.hbm [shape: f32[1,12], index: 2, kind: input, shape index: {}]   ;;  %s9341_s3 = inlined_call_operand.hbm [shape: f32[9,12,64], index: 3, kind: input, shape index: {}]   ;;  %s9342_s4 = inlined_call_operand.hbm [shape: f32[1,16], index: 4, kind: input, shape index: {}]   ;;  %s9343_s5 = inlined_call_operand.hbm [shape: f32[9,16,96], index: 5, kind: input, shape index: {}]   ;;  %s9344_s6 = inlined_call_operand.hbm [shape: f32[1,24], index: 6, kind: input, shape index: {}]   ;;  %s9345_s7 = inlined_call_operand.vmem [shape: f32[9,24,12], index: 7, kind: input, shape index: {}]   ;;  %s9346_s8 = inlined_call_operand.hbm [shape: f32[1,3], index: 8, kind: input, shape index: {}]   ;;  %s9347_s9 = inlined_call_operand.vmem [shape: f32[2,64,64,3], index: 9, kind: output, shape index: {}]  }
   0x1   :  { %15 = vsyncpa [#allocation8], 0 }
   0x2   :  { %16 = vsyncpa [#allocation11], 0 }
   0x3   :  { %17 = vsyncpa [#allocation14], 0  ;;  %s7634_s30 = smov 0  }
   0x4 LB: > { %s7544_s10 = smov [#allocation7]   ;;  %s7640_s12 = sadd.s32 4294967295, %s7526_s30   ;;  %s7526_s30 = sphi %s7634_s30, %s23_s30  }
   0x5   : > { %s274_s11 = sshll.u32 %s7544_s10, 4  ;;  %p6101_p0 = scmp.ge.s32.totalorder %s7526_s30, 1  ;;  %s275_s11 = int_to_ptr.vmem [resolvable:$true] %s274_s11 }
   0x6   : > { %p248_p1 = scmp.lt.s32.totalorder %s7526_s30, 3  ;;  %p7212_p2 = scmp.eq.s32.totalorder %s7640_s12, 0 }
   0x7   : > { %s7545_s14 = smov [#allocation10]   ;;  %s7546_s16 = smov [#allocation13]  }
   0x8   : > { %p7645_p3 = pnand %p6101_p0, %p248_p1  ;;  %s298_s15 = sshll.u32 %s7545_s14, 4  ;;  %s7651_s15 = int_to_ptr.vmem [resolvable:$true] %s298_s15 }
   0x9   : > { %s322_s17 = sshll.u32 %s7546_s16, 4  ;;  %s7547_s19 = smov [#allocation5]   ;;  %s7659_s17 = int_to_ptr.vmem [resolvable:$true] %s322_s17 }
   0xa   : > { %p7190_p4 = pneg %p7645_p3  ;;  %s260_s20 = sshll.u32 %s7547_s19, 4  ;;  %s7661_s20 = int_to_ptr.vmem [resolvable:$true] %s260_s20 }
   0xb   : > { %s7317_s22 = scalar_lea.vmem %s275_s11, 16  ;;  %s7324_s23 = scalar_lea.vmem %s275_s11, 32 }
   0xc   : > { %p7655_p5 = pnand %p7212_p2, %p7190_p4  ;;  %p7318_p7 = scmp.ne.s32.totalorder %s275_s11, %s7317_s22 }
   0xd   : > { %p7325_p10 = scmp.lt.s32.totalorder %s275_s11, %s275_s11  ;;  %p7326_p11 = scmp.lt.s32.totalorder %s7324_s23, %s7317_s22 }
   0xe   : > { %p7665_p6 = pneg %p7655_p5 }
   0xf   : > { %p7327_p12 = por %p7326_p11, %p7325_p10 }
  0x10   : > { %p7320_p8 = pnand %p7318_p7, %p7665_p6 }
  0x12   : > { %p7321_p9 = pneg %p7320_p8 }
  0x14   : > { %p7328_p13 = pnand %p7327_p12, %p7321_p9 }
  0x16   : > { %7331 = shalt.err (!%p7328_p13)
}
  0x17   : > { %7196 = dma.hbm_to_vmem [thread:$0]  (!%p7655_p5), %s9340_s2, 16, %s275_s11, [#allocation8]  }
  0x18   : > { %s7343_s26 = scalar_lea.vmem %s7651_s15, 16  ;;  %s7350_s27 = scalar_lea.vmem %s7651_s15, 32 }
  0x19   : > { %p7344_p0 = scmp.ne.s32.totalorder %s7651_s15, %s7343_s26  ;;  %p7351_p7 = scmp.lt.s32.totalorder %s7651_s15, %s7651_s15 }
  0x1a   : > { %p7352_p8 = scmp.lt.s32.totalorder %s7350_s27, %s7343_s26 }
  0x1b   : > { %p7346_p1 = pnand %p7344_p0, %p7665_p6 }
  0x1c   : > { %p7353_p9 = por %p7352_p8, %p7351_p7 }
  0x1d   : > { %p7347_p4 = pneg %p7346_p1 }
  0x1f   : > { %p7354_p10 = pnand %p7353_p9, %p7347_p4 }
  0x21   : > { %7357 = shalt.err (!%p7354_p10)
}
  0x22   : > { %7202 = dma.hbm_to_vmem [thread:$0]  (!%p7655_p5), %s9342_s4, 16, %s7651_s15, [#allocation11]  }
  0x23   : > { %s7369_s10 = scalar_lea.vmem %s7659_s17, 16  ;;  %s7376_s11 = scalar_lea.vmem %s7659_s17, 32 }
  0x24   : > { %p7370_p11 = scmp.ne.s32.totalorder %s7659_s17, %s7369_s10  ;;  %p7377_p0 = scmp.lt.s32.totalorder %s7659_s17, %s7659_s17 }
  0x25   : > { %p7378_p1 = scmp.lt.s32.totalorder %s7376_s11, %s7369_s10 }
  0x26   : > { %p7372_p12 = pnand %p7370_p11, %p7665_p6 }
  0x27   : > { %p7379_p4 = por %p7378_p1, %p7377_p0 }
  0x28   : > { %p7373_p13 = pneg %p7372_p12 }
  0x2a   : > { %p7380_p7 = pnand %p7379_p4, %p7373_p13 }
  0x2c   : > { %7383 = shalt.err (!%p7380_p7)
}
  0x2d   : > { %7208 = dma.hbm_to_vmem [thread:$0]  (!%p7655_p5), %s9344_s6, 16, %s7659_s17, [#allocation14]  }
  0x2e   : > { %s7395_s15 = scalar_lea.vmem %s7661_s20, 1152  ;;  %p7403_p11 = scmp.lt.s32.totalorder %s7661_s20, %s7661_s20 }
  0x2f   : > { %p7396_p8 = scmp.ne.s32.totalorder %s7661_s20, %s7395_s15  ;;  %p7404_p12 = scmp.lt.s32.totalorder %s7395_s15, %s7395_s15 }
  0x31   : > { %p7398_p9 = pnand %p7396_p8, %p7665_p6  ;;  %p7405_p13 = por %p7404_p12, %p7403_p11 }
  0x33   : > { %p7399_p10 = pneg %p7398_p9 }
  0x35   : > { %p7406_p0 = pnand %p7405_p13, %p7399_p10 }
  0x37   : > { %7409 = shalt.err (!%p7406_p0)
}
  0x38   : > { %s7548_s19 = smov 128   ;;  %s7549_s22 = smov 8  }
  0x39   : > { %7193 = dma.hbm_to_vmem [thread:$0]  (!%p7655_p5), %s9339_s1, 1152, %s7661_s20, [#allocation6], %s7548_s19, %s7548_s19, %s7549_s22  }
  0x3a   : > { %s7550_s24 = smov [#allocation9]   ;;  %s7551_s26 = smov [#allocation12]  }
  0x3b   : > { %s284_s25 = sshll.u32 %s7550_s24, 4  ;;  %s308_s27 = sshll.u32 %s7551_s26, 4  ;;  %s285_s25 = int_to_ptr.vmem [resolvable:$true] %s284_s25  ;;  %s309_s27 = int_to_ptr.vmem [resolvable:$true] %s308_s27 }
  0x3c   : > { %s7421_s28 = scalar_lea.vmem %s285_s25, 2304  ;;  %p7429_p8 = scmp.lt.s32.totalorder %s285_s25, %s285_s25 }
  0x3d   : > { %p7422_p1 = scmp.ne.s32.totalorder %s285_s25, %s7421_s28  ;;  %p7430_p9 = scmp.lt.s32.totalorder %s7421_s28, %s7421_s28 }
  0x3f   : > { %p7424_p4 = pnand %p7422_p1, %p7665_p6  ;;  %p7431_p10 = por %p7430_p9, %p7429_p8 }
  0x41   : > { %p7425_p7 = pneg %p7424_p4 }
  0x43   : > { %p7432_p11 = pnand %p7431_p10, %p7425_p7 }
  0x45   : > { %7435 = shalt.err (!%p7432_p11)
}
  0x46   : > { %7199 = dma.hbm_to_vmem [thread:$0]  (!%p7655_p5), %s9341_s3, 2304, %s285_s25, [#allocation8], %s7548_s19, %s7548_s19, %s7549_s22  }
  0x47   : > { %s7447_s10 = scalar_lea.vmem %s309_s27, 2304  ;;  %p7455_p1 = scmp.lt.s32.totalorder %s309_s27, %s309_s27 }
  0x48   : > { %p7448_p12 = scmp.ne.s32.totalorder %s309_s27, %s7447_s10  ;;  %p7456_p4 = scmp.lt.s32.totalorder %s7447_s10, %s7447_s10 }
  0x4a   : > { %p7450_p13 = pnand %p7448_p12, %p7665_p6  ;;  %p7457_p7 = por %p7456_p4, %p7455_p1 }
  0x4c   : > { %p7451_p0 = pneg %p7450_p13 }
  0x4e   : > { %p7458_p8 = pnand %p7457_p7, %p7451_p0 }
  0x50   : > { %7461 = shalt.err (!%p7458_p8)
}
  0x51   : > { %7205 = dma.hbm_to_vmem [thread:$0]  (!%p7655_p5), %s9343_s5, 2304, %s309_s27, [#allocation11], %s7548_s19, %s7548_s19, %s7549_s22  }
  0x52   : > { %s7552_s16 = smov [#allocation15]  }
  0x53   : > { %s336_s15 = sshll.u32 %s7552_s16, 4  ;;  %s337_s15 = int_to_ptr.vmem [resolvable:$true] %s336_s15 }
  0x54   : > { %s7473_s17 = scalar_lea.vmem %s337_s15, 16  ;;  %s7480_s23 = scalar_lea.vmem %s337_s15, 32 }
  0x55   : > { %p7474_p9 = scmp.ne.s32.totalorder %s337_s15, %s7473_s17  ;;  %p7481_p12 = scmp.lt.s32.totalorder %s337_s15, %s337_s15 }
  0x56   : > { %p7482_p13 = scmp.lt.s32.totalorder %s7480_s23, %s7473_s17 }
  0x57   : > { %p7476_p10 = pnand %p7474_p9, %p7665_p6 }
  0x58   : > { %p7483_p0 = por %p7482_p13, %p7481_p12 }
  0x59   : > { %p7477_p11 = pneg %p7476_p10 }
  0x5b   : > { %p7484_p1 = pnand %p7483_p0, %p7477_p11 }
  0x5d   : > { %7487 = shalt.err (!%p7484_p1)
}
  0x5e   : > { %7211 = dma.hbm_to_vmem [thread:$0]  (!%p7655_p5), %s9346_s8, 16, %s337_s15, [#allocation14]  }
  0x5f   : > { %357 = sbr.rel (%p7645_p3) target bundleno = 2527 (0x9df), region = 56 }
  0x64   : > { %7509 = dma.done.wait (%p7212_p2), [#allocation6], 1152  }
  0x65   : > { %7511 = vsyncadd (%p7212_p2), [#allocation6], 4294966144 }
  0x66   : > { %7513 = dma.done.wait (%p7212_p2), [#allocation8], 2320  }
  0x67   : > { %7515 = vsyncadd (%p7212_p2), [#allocation8], 4294964976 }
  0x68   : > { %7517 = dma.done.wait (%p7212_p2), [#allocation11], 2320  }
  0x69   : > { %7519 = vsyncadd (%p7212_p2), [#allocation11], 4294964976 }
  0x6a   : > { %7521 = dma.done.wait (%p7212_p2), [#allocation14], 32  }
  0x6b   : > { %7523 = vsyncadd (%p7212_p2), [#allocation14], 4294967264  ;;  %p417_p3 = scmp.lt.s32.totalorder %s7640_s12, 1  ;;  %vm427_vm0 = vcmask 97280   ;;  %vm429_vm1 = vcmask 91136   ;;  %v677_v0 = vlaneseq  ;;  %v7553_v1 = vmov 0.0  }
  0x6c   : > { %428 = vst.msk [vmem:[#allocation2] sm:$0xff] %vm427_vm0, %v7553_v1  ;;  %431 = vst.msk [vmem:[#allocation2 + $0x10] sm:$0xff] %vm427_vm0, %v7553_v1  ;;  %vm449_vm2 = vcmask 130048   ;;  %vm452_vm3 = vcmask 123904   ;;  %vm505_vm4 = vcmask 195584   ;;  %vm510_vm5 = vcmask 189440  }
  0x6d   : > { %433 = vst.msk [vmem:[#allocation2 + $0x20] sm:$0xff] %vm427_vm0, %v7553_v1  ;;  %435 = vst.msk [vmem:[#allocation2 + $0x30] sm:$0xff] %vm427_vm0, %v7553_v1  ;;  %s9415_s12 = smov (!%p417_p3, %s7640_s12), 1  ;;  %v7808_v2 = vshrl.u32 %v677_v0, 7  ;;  %v7810_v3 = vand.u32 127, %v677_v0  ;;  %v8283_v8 = vld [vmem:[#allocation5] sm:$0xff] }
  0x6e   : > { %437 = vst.msk [vmem:[#allocation2 + $0x40] sm:$0xff] %vm427_vm0, %v7553_v1  ;;  %439 = vst.msk [vmem:[#allocation2 + $0x50] sm:$0xff] %vm427_vm0, %v7553_v1  ;;  %s7161_s13 = smul.u32 48, %s9415_s12  ;;  %s6401_s18 = sshll.u32 %s9415_s12, 12  ;;  %v8281_v7 = vld [vmem:[#allocation7] ss:$0 sm:$0xff] }
  0x6f   : > { %441 = vst.msk [vmem:[#allocation2 + $0x60] sm:$0xff] %vm427_vm0, %v7553_v1  ;;  %443 = vst.msk [vmem:[#allocation2 + $0x70] sm:$0xff] %vm427_vm0, %v7553_v1  ;;  %v8263_v4 = vadd.s32 8, %v7808_v2  ;;  %v8266_v5 = vmul.u32 2, %v7810_v3  ;;  %s8271_s22 = scalar_lea.vmem %s9347_s9, %s6401_s18  ;;  %v8285_v9 = vld [vmem:[#allocation5 + $0x8] sm:$0xff]  ;;  %v8287_v10 = vld [vmem:[#allocation5 + $0x10] sm:$0xff] }
  0x70   : > { %445 = vst.msk [vmem:[#allocation2 + $0x80] sm:$0xff] %vm427_vm0, %v7553_v1  ;;  %447 = vst.msk [vmem:[#allocation2 + $0x90] sm:$0xff] %vm427_vm0, %v7553_v1  ;;  %s8276_s28 = scalar_lea.vmem %s9338_s0, %s7161_s13  ;;  %v8289_v11 = vld [vmem:[#allocation5 + $0x18] sm:$0xff]  ;;  %v8291_v12 = vld [vmem:[#allocation5 + $0x20] sm:$0xff]  ;;  %s8324_s12 = smov 0  }
  0x71   : > { %430 = vst.msk [vmem:[#allocation2 + $0x8] sm:$0x3] %vm429_vm1, %v7553_v1  ;;  %432 = vst.msk [vmem:[#allocation2 + $0x18] sm:$0x3] %vm429_vm1, %v7553_v1  ;;  %v8279_v6 = vadd.s32 1, %v8266_v5  ;;  %v8300_v14 = vld [vmem:[#allocation5 + $0x28] sm:$0xff] }
  0x72   : > { %434 = vst.msk [vmem:[#allocation2 + $0x28] sm:$0x3] %vm429_vm1, %v7553_v1  ;;  %436 = vst.msk [vmem:[#allocation2 + $0x38] sm:$0x3] %vm429_vm1, %v7553_v1  ;;  %v8302_v15 = vld [vmem:[#allocation5 + $0x30] sm:$0xff]  ;;  %v8304_v16 = vld [vmem:[#allocation5 + $0x38] sm:$0xff] }
  0x73   : > { %438 = vst.msk [vmem:[#allocation2 + $0x48] sm:$0x3] %vm429_vm1, %v7553_v1  ;;  %440 = vst.msk [vmem:[#allocation2 + $0x58] sm:$0x3] %vm429_vm1, %v7553_v1  ;;  %vm684_vm6 = vcmp.eq.s32.totalorder %v7808_v2, %v8279_v6  ;;  %vm685_vm7 = vcmp.eq.s32.totalorder %v8263_v4, %v8279_v6  ;;  %v8298_v13 = vadd.s32 1, %v8279_v6  ;;  %v8312_v19 = vld [vmem:[#allocation5 + $0x40] sm:$0xff] }
  0x74   : > { %442 = vst.msk [vmem:[#allocation2 + $0x68] sm:$0x3] %vm429_vm1, %v7553_v1  ;;  %444 = vst.msk [vmem:[#allocation2 + $0x78] sm:$0x3] %vm429_vm1, %v7553_v1  ;;  %v8307_v17 = vsel %vm684_vm6, 1.0, %v7553_v1  ;;  %v8310_v18 = vsel %vm685_vm7, 1.0, %v7553_v1 }
  0x75   : > { %446 = vst.msk [vmem:[#allocation2 + $0x88] sm:$0x3] %vm429_vm1, %v7553_v1  ;;  %448 = vst.msk [vmem:[#allocation2 + $0x98] sm:$0x3] %vm429_vm1, %v7553_v1  ;;  %vm691_vm8 = vcmp.eq.s32.totalorder %v7808_v2, %v8298_v13  ;;  %vm692_vm9 = vcmp.eq.s32.totalorder %v8263_v4, %v8298_v13 }
  0x76   : > { %450 = vst.msk [vmem:[#allocation3] sm:$0xff] %vm449_vm2, %v7553_v1  ;;  %451 = vst.msk [vmem:[#allocation3 + $0x8] sm:$0xff] %vm449_vm2, %v7553_v1  ;;  %v8319_v20 = vsel %vm691_vm8, 1.0, %v7553_v1  ;;  %v8322_v21 = vsel %vm692_vm9, 1.0, %v7553_v1 }
  0x77   : > { %454 = vst.msk [vmem:[#allocation3 + $0x18] sm:$0xff] %vm449_vm2, %v7553_v1  ;;  %455 = vst.msk [vmem:[#allocation3 + $0x20] sm:$0xff] %vm449_vm2, %v7553_v1 }
  0x78   : > { %457 = vst.msk [vmem:[#allocation3 + $0x30] sm:$0xff] %vm449_vm2, %v7553_v1  ;;  %458 = vst.msk [vmem:[#allocation3 + $0x38] sm:$0xff] %vm449_vm2, %v7553_v1 }
  0x79   : > { %460 = vst.msk [vmem:[#allocation3 + $0x48] sm:$0xff] %vm449_vm2, %v7553_v1  ;;  %461 = vst.msk [vmem:[#allocation3 + $0x50] sm:$0xff] %vm449_vm2, %v7553_v1 }
  0x7a   : > { %463 = vst.msk [vmem:[#allocation3 + $0x60] sm:$0xff] %vm449_vm2, %v7553_v1  ;;  %464 = vst.msk [vmem:[#allocation3 + $0x68] sm:$0xff] %vm449_vm2, %v7553_v1 }
  0x7b   : > { %466 = vst.msk [vmem:[#allocation3 + $0x78] sm:$0xff] %vm449_vm2, %v7553_v1  ;;  %467 = vst.msk [vmem:[#allocation3 + $0x80] sm:$0xff] %vm449_vm2, %v7553_v1 }
  0x7c   : > { %469 = vst.msk [vmem:[#allocation3 + $0x90] sm:$0xff] %vm449_vm2, %v7553_v1  ;;  %470 = vst.msk [vmem:[#allocation3 + $0x98] sm:$0xff] %vm449_vm2, %v7553_v1 }
  0x7d   : > { %472 = vst.msk [vmem:[#allocation3 + $0xa8] sm:$0xff] %vm449_vm2, %v7553_v1  ;;  %473 = vst.msk [vmem:[#allocation3 + $0xb0] sm:$0xff] %vm449_vm2, %v7553_v1 }
  0x7e   : > { %475 = vst.msk [vmem:[#allocation3 + $0xc0] sm:$0xff] %vm449_vm2, %v7553_v1  ;;  %476 = vst.msk [vmem:[#allocation3 + $0xc8] sm:$0xff] %vm449_vm2, %v7553_v1 }
  0x7f   : > { %478 = vst.msk [vmem:[#allocation3 + $0xd8] sm:$0xff] %vm449_vm2, %v7553_v1  ;;  %479 = vst.msk [vmem:[#allocation3 + $0xe0] sm:$0xff] %vm449_vm2, %v7553_v1 }
  0x80   : > { %481 = vst.msk [vmem:[#allocation3 + $0xf0] sm:$0xff] %vm449_vm2, %v7553_v1  ;;  %482 = vst.msk [vmem:[#allocation3 + $0xf8] sm:$0xff] %vm449_vm2, %v7553_v1 }
  0x81   : > { %484 = vst.msk [vmem:[#allocation3 + $0x108] sm:$0xff] %vm449_vm2, %v7553_v1  ;;  %485 = vst.msk [vmem:[#allocation3 + $0x110] sm:$0xff] %vm449_vm2, %v7553_v1 }
  0x82   : > { %487 = vst.msk [vmem:[#allocation3 + $0x120] sm:$0xff] %vm449_vm2, %v7553_v1  ;;  %488 = vst.msk [vmem:[#allocation3 + $0x128] sm:$0xff] %vm449_vm2, %v7553_v1 }
  0x83   : > { %490 = vst.msk [vmem:[#allocation3 + $0x138] sm:$0xff] %vm449_vm2, %v7553_v1  ;;  %491 = vst.msk [vmem:[#allocation3 + $0x140] sm:$0xff] %vm449_vm2, %v7553_v1 }
  0x84   : > { %493 = vst.msk [vmem:[#allocation3 + $0x150] sm:$0xff] %vm449_vm2, %v7553_v1  ;;  %494 = vst.msk [vmem:[#allocation3 + $0x158] sm:$0xff] %vm449_vm2, %v7553_v1 }
  0x85   : > { %496 = vst.msk [vmem:[#allocation3 + $0x168] sm:$0xff] %vm449_vm2, %v7553_v1  ;;  %497 = vst.msk [vmem:[#allocation3 + $0x170] sm:$0xff] %vm449_vm2, %v7553_v1 }
  0x86   : > { %499 = vst.msk [vmem:[#allocation3 + $0x180] sm:$0xff] %vm449_vm2, %v7553_v1  ;;  %500 = vst.msk [vmem:[#allocation3 + $0x188] sm:$0xff] %vm449_vm2, %v7553_v1 }
  0x87   : > { %502 = vst.msk [vmem:[#allocation3 + $0x198] sm:$0xff] %vm449_vm2, %v7553_v1  ;;  %503 = vst.msk [vmem:[#allocation3 + $0x1a0] sm:$0xff] %vm449_vm2, %v7553_v1 }
  0x88   : > { %453 = vst.msk [vmem:[#allocation3 + $0x10] sm:$0x3] %vm452_vm3, %v7553_v1  ;;  %456 = vst.msk [vmem:[#allocation3 + $0x28] sm:$0x3] %vm452_vm3, %v7553_v1 }
  0x89   : > { %459 = vst.msk [vmem:[#allocation3 + $0x40] sm:$0x3] %vm452_vm3, %v7553_v1  ;;  %462 = vst.msk [vmem:[#allocation3 + $0x58] sm:$0x3] %vm452_vm3, %v7553_v1 }
  0x8a   : > { %465 = vst.msk [vmem:[#allocation3 + $0x70] sm:$0x3] %vm452_vm3, %v7553_v1  ;;  %468 = vst.msk [vmem:[#allocation3 + $0x88] sm:$0x3] %vm452_vm3, %v7553_v1 }
  0x8b   : > { %471 = vst.msk [vmem:[#allocation3 + $0xa0] sm:$0x3] %vm452_vm3, %v7553_v1  ;;  %474 = vst.msk [vmem:[#allocation3 + $0xb8] sm:$0x3] %vm452_vm3, %v7553_v1 }
  0x8c   : > { %477 = vst.msk [vmem:[#allocation3 + $0xd0] sm:$0x3] %vm452_vm3, %v7553_v1  ;;  %480 = vst.msk [vmem:[#allocation3 + $0xe8] sm:$0x3] %vm452_vm3, %v7553_v1 }
  0x8d   : > { %483 = vst.msk [vmem:[#allocation3 + $0x100] sm:$0x3] %vm452_vm3, %v7553_v1  ;;  %486 = vst.msk [vmem:[#allocation3 + $0x118] sm:$0x3] %vm452_vm3, %v7553_v1 }
  0x8e   : > { %489 = vst.msk [vmem:[#allocation3 + $0x130] sm:$0x3] %vm452_vm3, %v7553_v1  ;;  %492 = vst.msk [vmem:[#allocation3 + $0x148] sm:$0x3] %vm452_vm3, %v7553_v1 }
  0x8f   : > { %495 = vst.msk [vmem:[#allocation3 + $0x160] sm:$0x3] %vm452_vm3, %v7553_v1  ;;  %498 = vst.msk [vmem:[#allocation3 + $0x178] sm:$0x3] %vm452_vm3, %v7553_v1 }
  0x90   : > { %501 = vst.msk [vmem:[#allocation3 + $0x190] sm:$0x3] %vm452_vm3, %v7553_v1  ;;  %504 = vst.msk [vmem:[#allocation3 + $0x1a8] sm:$0x3] %vm452_vm3, %v7553_v1 }
  0x91   : > { %506 = vst.msk [vmem:[#allocation4] sm:$0xff] %vm505_vm4, %v7553_v1  ;;  %507 = vst.msk [vmem:[#allocation4 + $0x8] sm:$0xff] %vm505_vm4, %v7553_v1 }
  0x92   : > { %508 = vst.msk [vmem:[#allocation4 + $0x10] sm:$0xff] %vm505_vm4, %v7553_v1  ;;  %509 = vst.msk [vmem:[#allocation4 + $0x18] sm:$0xff] %vm505_vm4, %v7553_v1 }
  0x93   : > { %512 = vst.msk [vmem:[#allocation4 + $0x28] sm:$0xff] %vm505_vm4, %v7553_v1  ;;  %513 = vst.msk [vmem:[#allocation4 + $0x30] sm:$0xff] %vm505_vm4, %v7553_v1 }
  0x94   : > { %514 = vst.msk [vmem:[#allocation4 + $0x38] sm:$0xff] %vm505_vm4, %v7553_v1  ;;  %515 = vst.msk [vmem:[#allocation4 + $0x40] sm:$0xff] %vm505_vm4, %v7553_v1 }
  0x95   : > { %517 = vst.msk [vmem:[#allocation4 + $0x50] sm:$0xff] %vm505_vm4, %v7553_v1  ;;  %518 = vst.msk [vmem:[#allocation4 + $0x58] sm:$0xff] %vm505_vm4, %v7553_v1 }
  0x96   : > { %519 = vst.msk [vmem:[#allocation4 + $0x60] sm:$0xff] %vm505_vm4, %v7553_v1  ;;  %520 = vst.msk [vmem:[#allocation4 + $0x68] sm:$0xff] %vm505_vm4, %v7553_v1 }
  0x97   : > { %522 = vst.msk [vmem:[#allocation4 + $0x78] sm:$0xff] %vm505_vm4, %v7553_v1  ;;  %523 = vst.msk [vmem:[#allocation4 + $0x80] sm:$0xff] %vm505_vm4, %v7553_v1 }
  0x98   : > { %524 = vst.msk [vmem:[#allocation4 + $0x88] sm:$0xff] %vm505_vm4, %v7553_v1  ;;  %525 = vst.msk [vmem:[#allocation4 + $0x90] sm:$0xff] %vm505_vm4, %v7553_v1 }
  0x99   : > { %527 = vst.msk [vmem:[#allocation4 + $0xa0] sm:$0xff] %vm505_vm4, %v7553_v1  ;;  %528 = vst.msk [vmem:[#allocation4 + $0xa8] sm:$0xff] %vm505_vm4, %v7553_v1 }
  0x9a   : > { %529 = vst.msk [vmem:[#allocation4 + $0xb0] sm:$0xff] %vm505_vm4, %v7553_v1  ;;  %530 = vst.msk [vmem:[#allocation4 + $0xb8] sm:$0xff] %vm505_vm4, %v7553_v1 }
  0x9b   : > { %532 = vst.msk [vmem:[#allocation4 + $0xc8] sm:$0xff] %vm505_vm4, %v7553_v1  ;;  %533 = vst.msk [vmem:[#allocation4 + $0xd0] sm:$0xff] %vm505_vm4, %v7553_v1 }
  0x9c   : > { %534 = vst.msk [vmem:[#allocation4 + $0xd8] sm:$0xff] %vm505_vm4, %v7553_v1  ;;  %535 = vst.msk [vmem:[#allocation4 + $0xe0] sm:$0xff] %vm505_vm4, %v7553_v1 }
  0x9d   : > { %537 = vst.msk [vmem:[#allocation4 + $0xf0] sm:$0xff] %vm505_vm4, %v7553_v1  ;;  %538 = vst.msk [vmem:[#allocation4 + $0xf8] sm:$0xff] %vm505_vm4, %v7553_v1 }
  0x9e   : > { %539 = vst.msk [vmem:[#allocation4 + $0x100] sm:$0xff] %vm505_vm4, %v7553_v1  ;;  %540 = vst.msk [vmem:[#allocation4 + $0x108] sm:$0xff] %vm505_vm4, %v7553_v1 }
  0x9f   : > { %542 = vst.msk [vmem:[#allocation4 + $0x118] sm:$0xff] %vm505_vm4, %v7553_v1  ;;  %543 = vst.msk [vmem:[#allocation4 + $0x120] sm:$0xff] %vm505_vm4, %v7553_v1 }
  0xa0   : > { %544 = vst.msk [vmem:[#allocation4 + $0x128] sm:$0xff] %vm505_vm4, %v7553_v1  ;;  %545 = vst.msk [vmem:[#allocation4 + $0x130] sm:$0xff] %vm505_vm4, %v7553_v1 }
  0xa1   : > { %547 = vst.msk [vmem:[#allocation4 + $0x140] sm:$0xff] %vm505_vm4, %v7553_v1  ;;  %548 = vst.msk [vmem:[#allocation4 + $0x148] sm:$0xff] %vm505_vm4, %v7553_v1 }
  0xa2   : > { %549 = vst.msk [vmem:[#allocation4 + $0x150] sm:$0xff] %vm505_vm4, %v7553_v1  ;;  %550 = vst.msk [vmem:[#allocation4 + $0x158] sm:$0xff] %vm505_vm4, %v7553_v1 }
  0xa3   : > { %552 = vst.msk [vmem:[#allocation4 + $0x168] sm:$0xff] %vm505_vm4, %v7553_v1  ;;  %553 = vst.msk [vmem:[#allocation4 + $0x170] sm:$0xff] %vm505_vm4, %v7553_v1 }
  0xa4   : > { %554 = vst.msk [vmem:[#allocation4 + $0x178] sm:$0xff] %vm505_vm4, %v7553_v1  ;;  %555 = vst.msk [vmem:[#allocation4 + $0x180] sm:$0xff] %vm505_vm4, %v7553_v1 }
  0xa5   : > { %557 = vst.msk [vmem:[#allocation4 + $0x190] sm:$0xff] %vm505_vm4, %v7553_v1  ;;  %558 = vst.msk [vmem:[#allocation4 + $0x198] sm:$0xff] %vm505_vm4, %v7553_v1 }
  0xa6   : > { %559 = vst.msk [vmem:[#allocation4 + $0x1a0] sm:$0xff] %vm505_vm4, %v7553_v1  ;;  %560 = vst.msk [vmem:[#allocation4 + $0x1a8] sm:$0xff] %vm505_vm4, %v7553_v1 }
  0xa7   : > { %562 = vst.msk [vmem:[#allocation4 + $0x1b8] sm:$0xff] %vm505_vm4, %v7553_v1  ;;  %563 = vst.msk [vmem:[#allocation4 + $0x1c0] sm:$0xff] %vm505_vm4, %v7553_v1 }
  0xa8   : > { %564 = vst.msk [vmem:[#allocation4 + $0x1c8] sm:$0xff] %vm505_vm4, %v7553_v1  ;;  %565 = vst.msk [vmem:[#allocation4 + $0x1d0] sm:$0xff] %vm505_vm4, %v7553_v1 }
  0xa9   : > { %567 = vst.msk [vmem:[#allocation4 + $0x1e0] sm:$0xff] %vm505_vm4, %v7553_v1  ;;  %568 = vst.msk [vmem:[#allocation4 + $0x1e8] sm:$0xff] %vm505_vm4, %v7553_v1 }
  0xaa   : > { %569 = vst.msk [vmem:[#allocation4 + $0x1f0] sm:$0xff] %vm505_vm4, %v7553_v1  ;;  %570 = vst.msk [vmem:[#allocation4 + $0x1f8] sm:$0xff] %vm505_vm4, %v7553_v1 }
  0xab   : > { %572 = vst.msk [vmem:[#allocation4 + $0x208] sm:$0xff] %vm505_vm4, %v7553_v1  ;;  %573 = vst.msk [vmem:[#allocation4 + $0x210] sm:$0xff] %vm505_vm4, %v7553_v1 }
  0xac   : > { %574 = vst.msk [vmem:[#allocation4 + $0x218] sm:$0xff] %vm505_vm4, %v7553_v1  ;;  %575 = vst.msk [vmem:[#allocation4 + $0x220] sm:$0xff] %vm505_vm4, %v7553_v1 }
  0xad   : > { %577 = vst.msk [vmem:[#allocation4 + $0x230] sm:$0xff] %vm505_vm4, %v7553_v1  ;;  %578 = vst.msk [vmem:[#allocation4 + $0x238] sm:$0xff] %vm505_vm4, %v7553_v1 }
  0xae   : > { %579 = vst.msk [vmem:[#allocation4 + $0x240] sm:$0xff] %vm505_vm4, %v7553_v1  ;;  %580 = vst.msk [vmem:[#allocation4 + $0x248] sm:$0xff] %vm505_vm4, %v7553_v1 }
  0xaf   : > { %582 = vst.msk [vmem:[#allocation4 + $0x258] sm:$0xff] %vm505_vm4, %v7553_v1  ;;  %583 = vst.msk [vmem:[#allocation4 + $0x260] sm:$0xff] %vm505_vm4, %v7553_v1 }
  0xb0   : > { %584 = vst.msk [vmem:[#allocation4 + $0x268] sm:$0xff] %vm505_vm4, %v7553_v1  ;;  %585 = vst.msk [vmem:[#allocation4 + $0x270] sm:$0xff] %vm505_vm4, %v7553_v1 }
  0xb1   : > { %587 = vst.msk [vmem:[#allocation4 + $0x280] sm:$0xff] %vm505_vm4, %v7553_v1  ;;  %588 = vst.msk [vmem:[#allocation4 + $0x288] sm:$0xff] %vm505_vm4, %v7553_v1 }
  0xb2   : > { %589 = vst.msk [vmem:[#allocation4 + $0x290] sm:$0xff] %vm505_vm4, %v7553_v1  ;;  %590 = vst.msk [vmem:[#allocation4 + $0x298] sm:$0xff] %vm505_vm4, %v7553_v1 }
  0xb3   : > { %592 = vst.msk [vmem:[#allocation4 + $0x2a8] sm:$0xff] %vm505_vm4, %v7553_v1  ;;  %593 = vst.msk [vmem:[#allocation4 + $0x2b0] sm:$0xff] %vm505_vm4, %v7553_v1 }
  0xb4   : > { %594 = vst.msk [vmem:[#allocation4 + $0x2b8] sm:$0xff] %vm505_vm4, %v7553_v1  ;;  %595 = vst.msk [vmem:[#allocation4 + $0x2c0] sm:$0xff] %vm505_vm4, %v7553_v1 }
  0xb5   : > { %597 = vst.msk [vmem:[#allocation4 + $0x2d0] sm:$0xff] %vm505_vm4, %v7553_v1  ;;  %598 = vst.msk [vmem:[#allocation4 + $0x2d8] sm:$0xff] %vm505_vm4, %v7553_v1 }
  0xb6   : > { %599 = vst.msk [vmem:[#allocation4 + $0x2e0] sm:$0xff] %vm505_vm4, %v7553_v1  ;;  %600 = vst.msk [vmem:[#allocation4 + $0x2e8] sm:$0xff] %vm505_vm4, %v7553_v1 }
  0xb7   : > { %602 = vst.msk [vmem:[#allocation4 + $0x2f8] sm:$0xff] %vm505_vm4, %v7553_v1  ;;  %603 = vst.msk [vmem:[#allocation4 + $0x300] sm:$0xff] %vm505_vm4, %v7553_v1 }
  0xb8   : > { %604 = vst.msk [vmem:[#allocation4 + $0x308] sm:$0xff] %vm505_vm4, %v7553_v1  ;;  %605 = vst.msk [vmem:[#allocation4 + $0x310] sm:$0xff] %vm505_vm4, %v7553_v1 }
  0xb9   : > { %607 = vst.msk [vmem:[#allocation4 + $0x320] sm:$0xff] %vm505_vm4, %v7553_v1  ;;  %608 = vst.msk [vmem:[#allocation4 + $0x328] sm:$0xff] %vm505_vm4, %v7553_v1 }
  0xba   : > { %609 = vst.msk [vmem:[#allocation4 + $0x330] sm:$0xff] %vm505_vm4, %v7553_v1  ;;  %610 = vst.msk [vmem:[#allocation4 + $0x338] sm:$0xff] %vm505_vm4, %v7553_v1 }
  0xbb   : > { %612 = vst.msk [vmem:[#allocation4 + $0x348] sm:$0xff] %vm505_vm4, %v7553_v1  ;;  %613 = vst.msk [vmem:[#allocation4 + $0x350] sm:$0xff] %vm505_vm4, %v7553_v1 }
  0xbc   : > { %614 = vst.msk [vmem:[#allocation4 + $0x358] sm:$0xff] %vm505_vm4, %v7553_v1  ;;  %615 = vst.msk [vmem:[#allocation4 + $0x360] sm:$0xff] %vm505_vm4, %v7553_v1 }
  0xbd   : > { %617 = vst.msk [vmem:[#allocation4 + $0x370] sm:$0xff] %vm505_vm4, %v7553_v1  ;;  %618 = vst.msk [vmem:[#allocation4 + $0x378] sm:$0xff] %vm505_vm4, %v7553_v1 }
  0xbe   : > { %619 = vst.msk [vmem:[#allocation4 + $0x380] sm:$0xff] %vm505_vm4, %v7553_v1  ;;  %620 = vst.msk [vmem:[#allocation4 + $0x388] sm:$0xff] %vm505_vm4, %v7553_v1 }
  0xbf   : > { %622 = vst.msk [vmem:[#allocation4 + $0x398] sm:$0xff] %vm505_vm4, %v7553_v1  ;;  %623 = vst.msk [vmem:[#allocation4 + $0x3a0] sm:$0xff] %vm505_vm4, %v7553_v1 }
  0xc0   : > { %624 = vst.msk [vmem:[#allocation4 + $0x3a8] sm:$0xff] %vm505_vm4, %v7553_v1  ;;  %625 = vst.msk [vmem:[#allocation4 + $0x3b0] sm:$0xff] %vm505_vm4, %v7553_v1 }
  0xc1   : > { %627 = vst.msk [vmem:[#allocation4 + $0x3c0] sm:$0xff] %vm505_vm4, %v7553_v1  ;;  %628 = vst.msk [vmem:[#allocation4 + $0x3c8] sm:$0xff] %vm505_vm4, %v7553_v1 }
  0xc2   : > { %629 = vst.msk [vmem:[#allocation4 + $0x3d0] sm:$0xff] %vm505_vm4, %v7553_v1  ;;  %630 = vst.msk [vmem:[#allocation4 + $0x3d8] sm:$0xff] %vm505_vm4, %v7553_v1 }
  0xc3   : > { %632 = vst.msk [vmem:[#allocation4 + $0x3e8] sm:$0xff] %vm505_vm4, %v7553_v1  ;;  %633 = vst.msk [vmem:[#allocation4 + $0x3f0] sm:$0xff] %vm505_vm4, %v7553_v1 }
  0xc4   : > { %634 = vst.msk [vmem:[#allocation4 + $0x3f8] sm:$0xff] %vm505_vm4, %v7553_v1  ;;  %635 = vst.msk [vmem:[#allocation4 + $0x400] sm:$0xff] %vm505_vm4, %v7553_v1 }
  0xc5   : > { %637 = vst.msk [vmem:[#allocation4 + $0x410] sm:$0xff] %vm505_vm4, %v7553_v1  ;;  %638 = vst.msk [vmem:[#allocation4 + $0x418] sm:$0xff] %vm505_vm4, %v7553_v1 }
  0xc6   : > { %639 = vst.msk [vmem:[#allocation4 + $0x420] sm:$0xff] %vm505_vm4, %v7553_v1  ;;  %640 = vst.msk [vmem:[#allocation4 + $0x428] sm:$0xff] %vm505_vm4, %v7553_v1 }
  0xc7   : > { %642 = vst.msk [vmem:[#allocation4 + $0x438] sm:$0xff] %vm505_vm4, %v7553_v1  ;;  %643 = vst.msk [vmem:[#allocation4 + $0x440] sm:$0xff] %vm505_vm4, %v7553_v1 }
  0xc8   : > { %644 = vst.msk [vmem:[#allocation4 + $0x448] sm:$0xff] %vm505_vm4, %v7553_v1  ;;  %645 = vst.msk [vmem:[#allocation4 + $0x450] sm:$0xff] %vm505_vm4, %v7553_v1 }
  0xc9   : > { %647 = vst.msk [vmem:[#allocation4 + $0x460] sm:$0xff] %vm505_vm4, %v7553_v1  ;;  %648 = vst.msk [vmem:[#allocation4 + $0x468] sm:$0xff] %vm505_vm4, %v7553_v1 }
  0xca   : > { %649 = vst.msk [vmem:[#allocation4 + $0x470] sm:$0xff] %vm505_vm4, %v7553_v1  ;;  %650 = vst.msk [vmem:[#allocation4 + $0x478] sm:$0xff] %vm505_vm4, %v7553_v1 }
  0xcb   : > { %652 = vst.msk [vmem:[#allocation4 + $0x488] sm:$0xff] %vm505_vm4, %v7553_v1  ;;  %653 = vst.msk [vmem:[#allocation4 + $0x490] sm:$0xff] %vm505_vm4, %v7553_v1 }
  0xcc   : > { %654 = vst.msk [vmem:[#allocation4 + $0x498] sm:$0xff] %vm505_vm4, %v7553_v1  ;;  %655 = vst.msk [vmem:[#allocation4 + $0x4a0] sm:$0xff] %vm505_vm4, %v7553_v1 }
  0xcd   : > { %657 = vst.msk [vmem:[#allocation4 + $0x4b0] sm:$0xff] %vm505_vm4, %v7553_v1  ;;  %658 = vst.msk [vmem:[#allocation4 + $0x4b8] sm:$0xff] %vm505_vm4, %v7553_v1 }
  0xce   : > { %659 = vst.msk [vmem:[#allocation4 + $0x4c0] sm:$0xff] %vm505_vm4, %v7553_v1  ;;  %660 = vst.msk [vmem:[#allocation4 + $0x4c8] sm:$0xff] %vm505_vm4, %v7553_v1 }
  0xcf   : > { %662 = vst.msk [vmem:[#allocation4 + $0x4d8] sm:$0xff] %vm505_vm4, %v7553_v1  ;;  %663 = vst.msk [vmem:[#allocation4 + $0x4e0] sm:$0xff] %vm505_vm4, %v7553_v1 }
  0xd0   : > { %664 = vst.msk [vmem:[#allocation4 + $0x4e8] sm:$0xff] %vm505_vm4, %v7553_v1  ;;  %665 = vst.msk [vmem:[#allocation4 + $0x4f0] sm:$0xff] %vm505_vm4, %v7553_v1 }
  0xd1   : > { %667 = vst.msk [vmem:[#allocation4 + $0x500] sm:$0xff] %vm505_vm4, %v7553_v1  ;;  %668 = vst.msk [vmem:[#allocation4 + $0x508] sm:$0xff] %vm505_vm4, %v7553_v1 }
  0xd2   : > { %669 = vst.msk [vmem:[#allocation4 + $0x510] sm:$0xff] %vm505_vm4, %v7553_v1  ;;  %670 = vst.msk [vmem:[#allocation4 + $0x518] sm:$0xff] %vm505_vm4, %v7553_v1 }
  0xd3   : > { %672 = vst.msk [vmem:[#allocation4 + $0x528] sm:$0xff] %vm505_vm4, %v7553_v1  ;;  %673 = vst.msk [vmem:[#allocation4 + $0x530] sm:$0xff] %vm505_vm4, %v7553_v1 }
  0xd4   : > { %674 = vst.msk [vmem:[#allocation4 + $0x538] sm:$0xff] %vm505_vm4, %v7553_v1  ;;  %675 = vst.msk [vmem:[#allocation4 + $0x540] sm:$0xff] %vm505_vm4, %v7553_v1 }
  0xd5   : > { %511 = vst.msk [vmem:[#allocation4 + $0x20] sm:$0x3] %vm510_vm5, %v7553_v1  ;;  %516 = vst.msk [vmem:[#allocation4 + $0x48] sm:$0x3] %vm510_vm5, %v7553_v1 }
  0xd6   : > { %521 = vst.msk [vmem:[#allocation4 + $0x70] sm:$0x3] %vm510_vm5, %v7553_v1  ;;  %526 = vst.msk [vmem:[#allocation4 + $0x98] sm:$0x3] %vm510_vm5, %v7553_v1 }
  0xd7   : > { %531 = vst.msk [vmem:[#allocation4 + $0xc0] sm:$0x3] %vm510_vm5, %v7553_v1  ;;  %536 = vst.msk [vmem:[#allocation4 + $0xe8] sm:$0x3] %vm510_vm5, %v7553_v1 }
  0xd8   : > { %541 = vst.msk [vmem:[#allocation4 + $0x110] sm:$0x3] %vm510_vm5, %v7553_v1  ;;  %546 = vst.msk [vmem:[#allocation4 + $0x138] sm:$0x3] %vm510_vm5, %v7553_v1 }
  0xd9   : > { %551 = vst.msk [vmem:[#allocation4 + $0x160] sm:$0x3] %vm510_vm5, %v7553_v1  ;;  %556 = vst.msk [vmem:[#allocation4 + $0x188] sm:$0x3] %vm510_vm5, %v7553_v1 }
  0xda   : > { %561 = vst.msk [vmem:[#allocation4 + $0x1b0] sm:$0x3] %vm510_vm5, %v7553_v1  ;;  %566 = vst.msk [vmem:[#allocation4 + $0x1d8] sm:$0x3] %vm510_vm5, %v7553_v1 }
  0xdb   : > { %571 = vst.msk [vmem:[#allocation4 + $0x200] sm:$0x3] %vm510_vm5, %v7553_v1  ;;  %576 = vst.msk [vmem:[#allocation4 + $0x228] sm:$0x3] %vm510_vm5, %v7553_v1 }
  0xdc   : > { %581 = vst.msk [vmem:[#allocation4 + $0x250] sm:$0x3] %vm510_vm5, %v7553_v1  ;;  %586 = vst.msk [vmem:[#allocation4 + $0x278] sm:$0x3] %vm510_vm5, %v7553_v1 }
  0xdd   : > { %591 = vst.msk [vmem:[#allocation4 + $0x2a0] sm:$0x3] %vm510_vm5, %v7553_v1  ;;  %596 = vst.msk [vmem:[#allocation4 + $0x2c8] sm:$0x3] %vm510_vm5, %v7553_v1 }
  0xde   : > { %601 = vst.msk [vmem:[#allocation4 + $0x2f0] sm:$0x3] %vm510_vm5, %v7553_v1  ;;  %606 = vst.msk [vmem:[#allocation4 + $0x318] sm:$0x3] %vm510_vm5, %v7553_v1 }
  0xdf   : > { %611 = vst.msk [vmem:[#allocation4 + $0x340] sm:$0x3] %vm510_vm5, %v7553_v1  ;;  %616 = vst.msk [vmem:[#allocation4 + $0x368] sm:$0x3] %vm510_vm5, %v7553_v1 }
  0xe0   : > { %621 = vst.msk [vmem:[#allocation4 + $0x390] sm:$0x3] %vm510_vm5, %v7553_v1  ;;  %626 = vst.msk [vmem:[#allocation4 + $0x3b8] sm:$0x3] %vm510_vm5, %v7553_v1 }
  0xe1   : > { %631 = vst.msk [vmem:[#allocation4 + $0x3e0] sm:$0x3] %vm510_vm5, %v7553_v1  ;;  %636 = vst.msk [vmem:[#allocation4 + $0x408] sm:$0x3] %vm510_vm5, %v7553_v1 }
  0xe2   : > { %641 = vst.msk [vmem:[#allocation4 + $0x430] sm:$0x3] %vm510_vm5, %v7553_v1  ;;  %646 = vst.msk [vmem:[#allocation4 + $0x458] sm:$0x3] %vm510_vm5, %v7553_v1 }
  0xe3   : > { %651 = vst.msk [vmem:[#allocation4 + $0x480] sm:$0x3] %vm510_vm5, %v7553_v1  ;;  %656 = vst.msk [vmem:[#allocation4 + $0x4a8] sm:$0x3] %vm510_vm5, %v7553_v1 }
  0xe4   : > { %661 = vst.msk [vmem:[#allocation4 + $0x4d0] sm:$0x3] %vm510_vm5, %v7553_v1  ;;  %666 = vst.msk [vmem:[#allocation4 + $0x4f8] sm:$0x3] %vm510_vm5, %v7553_v1 }
  0xe5   : > { %671 = vst.msk [vmem:[#allocation4 + $0x520] sm:$0x3] %vm510_vm5, %v7553_v1  ;;  %676 = vst.msk [vmem:[#allocation4 + $0x548] sm:$0x3] %vm510_vm5, %v7553_v1 }
  0xe6 LB: >> { %v7554_v22 = vmov 0.0   ;;  %vm7555_vm10 = vmmov 0   ;;  %s6126_s20 = sshll.u32 %s7530_s12, 3  ;;  %vm732_vm11 = vcmask 64512   ;;  %s7556_s10 = smov 12   ;;  %vm1413_vm12 = vcmask 31744   ;;  %s7530_s12 = sphi %s8324_s12, %s726_s12  }
  0xe7   : >> { %6654 = vmatprep.subr.mxu0 %v7554_v22  ;;  %6659 = vmatprep.subr.mxu1 %v7554_v22  ;;  %s728_s29 = scalar_lea.vmem %s8276_s28, %s6126_s20  ;;  %s7557_s11 = smov 36   ;;  %vm1420_vm13 = vcmask 1043456  }
  0xe8   : >> { %6655 = vmatpush3.msra.mxu0 %v8285_v9  ;;  %6656 = vmatprep.mubr.msk.f32.mxu0 %vm7555_vm10, %v7554_v22  ;;  %v729_v23 = vld [vmem:[%s728_s29] sm:$0x3f]  ;;  %v6131_v25 = vld [vmem:[%s728_s29 + $0x8] sm:$0x3f]  ;;  %v6136_v28 = vld [vmem:[%s728_s29 + $0x10] sm:$0x3f] }
  0xe9   : >> { %6660 = vmatpush3.msra.mxu1 %v8283_v8  ;;  %6661 = vmatprep.mubr.msk.f32.mxu1 %vm7555_vm10, %v7554_v22  ;;  %v731_v24 = vrot.slane %v729_v23, 1  ;;  %v877_v26 = vrot.slane %v729_v23, 2  ;;  %v1103_v27 = vrot.slane %v6131_v25, 2  ;;  %v1029_v29 = vrot.slane %v6131_v25, 1  ;;  %s7558_s14 = smov 24   ;;  %s7559_s16 = smov 92  }
  0xea   : >> { %6664 = vmatprep.subr.mxu0 %v7554_v22  ;;  %6669 = vmatprep.subr.mxu1 %v7554_v22  ;;  %v1255_v30 = vrot.slane %v6136_v28, 1  ;;  %v1329_v31 = vrot.slane %v6136_v28, 2  ;;  %s7560_s15 = smov 116   ;;  %s7561_s17 = smov 104  }
  0xeb   : >> { %6662 = vmatmul.mubr.msk.f32.vlgmr.msra.gmra.mxu1 %vm732_vm11, %v729_v23  ;;  %1405 = vrot.lane.b32.xlu0 %v8281_v7, %s7556_s10  ;;  %s6402_s23 = sshll.u32 %s7530_s12, 5  ;;  %s726_s12 = sadd.s32 1, %s7530_s12  }
  0xec   : >> { %6670 = vmatpush3.msra.mxu1 %v8289_v11  ;;  %6671 = vmatprep.mubr.msk.f32.mxu1 %vm7555_vm10, %v7554_v22  ;;  %s5940_s24 = scalar_lea.vmem [#allocation2], %s6402_s23  ;;  %p723_p2 = scmp.ge.s32.totalorder %s726_s12, 4  }
  0xed   : >> { %6657 = vmatmul.mubr.msk.f32.vlgmr.msra.gmra.mxu0 %vm732_vm11, %v731_v24  ;;  %6679 = vmatprep.subr.mxu1 %v7554_v22  ;;  %v8415_v8 = vld [vmem:[#allocation9 + $0x30] sm:$0xff] (%p723_p2)  ;;  %v8417_v9 = vld [vmem:[#allocation9 + $0x38] sm:$0xf] (%p723_p2)  ;;  %s8445_s25 = smov (%p723_p2), 0  }
  0xee   : >> { %6665 = vmatpush3.msra.mxu0 %v8287_v10  ;;  %6666 = vmatprep.mubr.msk.f32.mxu0 %vm7555_vm10, %v7554_v22 }
  0xef   : >> { %6672 = vmatmul.mubr.msk.f32.vlgmr.msra.gmra.mxu1 %vm732_vm11, %v6131_v25  ;;  %6674 = vmatprep.subr.mxu0 %v7554_v22 }
  0xf0   : >> { %6680 = vmatpush3.msra.mxu1 %v8300_v14  ;;  %6681 = vmatprep.mubr.msk.f32.mxu1 %vm7555_vm10, %v7554_v22  ;;  %v8427_v14 = vld [vmem:[#allocation9 + $0x48] sm:$0xf] (%p723_p2) }
  0xf1   : >> { %6667 = vmatmul.mubr.msk.f32.vlgmr.msra.gmra.mxu0 %vm732_vm11, %v877_v26  ;;  %6689 = vmatprep.subr.mxu1 %v7554_v22 }
  0xf2   : >> { %6675 = vmatpush3.msra.mxu0 %v8291_v12  ;;  %6676 = vmatprep.mubr.msk.f32.mxu0 %vm7555_vm10, %v7554_v22  ;;  %v8425_v12 = vld [vmem:[#allocation9 + $0x40] sm:$0xff] (%p723_p2) }
  0xf3   : >> { %6682 = vmatmul.mubr.msk.f32.vlgmr.msra.gmra.mxu1 %vm732_vm11, %v1103_v27  ;;  %6684 = vmatprep.subr.mxu0 %v7554_v22 }
  0xf4   : >> { %6690 = vmatpush3.msra.mxu1 %v8304_v16  ;;  %6691 = vmatprep.mubr.msk.f32.mxu1 %vm7555_vm10, %v7554_v22  ;;  %v8431_v16 = vld [vmem:[#allocation9 + $0x58] sm:$0xf] (%p723_p2) }
  0xf5   : >> { %6677 = vmatmul.mubr.msk.f32.vlgmr.msra.gmra.mxu0 %vm732_vm11, %v1029_v29  ;;  %1593 = vrot.lane.b32.xlu1 %v8281_v7, %s7557_s11 }
  0xf6   : >> { %6685 = vmatpush3.msra.mxu0 %v8302_v15  ;;  %6686 = vmatprep.mubr.msk.f32.mxu0 %vm7555_vm10, %v7554_v22  ;;  %v8429_v15 = vld [vmem:[#allocation9 + $0x50] sm:$0xff] (%p723_p2) }
  0xf7   : >> { %6692 = vmatmul.mubr.msk.f32.vlgmr.msra.gmra.mxu1 %vm732_vm11, %v1255_v30  ;;  %6694 = vmatprep.subr.mxu0 %v7554_v22 }
  0xf8   : >> { %1588 = vrot.lane.b32.xlu0 %v8281_v7, %s7558_s14  ;;  %6701 = vmatprep.mubr.msk.f32.mxu1 %vm1413_vm12, %v8319_v20 }
  0xf9   : >> { %6687 = vmatmul.mubr.msk.f32.vlgmr.msra.gmra.mxu0 %vm732_vm11, %v6136_v28 }
  0xfa   : >> { %6695 = vmatpush3.msra.mxu0 %v8312_v19  ;;  %6696 = vmatprep.mubr.msk.f32.mxu0 %vm7555_vm10, %v7554_v22  ;;  %v8433_v19 = vld [vmem:[#allocation9 + $0x60] sm:$0xff] (%p723_p2) }
  0xfd   : >> { %6697 = vmatmul.mubr.msk.f32.vlgmr.msra.gmra.mxu0 %vm732_vm11, %v1329_v31 }
  0xfe   : >> { %6706 = vmatprep.mubr.msk.f32.mxu0 %vm1413_vm12, %v8307_v17 }
 0x15d   : >> { %v1406_v50 = vpop.permute.xlu0 %1405 }
 0x167   : >> { %v1594_v57 = vpop.permute.xlu1 %1593 }
 0x16a   : >> { %v1589_v59 = vpop.permute.xlu0 %1588 }
 0x1ab   : >> { %v873_v32 = vpop.f32.mrf.mxu1 }
 0x1ad   : >> { %v801_v33 = vpop.f32.mrf.mxu0  ;;  %v6663_v34 = vpop.f32.mrf.mxu1 }
 0x1ae   : >> { %v874_v37 = vadd.f32 %v873_v32, %v801_v33 }
 0x1af   : >> { %v6658_v35 = vpop.f32.mrf.mxu0  ;;  %v1024_v36 = vpop.f32.mrf.mxu1 }
 0x1b1   : >> { %v946_v38 = vpop.f32.mrf.mxu0  ;;  %v6673_v39 = vpop.f32.mrf.mxu1 }
 0x1b2   : >> { %v950_v40 = vadd.f32 %v946_v38, %v874_v37 }
 0x1b3   : >> { %v6668_v41 = vpop.f32.mrf.mxu0  ;;  %v1172_v42 = vpop.f32.mrf.mxu1 }
 0x1b4   : >> { %v1028_v43 = vadd.f32 %v1024_v36, %v950_v40  ;;  %v8395_v40 = vadd.s32 (%p723_p2), 16, %v7808_v2  ;;  %v8397_v41 = vld [vmem:[#allocation10] ss:$0 sm:$0xff] (%p723_p2) }
 0x1b5   : >> { %v1098_v44 = vpop.f32.mrf.mxu0  ;;  %v6683_v45 = vpop.f32.mrf.mxu1 }
 0x1b6   : >> { %v1102_v46 = vadd.f32 %v1098_v44, %v1028_v43  ;;  %v8401_v43 = vld [vmem:[#allocation9 + $0x8] sm:$0xf] (%p723_p2)  ;;  %v8403_v44 = vld [vmem:[#allocation9 + $0x10] sm:$0xff] (%p723_p2)  ;;  %v8405_v45 = vld [vmem:[#allocation9 + $0x18] sm:$0xf] (%p723_p2)  ;;  %vm1764_vm14 = vcmp.eq.s32.totalorder (%p723_p2), %v8395_v40, %v8279_v6  ;;  %vm1767_vm15 = vcmp.eq.s32.totalorder (%p723_p2), %v8395_v40, %v8298_v13 }
 0x1b7   : >> { %v6678_v47 = vpop.f32.mrf.mxu0  ;;  %v1324_v48 = vpop.f32.mrf.mxu1  ;;  %v8420_v10 = vsel (%p723_p2), %vm1764_vm14, 1.0, %v7553_v1  ;;  %v8423_v11 = vsel (%p723_p2), %vm1767_vm15, 1.0, %v7553_v1 }
 0x1b8   : >> { %v1176_v49 = vadd.f32 %v1172_v42, %v1102_v46  ;;  %v8399_v42 = vld [vmem:[#allocation9] sm:$0xff] (%p723_p2)  ;;  %v8435_v47 = vld [vmem:[#allocation9 + $0x68] sm:$0xf] (%p723_p2) }
 0x1b9   : >> { %v1250_v51 = vpop.f32.mrf.mxu0  ;;  %v6693_v52 = vpop.f32.mrf.mxu1  ;;  %v8407_v46 = vld [vmem:[#allocation9 + $0x20] sm:$0xff] (%p723_p2) }
 0x1ba   : >> { %v1254_v53 = vadd.f32 %v1250_v51, %v1176_v49  ;;  %v8439_v49 = vld [vmem:[#allocation9 + $0x78] sm:$0xf] (%p723_p2)  ;;  %v8443_v51 = vld [vmem:[#allocation9 + $0x88] sm:$0xf] (%p723_p2) }
 0x1bb   : >> { %v6688_v54 = vpop.f32.mrf.mxu0 }
 0x1bc   : >> { %v1328_v55 = vadd.f32 %v1324_v48, %v1254_v53  ;;  %v8437_v48 = vld [vmem:[#allocation9 + $0x70] sm:$0xff] (%p723_p2) }
 0x1bd   : >> { %v1398_v56 = vpop.f32.mrf.mxu0 }
 0x1be   : >> { %v1402_v58 = vadd.f32 %v1398_v56, %v1328_v55 }
 0x1bf   : >> { %v6698_v60 = vpop.f32.mrf.mxu0 }
 0x1c0   : >> { %v1596_v61 = vadd.f32 %v1594_v57, %v1402_v58  ;;  %v1408_v62 = vadd.f32 %v1406_v50, %v1402_v58  ;;  %v1403_v63 = vadd.f32 %v8281_v7, %v1402_v58  ;;  %v1591_v3 = vadd.f32 %v1589_v59, %v1402_v58  ;;  %v8413_v7 = vld [vmem:[#allocation9 + $0x28] sm:$0xf] (%p723_p2)  ;;  %v8441_v50 = vld [vmem:[#allocation9 + $0x80] sm:$0xff] (%p723_p2) }
 0x1c2   : >> { %v1597_v0 = vmax.f32 %v1596_v61, 0.0  ;;  %v1409_v22 = vmax.f32 %v1408_v62, 0.0  ;;  %v1404_v23 = vmax.f32 %v1403_v63, 0.0  ;;  %v1592_v24 = vmax.f32 %v1591_v3, 0.0 }
 0x1c4   : >> { %1599 = vrot.lane.b32.xlu0 %v1597_v0, %s7559_s16  ;;  %1411 = vrot.lane.b32.xlu1 %v1409_v22, %s7560_s15 }
 0x1c5   : >> { %6704 = vmatprep.subr.msk.mxu0 %vm1420_vm13, %v1404_v23 }
 0x1c6   : >> { %6705 = vmatpush3.msk.msra.mxu0 %vm1420_vm13, %v1404_v23 }
 0x1c7   : >> { %6707 = vmatmul.mubr.msk.f32.vlgmr.msra.gmra.mxu0 %vm1413_vm12, %v8310_v18 }
 0x1c8   : >> { %1679 = vrot.lane.b32.xlu1 %v1592_v24, %s7561_s17  ;;  %6716 = vmatprep.mubr.msk.f32.mxu0 %vm1413_vm12, %v8307_v17 }
 0x236   : >> { %v1412_v25 = vpop.permute.xlu1 %1411  ;;  %v1600_v26 = vpop.permute.xlu0 %1599 }
 0x237   : >> { %6699 = vmatprep.subr.msk.mxu1 %vm1420_vm13, %v1412_v25 }
 0x238   : >> { %6700 = vmatpush3.msk.msra.mxu1 %vm1420_vm13, %v1412_v25 }
 0x239   : >> { %6709 = vmatprep.subr.msk.mxu1 %vm1420_vm13, %v1600_v26  ;;  %6702 = vmatmul.mubr.msk.f32.vlgmr.msra.gmra.mxu1 %vm1413_vm12, %v8322_v21 }
 0x23a   : >> { %6710 = vmatpush3.msk.msra.mxu1 %vm1420_vm13, %v1600_v26  ;;  %v1680_v27 = vpop.permute.xlu1 %1679  ;;  %6711 = vmatprep.mubr.msk.f32.mxu1 %vm1413_vm12, %v8319_v20 }
 0x23b   : >> { %6714 = vmatprep.subr.msk.mxu0 %vm1420_vm13, %v1680_v27 }
 0x23c   : >> { %6715 = vmatpush3.msk.msra.mxu0 %vm1420_vm13, %v1680_v27 }
 0x23d   : >> { %6712 = vmatmul.mubr.msk.f32.vlgmr.msra.gmra.mxu1 %vm1413_vm12, %v8322_v21  ;;  %6717 = vmatmul.mubr.msk.f32.vlgmr.msra.gmra.mxu0 %vm1413_vm12, %v8310_v18 }
 0x287   : >> { %v6708_v28 = vpop.f32.mrf.mxu0 }
 0x289   : >> { %v1573_v32 = vpop.f32.mrf.mxu0 }
 0x2f9   : >> { %v6703_v29 = vpop.f32.mrf.mxu1 }
 0x2fa   : >> { %v1579_v30 = vadd.f32 %v6708_v28, %v6703_v29 }
 0x2fb   : >> { %v1489_v31 = vpop.f32.mrf.mxu1 }
 0x2fc   : >> { %6149 = vst.msk [vmem:[%s5940_s24 + $0x18] sm:$0x3] %vm429_vm1, %v1579_v30  ;;  %v1574_v33 = vadd.f32 %v1573_v32, %v1489_v31 }
 0x2fd   : >> { %v6713_v34 = vpop.f32.mrf.mxu1  ;;  %v6718_v35 = vpop.f32.mrf.mxu0 }
 0x2fe   : >> { %6148 = vst.msk [vmem:[%s5940_s24 + $0x10] sm:$0xff] %vm427_vm0, %v1574_v33  ;;  %v1755_v36 = vadd.f32 %v6718_v35, %v6713_v34  ;;  %725 = sbr.rel (!%p723_p2) target bundleno = 230 (0xe6), region = 195 }
 0x2ff   : >> { %v1669_v37 = vpop.f32.mrf.mxu1  ;;  %v1749_v38 = vpop.f32.mrf.mxu0 }
 0x300   : >> { %6159 = vst.msk [vmem:[%s5940_s24 + $0x28] sm:$0x3] %vm429_vm1, %v1755_v36  ;;  %v1750_v39 = vadd.f32 %v1749_v38, %v1669_v37 }
 0x302   : >> { %6158 = vst.msk [vmem:[%s5940_s24 + $0x20] sm:$0xff] %vm427_vm0, %v1750_v39 }
 0x303 LB: >> { %v7562_v52 = vmov 0.0   ;;  %s6163_s13 = sshll.u32 %s7534_s25, 4  ;;  %vm7563_vm1 = vmmov 0   ;;  %vm1815_vm6 = vcmask 1046528   ;;  %vm1970_vm7 = vcmask 1045504   ;;  %s7564_s21 = smov 16   ;;  %s7534_s25 = sphi %s8445_s25, %s1808_s25  }
 0x304   : >> { %6719 = vmatprep.subr.mxu0 %v7562_v52  ;;  %6726 = vmatprep.subr.mxu1 %v7562_v52  ;;  %s8462_s18 = scalar_lea.vmem [#allocation2], %s6163_s13  ;;  %s7565_s19 = smov 48  }
 0x305   : >> { %6720 = vmatpush3.msk.msra.mxu0 %vm1420_vm13, %v8405_v45  ;;  %6727 = vmatpush3.msk.msra.mxu1 %vm1420_vm13, %v8401_v43  ;;  %s7566_s26 = smov 32   ;;  %s7567_s27 = smov 80  }
 0x306   : >> { %6721 = vmatprep.subr.mxu0 %v7562_v52  ;;  %6728 = vmatprep.subr.mxu1 %v7562_v52  ;;  %s7568_s28 = smov 112   ;;  %s7569_s12 = smov 96  }
 0x307   : >> { %6722 = vmatpush3.msra.mxu0 %v8403_v44  ;;  %6723 = vmatprep.mubr.msk.f32.mxu0 %vm7563_vm1, %v7562_v52  ;;  %s6195_s20 = smul.u32 48, %s7534_s25  ;;  %s1808_s25 = sadd.s32 1, %s7534_s25  }
 0x308   : >> { %6729 = vmatpush3.msra.mxu1 %v8399_v42  ;;  %6730 = vmatprep.mubr.msk.f32.mxu1 %vm7563_vm1, %v7562_v52  ;;  %p1805_p5 = scmp.ge.s32.totalorder %s1808_s25, 8  }
 0x309   : >> { %v1811_v53 = vld [vmem:[%s8462_s18] sm:$0xff]  ;;  %v1812_v54 = vld [vmem:[%s8462_s18 + $0x8] sm:$0x3]  ;;  %6733 = vmatprep.subr.mxu0 %v7562_v52  ;;  %6740 = vmatprep.subr.mxu1 %v7562_v52  ;;  %v6171_v60 = vld [vmem:[%s8462_s18 + $0x10] sm:$0xff]  ;;  %s5956_s29 = scalar_lea.vmem [#allocation3], %s6195_s20  ;;  %s8667_s10 = smov (%p1805_p5), 0  }
 0x30a   : >> { %v1816_v55 = vrot.slane %v1811_v53, 1  ;;  %v1817_v56 = vrot.slane %v1812_v54, 1  ;;  %v1971_v57 = vrot.slane %v1811_v53, 2  ;;  %v1972_v58 = vrot.slane %v1812_v54, 2  ;;  %6731 = vmatmul.mubr.msk.f32.vlgmr.msra.gmra.mxu1 %vm427_vm0, %v1811_v53  ;;  %v6172_v61 = vld [vmem:[%s8462_s18 + $0x18] sm:$0x3]  ;;  %2534 = vrot.lane.b32.xlu0 %v8397_v41, %s7564_s21 }
 0x30b   : >> { %6744 = vmatprep.mubr.msk.f32.mxu1 %vm7563_vm1, %v7562_v52  ;;  %6741 = vmatpush3.msk.msra.mxu1 %vm1420_vm13, %v8417_v9  ;;  %v2133_v63 = vrot.slane %v6171_v60, 1  ;;  %v2212_v0 = vrot.slane %v6171_v60, 2  ;;  %v2134_v3 = vrot.slane %v6172_v61, 1  ;;  %v2213_v22 = vrot.slane %v6172_v61, 2  ;;  %v6180_v23 = vld [vmem:[%s8462_s18 + $0x20] sm:$0xff]  ;;  %v8631_v42 = vld [vmem:[#allocation12 + $0x30] sm:$0xff] (%p1805_p5) }
 0x30c   : >> { %v1818_v59 = vsel %vm1815_vm6, %v1816_v55, %v1817_v56  ;;  %6742 = vmatprep.subr.mxu1 %v7562_v52  ;;  %v1973_v62 = vsel %vm1970_vm7, %v1971_v57, %v1972_v58  ;;  %v6181_v24 = vld [vmem:[%s8462_s18 + $0x28] sm:$0x3]  ;;  %v2374_v27 = vrot.slane %v6180_v23, 1  ;;  %v2453_v30 = vrot.slane %v6180_v23, 2  ;;  %2734 = vrot.lane.b32.xlu1 %v8397_v41, %s7565_s19  ;;  %v8633_v43 = vld [vmem:[#allocation12 + $0x38] sm:$0xff] (%p1805_p5)  ;;  %v8651_v9 = vld [vmem:[#allocation12 + $0x50] sm:$0xff] (%p1805_p5) }
 0x30d   : >> { %6724 = vmatmul.mubr.msk.f32.vlgmr.msra.gmra.mxu0 %vm427_vm0, %v1818_v59  ;;  %6743 = vmatpush3.msra.mxu1 %v8415_v8  ;;  %v2135_v25 = vsel %vm1815_vm6, %v2133_v63, %v2134_v3  ;;  %v2214_v26 = vsel %vm1970_vm7, %v2212_v0, %v2213_v22  ;;  %v2375_v28 = vrot.slane %v6181_v24, 1  ;;  %v2454_v31 = vrot.slane %v6181_v24, 2  ;;  %v8647_v8 = vld [vmem:[#allocation12 + $0x40] sm:$0xff] (%p1805_p5) }
 0x30e   : >> { %6734 = vmatpush3.msk.msra.mxu0 %vm1420_vm13, %v8413_v7  ;;  %6737 = vmatprep.mubr.msk.f32.mxu0 %vm7563_vm1, %v7562_v52 }
 0x30f   : >> { %6735 = vmatprep.subr.mxu0 %v7562_v52  ;;  %6745 = vmatmul.mubr.msk.f32.vlgmr.msra.gmra.mxu1 %vm427_vm0, %v6171_v60  ;;  %v2376_v29 = vsel %vm1815_vm6, %v2374_v27, %v2375_v28  ;;  %v2455_v32 = vsel %vm1970_vm7, %v2453_v30, %v2454_v31 }
 0x310   : >> { %6736 = vmatpush3.msra.mxu0 %v8407_v46  ;;  %6754 = vmatprep.subr.mxu1 %v7562_v52 }
 0x311   : >> { %6738 = vmatmul.mubr.msk.f32.vlgmr.msra.gmra.mxu0 %vm427_vm0, %v1973_v62  ;;  %6747 = vmatprep.subr.mxu0 %v7562_v52 }
 0x312   : >> { %6748 = vmatpush3.msk.msra.mxu0 %vm1420_vm13, %v8427_v14  ;;  %6755 = vmatpush3.msk.msra.mxu1 %vm1420_vm13, %v8431_v16  ;;  %v8655_v14 = vld [vmem:[#allocation12 + $0x60] sm:$0xff] (%p1805_p5)  ;;  %v8659_v16 = vld [vmem:[#allocation12 + $0x70] sm:$0xff] (%p1805_p5) }
 0x313   : >> { %6749 = vmatprep.subr.mxu0 %v7562_v52  ;;  %6756 = vmatprep.subr.mxu1 %v7562_v52 }
 0x314   : >> { %6750 = vmatpush3.msra.mxu0 %v8425_v12  ;;  %6751 = vmatprep.mubr.msk.f32.mxu0 %vm7563_vm1, %v7562_v52  ;;  %v8653_v12 = vld [vmem:[#allocation12 + $0x58] sm:$0xff] (%p1805_p5) }
 0x315   : >> { %6757 = vmatpush3.msra.mxu1 %v8429_v15  ;;  %6758 = vmatprep.mubr.msk.f32.mxu1 %vm7563_vm1, %v7562_v52  ;;  %v8657_v15 = vld [vmem:[#allocation12 + $0x68] sm:$0xff] (%p1805_p5) }
 0x316   : >> { %6752 = vmatmul.mubr.msk.f32.vlgmr.msra.gmra.mxu0 %vm427_vm0, %v2135_v25  ;;  %6759 = vmatmul.mubr.msk.f32.vlgmr.msra.gmra.mxu1 %vm427_vm0, %v2214_v26 }
 0x317   : >> { %6761 = vmatprep.subr.mxu0 %v7562_v52  ;;  %6768 = vmatprep.subr.mxu1 %v7562_v52 }
 0x318   : >> { %6762 = vmatpush3.msk.msra.mxu0 %vm1420_vm13, %v8435_v47  ;;  %6769 = vmatpush3.msk.msra.mxu1 %vm1420_vm13, %v8439_v49  ;;  %v8663_v47 = vld [vmem:[#allocation12 + $0x80] sm:$0xff] (%p1805_p5) }
 0x319   : >> { %6763 = vmatprep.subr.mxu0 %v7562_v52  ;;  %6770 = vmatprep.subr.mxu1 %v7562_v52 }
 0x31a   : >> { %6764 = vmatpush3.msra.mxu0 %v8433_v19  ;;  %6765 = vmatprep.mubr.msk.f32.mxu0 %vm7563_vm1, %v7562_v52  ;;  %v8661_v19 = vld [vmem:[#allocation12 + $0x78] sm:$0xff] (%p1805_p5) }
 0x31b   : >> { %6771 = vmatpush3.msra.mxu1 %v8437_v48  ;;  %6772 = vmatprep.mubr.msk.f32.mxu1 %vm7563_vm1, %v7562_v52  ;;  %v8665_v48 = vld [vmem:[#allocation12 + $0x88] sm:$0xff] (%p1805_p5) }
 0x31c   : >> { %6766 = vmatmul.mubr.msk.f32.vlgmr.msra.gmra.mxu0 %vm427_vm0, %v6180_v23  ;;  %6773 = vmatmul.mubr.msk.f32.vlgmr.msra.gmra.mxu1 %vm427_vm0, %v2376_v29 }
 0x31d   : >> { %6775 = vmatprep.subr.mxu0 %v7562_v52  ;;  %6779 = vmatprep.mubr.msk.f32.mxu0 %vm7563_vm1, %v7562_v52 }
 0x31e   : >> { %6776 = vmatpush3.msk.msra.mxu0 %vm1420_vm13, %v8443_v51  ;;  %6782 = vmatprep.subr.mxu1 %v7562_v52 }
 0x31f   : >> { %6777 = vmatprep.subr.mxu0 %v7562_v52  ;;  %2729 = vrot.lane.b32.xlu0 %v8397_v41, %s7566_s26 }
 0x320   : >> { %6778 = vmatpush3.msra.mxu0 %v8441_v50  ;;  %6784 = vmatprep.mubr.msk.f32.mxu1 %vm7563_vm1, %v7562_v52 }
 0x321   : >> { %6780 = vmatmul.mubr.msk.f32.vlgmr.msra.gmra.mxu0 %vm427_vm0, %v2455_v32  ;;  %6793 = vmatprep.subr.mxu0 %v7562_v52 }
 0x322   : >> { %6795 = vmatprep.mubr.msk.f32.mxu0 %vm7563_vm1, %v7562_v52 }
 0x37c   : >> { %v2535_v22 = vpop.permute.xlu0 %2534 }
 0x37e   : >> { %v2735_v27 = vpop.permute.xlu1 %2734 }
 0x391   : >> { %v2730_v29 = vpop.permute.xlu0 %2729 }
 0x3ca   : >> { %v1966_v33 = vpop.f32.mrf.mxu1 }
 0x3cc   : >> { %v6732_v35 = vpop.f32.mrf.mxu1 }
 0x3cd   : >> { %v1891_v34 = vpop.f32.mrf.mxu0 }
 0x3ce   : >> { %v1967_v37 = vadd.f32 %v1966_v33, %v1891_v34 }
 0x3cf   : >> { %v6725_v36 = vpop.f32.mrf.mxu0  ;;  %v2127_v39 = vpop.f32.mrf.mxu1 }
 0x3d1   : >> { %v2045_v38 = vpop.f32.mrf.mxu0  ;;  %v6746_v55 = vpop.f32.mrf.mxu1 }
 0x3d2   : >> { %v2049_v53 = vadd.f32 %v2045_v38, %v1967_v37 }
 0x3d3   : >> { %v6739_v54 = vpop.f32.mrf.mxu0 }
 0x3d4   : >> { %v2131_v56 = vadd.f32 %v2127_v39, %v2049_v53 }
 0x3d6   : >> { %v2207_v57 = vpop.f32.mrf.mxu0  ;;  %v2286_v58 = vpop.f32.mrf.mxu1 }
 0x3d7   : >> { %v2211_v59 = vadd.f32 %v2207_v57, %v2131_v56 }
 0x3d8   : >> { %v6753_v60 = vpop.f32.mrf.mxu0  ;;  %v6760_v61 = vpop.f32.mrf.mxu1 }
 0x3d9   : >> { %v2290_v62 = vadd.f32 %v2286_v58, %v2211_v59 }
 0x3dc   : >> { %v2368_v63 = vpop.f32.mrf.mxu0  ;;  %v2448_v0 = vpop.f32.mrf.mxu1 }
 0x3dd   : >> { %v2372_v3 = vadd.f32 %v2368_v63, %v2290_v62 }
 0x3de   : >> { %v6767_v23 = vpop.f32.mrf.mxu0  ;;  %v6774_v24 = vpop.f32.mrf.mxu1 }
 0x3df   : >> { %v2452_v25 = vadd.f32 %v2448_v0, %v2372_v3 }
 0x3e1   : >> { %v2527_v26 = vpop.f32.mrf.mxu0 }
 0x3e2   : >> { %v2531_v28 = vadd.f32 %v2527_v26, %v2452_v25 }
 0x3e3   : >> { %v6781_v30 = vpop.f32.mrf.mxu0 }
 0x3e4   : >> { %v2737_v31 = vadd.f32 %v2735_v27, %v2531_v28  ;;  %v2537_v32 = vadd.f32 %v2535_v22, %v2531_v28  ;;  %v2532_v33 = vadd.f32 %v8397_v41, %v2531_v28  ;;  %v2732_v35 = vadd.f32 %v2730_v29, %v2531_v28  ;;  %v8629_v41 = vld [vmem:[#allocation12 + $0x28] sm:$0xff] (%p1805_p5) }
 0x3e6   : >> { %v2738_v34 = vmax.f32 %v2737_v31, 0.0  ;;  %v2538_v36 = vmax.f32 %v2537_v32, 0.0  ;;  %v2533_v37 = vmax.f32 %v2532_v33, 0.0  ;;  %v2733_v38 = vmax.f32 %v2732_v35, 0.0 }
 0x3e8   : >> { %2740 = vrot.lane.b32.xlu0 %v2738_v34, %s7567_s27  ;;  %2540 = vrot.lane.b32.xlu1 %v2538_v36, %s7568_s28 }
 0x3e9   : >> { %6794 = vmatpush3.msra.mxu0 %v2533_v37 }
 0x3ea   : >> { %6796 = vmatmul.mubr.msk.f32.vlgmr.msra.gmra.mxu0 %vm732_vm11, %v8307_v17  ;;  %6815 = vmatprep.subr.mxu0 %v7562_v52 }
 0x3eb   : >> { %6798 = vmatprep.mubr.msk.f32.mxu0 %vm7563_vm1, %v7562_v52 }
 0x3ec   : >> { %2824 = vrot.lane.b32.xlu1 %v2733_v38, %s7569_s12 }
 0x3ee   : >> { %6799 = vmatmul.mubr.msk.f32.gmra.mxu0 %vm732_vm11, %v8310_v18 }
 0x3ef   : >> { %6801 = vmatprep.mubr.msk.f32.mxu0 %vm7563_vm1, %v7562_v52 }
 0x3f2   : >> { %6802 = vmatmul.mubr.msk.f32.gmra.mxu0 %vm732_vm11, %v8420_v10 }
 0x3f3   : >> { %6817 = vmatprep.mubr.msk.f32.mxu0 %vm7563_vm1, %v7562_v52 }
 0x45a   : >> { %v2541_v39 = vpop.permute.xlu1 %2540  ;;  %v2741_v53 = vpop.permute.xlu0 %2740 }
 0x45b   : >> { %6783 = vmatpush3.msra.mxu1 %v2541_v39 }
 0x45c   : >> { %6804 = vmatprep.subr.mxu1 %v7562_v52  ;;  %6785 = vmatmul.mubr.msk.f32.vlgmr.msra.gmra.mxu1 %vm732_vm11, %v8319_v20 }
 0x45d   : >> { %6805 = vmatpush3.msra.mxu1 %v2741_v53  ;;  %6787 = vmatprep.mubr.msk.f32.mxu1 %vm7563_vm1, %v7562_v52  ;;  %v8604_v53 = vadd.s32 (%p1805_p5), 24, %v7808_v2 }
 0x45e   : >> { %v2825_v54 = vpop.permute.xlu1 %2824 }
 0x45f   : >> { %6816 = vmatpush3.msra.mxu0 %v2825_v54  ;;  %v8607_v54 = vadd.s32 (%p1805_p5), 32, %v7808_v2  ;;  %vm2915_vm0 = vcmp.eq.s32.totalorder (%p1805_p5), %v8604_v53, %v8279_v6  ;;  %vm2921_vm8 = vcmp.eq.s32.totalorder (%p1805_p5), %v8604_v53, %v8298_v13 }
 0x460   : >> { %6788 = vmatmul.mubr.msk.f32.gmra.mxu1 %vm732_vm11, %v8322_v21  ;;  %6818 = vmatmul.mubr.msk.f32.vlgmr.msra.gmra.mxu0 %vm732_vm11, %v8307_v17  ;;  %v8636_v44 = vsel (%p1805_p5), %vm2915_vm0, 1.0, %v7553_v1  ;;  %v8642_v46 = vsel (%p1805_p5), %vm2921_vm8, 1.0, %v7553_v1 }
 0x461   : >> { %6790 = vmatprep.mubr.msk.f32.mxu1 %vm7563_vm1, %v7562_v52  ;;  %6820 = vmatprep.mubr.msk.f32.mxu0 %vm7563_vm1, %v7562_v52  ;;  %vm2922_vm9 = vcmp.eq.s32.totalorder (%p1805_p5), %v8607_v54, %v8298_v13  ;;  %v8649_v13 = vld [vmem:[#allocation12 + $0x48] sm:$0xff] (%p1805_p5) }
 0x462   : > { %v8645_v7 = vsel (%p1805_p5), %vm2922_vm9, 1.0, %v7553_v1 }
 0x464   : >> { %6791 = vmatmul.mubr.msk.f32.gmra.mxu1 %vm732_vm11, %v8423_v11  ;;  %6821 = vmatmul.mubr.msk.f32.gmra.mxu0 %vm732_vm11, %v8310_v18 }
 0x465   : >> { %6806 = vmatprep.mubr.msk.f32.mxu1 %vm7563_vm1, %v7562_v52  ;;  %6823 = vmatprep.mubr.msk.f32.mxu0 %vm7563_vm1, %v7562_v52 }
 0x468   : >> { %6807 = vmatmul.mubr.msk.f32.vlgmr.msra.gmra.mxu1 %vm732_vm11, %v8319_v20  ;;  %6824 = vmatmul.mubr.msk.f32.gmra.mxu0 %vm732_vm11, %v8420_v10 }
 0x469   : >> { %6809 = vmatprep.mubr.msk.f32.mxu1 %vm7563_vm1, %v7562_v52 }
 0x46c   : >> { %6810 = vmatmul.mubr.msk.f32.gmra.mxu1 %vm732_vm11, %v8322_v21 }
 0x46d   : >> { %6812 = vmatprep.mubr.msk.f32.mxu1 %vm7563_vm1, %v7562_v52 }
 0x470   : >> { %6813 = vmatmul.mubr.msk.f32.gmra.mxu1 %vm732_vm11, %v8423_v11 }
 0x4aa   : >> { %v2708_v55 = vpop.f32.mrf.mxu0 }
 0x4ac   : >> { %v6797_v56 = vpop.f32.mrf.mxu0 }
 0x4ad   : > { %v8611_v56 = vld [vmem:[#allocation12] sm:$0xff] (%p1805_p5) }
 0x4ae   : >> { %v2713_v57 = vpop.f32.mrf.mxu0 }
 0x4b0   : >> { %v6800_v58 = vpop.f32.mrf.mxu0 }
 0x4b1   : > { %v8615_v58 = vld [vmem:[#allocation12 + $0x10] sm:$0xff] (%p1805_p5) }
 0x4b2   : >> { %v2718_v59 = vpop.f32.mrf.mxu0 }
 0x4b4   : >> { %v6803_v60 = vpop.f32.mrf.mxu0 }
 0x4b5   : > { %v8619_v60 = vld [vmem:[#allocation12 + $0x20] sm:$0xff] (%p1805_p5) }
 0x51c   : >> { %v2619_v61 = vpop.f32.mrf.mxu1 }
 0x51d   : >> { %v2709_v62 = vadd.f32 %v2708_v55, %v2619_v61  ;;  %v8609_v55 = vld [vmem:[#allocation13] ss:$0 sm:$0xff] (%p1805_p5) }
 0x51e   : >> { %v6786_v63 = vpop.f32.mrf.mxu1 }
 0x51f   : >> { %6196 = vst.msk [vmem:[%s5956_s29 + $0x18] sm:$0xff] %vm449_vm2, %v2709_v62 }
 0x520   : >> { %v2624_v0 = vpop.f32.mrf.mxu1  ;;  %v2893_v3 = vpop.f32.mrf.mxu0 }
 0x521   : >> { %v2714_v22 = vadd.f32 %v2713_v57, %v2624_v0  ;;  %v8613_v57 = vld [vmem:[#allocation12 + $0x8] sm:$0xff] (%p1805_p5) }
 0x522   : >> { %v6789_v52 = vpop.f32.mrf.mxu1  ;;  %v6819_v23 = vpop.f32.mrf.mxu0 }
 0x523   : >> { %6197 = vst.msk [vmem:[%s5956_s29 + $0x20] sm:$0xff] %vm449_vm2, %v2714_v22 }
 0x524   : >> { %v2629_v24 = vpop.f32.mrf.mxu1  ;;  %v2898_v25 = vpop.f32.mrf.mxu0 }
 0x525   : >> { %v2719_v26 = vadd.f32 %v2718_v59, %v2629_v24  ;;  %v8617_v59 = vld [vmem:[#allocation12 + $0x18] sm:$0xff] (%p1805_p5) }
 0x526   : >> { %v6792_v27 = vpop.f32.mrf.mxu1  ;;  %v6822_v28 = vpop.f32.mrf.mxu0 }
 0x527   : >> { %6198 = vst.msk [vmem:[%s5956_s29 + $0x28] sm:$0x3] %vm452_vm3, %v2719_v26 }
 0x528   : >> { %v2809_v29 = vpop.f32.mrf.mxu1  ;;  %v2903_v30 = vpop.f32.mrf.mxu0 }
 0x529   : >> { %v2894_v31 = vadd.f32 %v2893_v3, %v2809_v29 }
 0x52a   : >> { %v6808_v32 = vpop.f32.mrf.mxu1  ;;  %v6825_v33 = vpop.f32.mrf.mxu0 }
 0x52b   : >> { %6207 = vst.msk [vmem:[%s5956_s29 + $0x30] sm:$0xff] %vm449_vm2, %v2894_v31 }
 0x52c   : >> { %v2814_v34 = vpop.f32.mrf.mxu1 }
 0x52d   : >> { %v2899_v35 = vadd.f32 %v2898_v25, %v2814_v34 }
 0x52e   : >> { %v6811_v36 = vpop.f32.mrf.mxu1 }
 0x52f   : >> { %6208 = vst.msk [vmem:[%s5956_s29 + $0x38] sm:$0xff] %vm449_vm2, %v2899_v35  ;;  %1807 = sbr.rel (!%p1805_p5) target bundleno = 771 (0x303), region = 206 }
 0x530   : >> { %v2819_v37 = vpop.f32.mrf.mxu1 }
 0x531   : >> { %v2904_v38 = vadd.f32 %v2903_v30, %v2819_v37 }
 0x532   : >> { %v6814_v39 = vpop.f32.mrf.mxu1 }
 0x533   : >> { %6209 = vst.msk [vmem:[%s5956_s29 + $0x40] sm:$0x3] %vm452_vm3, %v2904_v38  ;;  %vm2916_vm3 = vcmp.eq.s32.totalorder (%p1805_p5), %v8607_v54, %v8279_v6 }
 0x534   : > { %v8639_v45 = vsel %vm2916_vm3, 1.0, %v7553_v1 }
 0x535 LB: >> { %6826 = vmatprep.subr.mxu0 %v8617_v59  ;;  %6833 = vmatprep.subr.mxu1 %v8613_v57  ;;  %s2966_s11 = smul.u32 24, %s7538_s10  ;;  %s7570_s16 = smov 24   ;;  %vm7574_vm10 = vmmov 0   ;;  %s7538_s10 = sphi %s8667_s10, %s2965_s10  }
 0x536   : >> { %6827 = vmatpush3.msra.mxu0 %v8617_v59  ;;  %6834 = vmatpush3.msra.mxu1 %v8613_v57  ;;  %s7571_s15 = smov 72   ;;  %s7572_s17 = smov 48  }
 0x537   : >> { %6828 = vmatprep.subr.mxu0 %v8615_v58  ;;  %6835 = vmatprep.subr.mxu1 %v8611_v56  ;;  %s8683_s14 = scalar_lea.vmem [#allocation3], %s2966_s11  ;;  %s7575_s23 = smov 104  }
 0x538   : >> { %6829 = vmatpush3.msra.mxu0 %v8615_v58  ;;  %6836 = vmatpush3.msra.mxu1 %v8611_v56  ;;  %s7576_s24 = smov 56   ;;  %s7577_s25 = smov 80  }
 0x539   : >> { %6840 = vmatprep.subr.mxu0 %v8629_v41  ;;  %6847 = vmatprep.subr.mxu1 %v8633_v43  ;;  %s6250_s13 = smul.u32 80, %s7538_s10  ;;  %s2965_s10 = sadd.s32 1, %s7538_s10  }
 0x53a   : >> { %v2968_v49 = vld [vmem:[%s8683_s14] sm:$0xff]  ;;  %v2969_v50 = vld [vmem:[%s8683_s14 + $0x8] sm:$0xff]  ;;  %v2970_v51 = vld [vmem:[%s8683_s14 + $0x10] sm:$0x3]  ;;  %3753 = vrot.lane.b32.xlu0 %v8609_v55, %s7570_s16  ;;  %p2962_p6 = scmp.ge.s32.totalorder %s2965_s10, 16  }
 0x53b   : >> { %v2975_v61 = vrot.slane %v2968_v49, 1  ;;  %v2976_v62 = vrot.slane %v2969_v50, 1  ;;  %6837 = vmatprep.mubr.msk.f32.mxu1 %vm449_vm2, %v2968_v49  ;;  %v2978_v63 = vrot.slane %v2970_v51, 1  ;;  %v3139_v0 = vrot.slane %v2968_v49, 2  ;;  %v6221_v3 = vld [vmem:[%s8683_s14 + $0x18] sm:$0xff]  ;;  %3994 = vrot.lane.b32.xlu1 %v8609_v55, %s7571_s15  ;;  %v6222_v23 = vld [vmem:[%s8683_s14 + $0x20] sm:$0xff] }
 0x53c   : >> { %6838 = vmatmul.mubr.msk.f32.vlgmr.msra.gmra.mxu1 %vm449_vm2, %v2969_v50  ;;  %v3140_v22 = vrot.slane %v2969_v50, 2  ;;  %v3142_v52 = vrot.slane %v2970_v51, 2  ;;  %v6223_v27 = vld [vmem:[%s8683_s14 + $0x28] sm:$0x3]  ;;  %v3315_v28 = vrot.slane %v6221_v3, 1  ;;  %v3316_v29 = vrot.slane %v6222_v23, 1 }
 0x53d   : >> { %v2977_v24 = vsel %vm1815_vm6, %v2975_v61, %v2976_v62  ;;  %v2979_v25 = vsel %vm1815_vm6, %v2976_v62, %v2978_v63  ;;  %6848 = vmatpush3.msra.mxu1 %v8633_v43  ;;  %6851 = vmatprep.mubr.msk.f32.mxu1 %vm449_vm2, %v6221_v3  ;;  %v3401_v31 = vrot.slane %v6221_v3, 2  ;;  %v3402_v32 = vrot.slane %v6222_v23, 2  ;;  %v6230_v36 = vld [vmem:[%s8683_s14 + $0x30] sm:$0xff]  ;;  %v6231_v37 = vld [vmem:[%s8683_s14 + $0x38] sm:$0xff]  ;;  %v6232_v39 = vld [vmem:[%s8683_s14 + $0x40] sm:$0x3] }
 0x53e   : >> { %6830 = vmatprep.mubr.msk.f32.mxu0 %vm449_vm2, %v2977_v24  ;;  %6849 = vmatprep.subr.mxu1 %v8631_v42  ;;  %v3141_v26 = vsel %vm1970_vm7, %v3139_v0, %v3140_v22  ;;  %v3143_v30 = vsel %vm1970_vm7, %v3140_v22, %v3142_v52  ;;  %v3318_v33 = vrot.slane %v6223_v27, 1  ;;  %v3404_v34 = vrot.slane %v6223_v27, 2  ;;  %s8844_s18 = scalar_lea.vmem [#allocation4], %s6250_s13  ;;  %v8940_v57 = vld [vmem:[%s9345_s7 + $0x38] sm:$0xff] (%p2962_p6)  ;;  %v8945_v58 = vld [vmem:[%s9345_s7 + $0x40] sm:$0xff] (%p2962_p6)  ;;  %v8965_v43 = vld [vmem:[%s9345_s7 + $0x50] sm:$0xff] (%p2962_p6) }
 0x53f   : >> { %6831 = vmatmul.mubr.msk.f32.vlgmr.msra.gmra.mxu0 %vm449_vm2, %v2979_v25  ;;  %6850 = vmatpush3.msra.mxu1 %v8631_v42  ;;  %v3317_v35 = vsel %vm1815_vm6, %v3315_v28, %v3316_v29  ;;  %v3403_v38 = vsel %vm1970_vm7, %v3401_v31, %v3402_v32  ;;  %v3577_v51 = vrot.slane %v6230_v36, 1  ;;  %v3578_v61 = vrot.slane %v6231_v37, 1  ;;  %v8960_v42 = vld [vmem:[%s9345_s7 + $0x48] sm:$0xff] (%p2962_p6) }
 0x540   : >> { %6841 = vmatpush3.msra.mxu0 %v8629_v41  ;;  %6844 = vmatprep.mubr.msk.f32.mxu0 %vm449_vm2, %v3141_v26  ;;  %v3319_v49 = vsel %vm1815_vm6, %v3316_v29, %v3318_v33  ;;  %v3405_v50 = vsel %vm1970_vm7, %v3402_v32, %v3404_v34  ;;  %v3580_v62 = vrot.slane %v6232_v39, 1  ;;  %v3663_v63 = vrot.slane %v6230_v36, 2  ;;  %9379 = vst [vmem:[#allocation27_spill] sm:$0xff] (%p2962_p6), %v8960_v42 }
 0x541   : >> { %6842 = vmatprep.subr.mxu0 %v8619_v60  ;;  %6852 = vmatmul.mubr.msk.f32.vlgmr.msra.gmra.mxu1 %vm449_vm2, %v6222_v23  ;;  %v3664_v0 = vrot.slane %v6231_v37, 2  ;;  %v3579_v3 = vsel %vm1815_vm6, %v3577_v51, %v3578_v61  ;;  %v3666_v23 = vrot.slane %v6232_v39, 2  ;;  %v7573_v25 = vmov 0.0  }
 0x542   : >> { %6843 = vmatpush3.msra.mxu0 %v8619_v60  ;;  %6861 = vmatprep.subr.mxu1 %v8653_v12  ;;  %v3581_v22 = vsel %vm1815_vm6, %v3578_v61, %v3580_v62  ;;  %vm4208_vm11 = vcmp.eq.s32.totalorder (%p2962_p6), %v7808_v2, %v8266_v5  ;;  %vm4209_vm12 = vcmp.eq.s32.totalorder (%p2962_p6), %v8263_v4, %v8266_v5  ;;  %v8902_v4 = vld [vmem:[%s9345_s7 + $0x18] sm:$0xff] (%p2962_p6) }
 0x543   : >> { %6845 = vmatmul.mubr.msk.f32.vlgmr.msra.gmra.mxu0 %vm449_vm2, %v3143_v30  ;;  %6854 = vmatprep.subr.mxu0 %v8649_v13  ;;  %v3665_v52 = vsel %vm1970_vm7, %v3663_v63, %v3664_v0  ;;  %v3667_v24 = vsel %vm1970_vm7, %v3664_v0, %v3666_v23  ;;  %vm4212_vm13 = vcmp.eq.s32.totalorder (%p2962_p6), %v8607_v54, %v8266_v5 }
 0x544   : >> { %6855 = vmatpush3.msra.mxu0 %v8649_v13  ;;  %6862 = vmatpush3.msra.mxu1 %v8653_v12  ;;  %9376 = vst [vmem:[#allocation24_spill] sm:$0xff] (%p2962_p6), %v8902_v4  ;;  %v8935_v56 = vsel (%p2962_p6), %vm4212_vm13, 1.0, %v7553_v1  ;;  %v8985_v13 = vld [vmem:[%s9345_s7 + $0x68] sm:$0xff] (%p2962_p6) }
 0x545   : >> { %6856 = vmatprep.subr.mxu0 %v8647_v8  ;;  %6863 = vmatprep.subr.mxu1 %v8651_v9  ;;  %9381 = vst [vmem:[#allocation29_spill] sm:$0xff] (%p2962_p6), %v8985_v13 }
 0x546   : >> { %6857 = vmatpush3.msra.mxu0 %v8647_v8  ;;  %6858 = vmatprep.mubr.msk.f32.mxu0 %vm449_vm2, %v3317_v35  ;;  %v8980_v8 = vld [vmem:[%s9345_s7 + $0x60] sm:$0xff] (%p2962_p6) }
 0x547   : >> { %6864 = vmatpush3.msra.mxu1 %v8651_v9  ;;  %6865 = vmatprep.mubr.msk.f32.mxu1 %vm449_vm2, %v3403_v38  ;;  %9380 = vst [vmem:[#allocation28_spill] sm:$0xff] (%p2962_p6), %v8980_v8  ;;  %v8990_v9 = vld [vmem:[%s9345_s7 + $0x70] sm:$0xff] (%p2962_p6) }
 0x548   : >> { %6859 = vmatmul.mubr.msk.f32.vlgmr.msra.gmra.mxu0 %vm449_vm2, %v3319_v49  ;;  %6866 = vmatmul.mubr.msk.f32.vlgmr.msra.gmra.mxu1 %vm449_vm2, %v3405_v50  ;;  %9382 = vst [vmem:[#allocation30_spill] sm:$0xff] (%p2962_p6), %v8990_v9 }
 0x549   : >> { %6868 = vmatprep.subr.mxu0 %v8657_v15  ;;  %6875 = vmatprep.subr.mxu1 %v8661_v19 }
 0x54a   : >> { %6869 = vmatpush3.msra.mxu0 %v8657_v15  ;;  %6876 = vmatpush3.msra.mxu1 %v8661_v19  ;;  %v9006_v15 = vld [vmem:[%s9345_s7 + $0x80] sm:$0xff] (%p2962_p6)  ;;  %v9021_v19 = vld [vmem:[%s9345_s7 + $0x98] sm:$0xff] (%p2962_p6) }
 0x54b   : >> { %6870 = vmatprep.subr.mxu0 %v8655_v14  ;;  %6877 = vmatprep.subr.mxu1 %v8659_v16  ;;  %9384 = vst [vmem:[#allocation32_spill] sm:$0xff] (%p2962_p6), %v9006_v15  ;;  %9387 = vst [vmem:[#allocation35_spill] sm:$0xff] (%p2962_p6), %v9021_v19 }
 0x54c   : >> { %6871 = vmatpush3.msra.mxu0 %v8655_v14  ;;  %6872 = vmatprep.mubr.msk.f32.mxu0 %vm449_vm2, %v6230_v36  ;;  %v9001_v14 = vld [vmem:[%s9345_s7 + $0x78] sm:$0xff] (%p2962_p6) }
 0x54d   : >> { %6878 = vmatpush3.msra.mxu1 %v8659_v16  ;;  %6879 = vmatprep.mubr.msk.f32.mxu1 %vm449_vm2, %v3579_v3  ;;  %9383 = vst [vmem:[#allocation31_spill] sm:$0xff] (%p2962_p6), %v9001_v14  ;;  %v9011_v16 = vld [vmem:[%s9345_s7 + $0x88] sm:$0xff] (%p2962_p6) }
 0x54e   : >> { %6873 = vmatmul.mubr.msk.f32.vlgmr.msra.gmra.mxu0 %vm449_vm2, %v6231_v37  ;;  %6880 = vmatmul.mubr.msk.f32.vlgmr.msra.gmra.mxu1 %vm449_vm2, %v3581_v22  ;;  %9385 = vst [vmem:[#allocation33_spill] sm:$0xff] (%p2962_p6), %v9011_v16 }
 0x54f   : >> { %6882 = vmatprep.subr.mxu0 %v8665_v48  ;;  %6886 = vmatprep.mubr.msk.f32.mxu0 %vm449_vm2, %v3665_v52 }
 0x550   : >> { %6883 = vmatpush3.msra.mxu0 %v8665_v48  ;;  %3987 = vrot.lane.b32.xlu0 %v8609_v55, %s7572_s17  ;;  %v9031_v48 = vld [vmem:[%s9345_s7 + $0xa8] sm:$0xff] (%p2962_p6) }
 0x551   : >> { %6884 = vmatprep.subr.mxu0 %v8663_v47  ;;  %6889 = vmatprep.subr.mxu1 %v7573_v25 }
 0x552   : >> { %6885 = vmatpush3.msra.mxu0 %v8663_v47  ;;  %6893 = vmatprep.mubr.msk.f32.mxu1 %vm7574_vm10, %v7573_v25  ;;  %v9026_v47 = vld [vmem:[%s9345_s7 + $0xa0] sm:$0xff] (%p2962_p6) }
 0x553   : >> { %6887 = vmatmul.mubr.msk.f32.vlgmr.msra.gmra.mxu0 %vm449_vm2, %v3667_v24  ;;  %6908 = vmatprep.subr.mxu0 %v7573_v25 }
 0x554   : >> { %6912 = vmatprep.mubr.msk.f32.mxu0 %vm7574_vm10, %v7573_v25 }
 0x5fc   : >> { %v6839_v26 = vpop.f32.mrf.mxu1 }
 0x5fe   : >> { %v3129_v27 = vpop.f32.mrf.mxu1 }
 0x5ff   : >> { %v6832_v28 = vpop.f32.mrf.mxu0 }
 0x600   : >> { %v3135_v31 = vadd.f32 %v6839_v26, %v6832_v28 }
 0x601   : >> { %v3050_v29 = vpop.f32.mrf.mxu0  ;;  %v6853_v30 = vpop.f32.mrf.mxu1 }
 0x602   : >> { %v3130_v33 = vadd.f32 %v3129_v27, %v3050_v29  ;;  %v3754_v27 = vpop.permute.xlu0 %3753 }
 0x603   : >> { %v6846_v32 = vpop.f32.mrf.mxu0  ;;  %v3303_v35 = vpop.f32.mrf.mxu1 }
 0x604   : >> { %v3224_v34 = vadd.f32 %v6846_v32, %v3135_v31 }
 0x605   : >> { %v3214_v36 = vpop.f32.mrf.mxu0 }
 0x606   : >> { %v3313_v37 = vadd.f32 %v6853_v30, %v3224_v34  ;;  %v3223_v38 = vadd.f32 %v3214_v36, %v3130_v33  ;;  %v3995_v33 = vpop.permute.xlu1 %3994 }
 0x608   : >> { %v3312_v39 = vadd.f32 %v3303_v35, %v3223_v38  ;;  %v6860_v49 = vpop.f32.mrf.mxu0  ;;  %v6867_v50 = vpop.f32.mrf.mxu1 }
 0x609   : >> { %v3400_v51 = vadd.f32 %v6860_v49, %v3313_v37  ;;  %v3988_v37 = vpop.permute.xlu0 %3987 }
 0x60a   : >> { %v3390_v61 = vpop.f32.mrf.mxu0  ;;  %v3476_v62 = vpop.f32.mrf.mxu1 }
 0x60b   : >> { %v3486_v63 = vadd.f32 %v6867_v50, %v3400_v51  ;;  %v3399_v0 = vadd.f32 %v3390_v61, %v3312_v39 }
 0x60d   : >> { %v3485_v3 = vadd.f32 %v3476_v62, %v3399_v0 }
 0x60e   : >> { %v6874_v22 = vpop.f32.mrf.mxu0  ;;  %v6881_v52 = vpop.f32.mrf.mxu1 }
 0x60f   : >> { %v3575_v23 = vadd.f32 %v6874_v22, %v3486_v63 }
 0x610   : >> { %v3565_v24 = vpop.f32.mrf.mxu0  ;;  %v3652_v29 = vpop.f32.mrf.mxu1 }
 0x611   : >> { %v3662_v26 = vadd.f32 %v6881_v52, %v3575_v23  ;;  %v3574_v28 = vadd.f32 %v3565_v24, %v3485_v3 }
 0x613   : >> { %v3661_v30 = vadd.f32 %v3652_v29, %v3574_v28  ;;  %v6888_v31 = vpop.f32.mrf.mxu0 }
 0x614   : >> { %v3748_v32 = vadd.f32 %v6888_v31, %v3662_v26 }
 0x615   : >> { %v3738_v34 = vpop.f32.mrf.mxu0 }
 0x616   : >> { %v3747_v35 = vadd.f32 %v3738_v34, %v3661_v30  ;;  %v3757_v36 = vadd.f32 %v3754_v27, %v3748_v32  ;;  %v3750_v38 = vadd.f32 %v8609_v55, %v3748_v32  ;;  %v3998_v39 = vadd.f32 %v3995_v33, %v3748_v32 }
 0x617   : >> { %v3991_v62 = vadd.f32 %v3988_v37, %v3748_v32 }
 0x618   : >> { %v3759_v49 = vmax.f32 %v3757_v36, 0.0  ;;  %v3756_v50 = vadd.f32 %v3754_v27, %v3747_v35  ;;  %v3752_v51 = vmax.f32 %v3750_v38, 0.0  ;;  %v3749_v61 = vadd.f32 %v8609_v55, %v3747_v35 }
 0x619   : >> { %v4000_v3 = vmax.f32 %v3998_v39, 0.0  ;;  %v3997_v22 = vadd.f32 %v3995_v33, %v3747_v35  ;;  %v3993_v52 = vmax.f32 %v3991_v62, 0.0  ;;  %v3990_v23 = vadd.f32 %v3988_v37, %v3747_v35 }
 0x61a   : >> { %3764 = vrot.lane.b32.xlu1 %v3759_v49, %s7575_s23  ;;  %v3758_v63 = vmax.f32 %v3756_v50, 0.0  ;;  %6909 = vmatpush3.msra.mxu0 %v3752_v51  ;;  %v3751_v0 = vmax.f32 %v3749_v61, 0.0 }
 0x61b   : >> { %6910 = vmatprep.subr.mxu0 %v7573_v25  ;;  %v3999_v24 = vmax.f32 %v3997_v22, 0.0  ;;  %v3992_v26 = vmax.f32 %v3990_v23, 0.0 }
 0x61c   : >> { %3762 = vrot.lane.b32.xlu0 %v3758_v63, %s7575_s23  ;;  %6911 = vmatpush3.msra.mxu0 %v3751_v0 }
 0x61d   : >> { %6913 = vmatmul.mubr.msk.f32.vlgmr.msra.gmra.mxu0 %vm449_vm2, %v8307_v17  ;;  %6946 = vmatprep.subr.mxu0 %v7573_v25 }
 0x61e   : >> { %4005 = vrot.lane.b32.xlu1 %v4000_v3, %s7576_s24  ;;  %6915 = vmatprep.mubr.msk.f32.mxu0 %vm7574_vm10, %v7573_v25 }
 0x620   : >> { %4103 = vrot.lane.b32.xlu0 %v3993_v52, %s7577_s25 }
 0x621   : >> { %6916 = vmatmul.mubr.msk.f32.gmra.mxu0 %vm449_vm2, %v8310_v18 }
 0x622   : >> { %4003 = vrot.lane.b32.xlu1 %v3999_v24, %s7576_s24  ;;  %6918 = vmatprep.mubr.msk.f32.mxu0 %vm7574_vm10, %v7573_v25 }
 0x624   : >> { %4101 = vrot.lane.b32.xlu0 %v3992_v26, %s7577_s25  ;;  %s9058_s25 = smov (%p2962_p6), 0  }
 0x625   : >> { %6919 = vmatmul.mubr.msk.f32.gmra.mxu0 %vm449_vm2, %v8420_v10 }
 0x626   : >> { %6921 = vmatprep.mubr.msk.f32.mxu0 %vm7574_vm10, %v7573_v25 }
 0x629   : >> { %6922 = vmatmul.mubr.msk.f32.gmra.mxu0 %vm449_vm2, %v8636_v44 }
 0x62a   : >> { %6924 = vmatprep.mubr.msk.f32.mxu0 %vm7574_vm10, %v7573_v25 }
 0x62d   : >> { %6925 = vmatmul.mubr.msk.f32.gmra.mxu0 %vm449_vm2, %v8639_v45 }
 0x62e   : >> { %6950 = vmatprep.mubr.msk.f32.mxu0 %vm7574_vm10, %v7573_v25 }
 0x68c   : >> { %v3765_v27 = vpop.permute.xlu1 %3764 }
 0x68d   : >> { %6890 = vmatpush3.msra.mxu1 %v3765_v27 }
 0x68e   : >> { %6891 = vmatprep.subr.mxu1 %v7573_v25  ;;  %v3763_v28 = vpop.permute.xlu0 %3762 }
 0x68f   : >> { %6892 = vmatpush3.msra.mxu1 %v3763_v28 }
 0x690   : >> { %v4006_v29 = vpop.permute.xlu1 %4005  ;;  %6927 = vmatprep.subr.mxu1 %v7573_v25  ;;  %6894 = vmatmul.mubr.msk.f32.vlgmr.msra.gmra.mxu1 %vm449_vm2, %v8319_v20 }
 0x691   : >> { %6928 = vmatpush3.msra.mxu1 %v4006_v29  ;;  %6896 = vmatprep.mubr.msk.f32.mxu1 %vm7574_vm10, %v7573_v25 }
 0x692   : >> { %v4104_v30 = vpop.permute.xlu0 %4103  ;;  %6929 = vmatprep.subr.mxu1 %v7573_v25 }
 0x693   : >> { %6947 = vmatpush3.msra.mxu0 %v4104_v30 }
 0x694   : >> { %v4004_v31 = vpop.permute.xlu1 %4003  ;;  %6897 = vmatmul.mubr.msk.f32.gmra.mxu1 %vm449_vm2, %v8322_v21  ;;  %6948 = vmatprep.subr.mxu0 %v7573_v25 }
 0x695   : >> { %6930 = vmatpush3.msra.mxu1 %v4004_v31  ;;  %6899 = vmatprep.mubr.msk.f32.mxu1 %vm7574_vm10, %v7573_v25 }
 0x696   : >> { %v4102_v32 = vpop.permute.xlu0 %4101 }
 0x697   : >> { %6949 = vmatpush3.msra.mxu0 %v4102_v32 }
 0x698   : >> { %6900 = vmatmul.mubr.msk.f32.gmra.mxu1 %vm449_vm2, %v8423_v11  ;;  %6951 = vmatmul.mubr.msk.f32.vlgmr.msra.gmra.mxu0 %vm449_vm2, %v8307_v17 }
 0x699   : >> { %6902 = vmatprep.mubr.msk.f32.mxu1 %vm7574_vm10, %v7573_v25  ;;  %6953 = vmatprep.mubr.msk.f32.mxu0 %vm7574_vm10, %v7573_v25 }
 0x69c   : >> { %6903 = vmatmul.mubr.msk.f32.gmra.mxu1 %vm449_vm2, %v8642_v46  ;;  %6954 = vmatmul.mubr.msk.f32.gmra.mxu0 %vm449_vm2, %v8310_v18 }
 0x69d   : >> { %6905 = vmatprep.mubr.msk.f32.mxu1 %vm7574_vm10, %v7573_v25  ;;  %6956 = vmatprep.mubr.msk.f32.mxu0 %vm7574_vm10, %v7573_v25 }
 0x6a0   : >> { %6906 = vmatmul.mubr.msk.f32.gmra.mxu1 %vm449_vm2, %v8645_v7  ;;  %6957 = vmatmul.mubr.msk.f32.gmra.mxu0 %vm449_vm2, %v8420_v10 }
 0x6a1   : >> { %6931 = vmatprep.mubr.msk.f32.mxu1 %vm7574_vm10, %v7573_v25  ;;  %6959 = vmatprep.mubr.msk.f32.mxu0 %vm7574_vm10, %v7573_v25 }
 0x6a4   : >> { %6932 = vmatmul.mubr.msk.f32.vlgmr.msra.gmra.mxu1 %vm449_vm2, %v8319_v20  ;;  %6960 = vmatmul.mubr.msk.f32.gmra.mxu0 %vm449_vm2, %v8636_v44  ;;  %v8897_v20 = vld [vmem:[%s9345_s7 + $0x10] sm:$0xff] (%p2962_p6) }
 0x6a5   : >> { %6934 = vmatprep.mubr.msk.f32.mxu1 %vm7574_vm10, %v7573_v25  ;;  %6962 = vmatprep.mubr.msk.f32.mxu0 %vm7574_vm10, %v7573_v25  ;;  %9375 = vst [vmem:[#allocation23_spill] sm:$0xff] (%p2962_p6), %v8897_v20 }
 0x6a8   : >> { %6935 = vmatmul.mubr.msk.f32.gmra.mxu1 %vm449_vm2, %v8322_v21  ;;  %6963 = vmatmul.mubr.msk.f32.gmra.mxu0 %vm449_vm2, %v8639_v45  ;;  %v8908_v21 = vsel (%p2962_p6), %vm4208_vm11, 1.0, %v7553_v1 }
 0x6a9   : >> { %6937 = vmatprep.mubr.msk.f32.mxu1 %vm7574_vm10, %v7573_v25 }
 0x6ac   : >> { %6938 = vmatmul.mubr.msk.f32.gmra.mxu1 %vm449_vm2, %v8423_v11  ;;  %v8918_v11 = vld [vmem:[%s9345_s7 + $0x28] sm:$0xff] (%p2962_p6) }
 0x6ad   : >> { %6940 = vmatprep.mubr.msk.f32.mxu1 %vm7574_vm10, %v7573_v25  ;;  %9378 = vst [vmem:[#allocation26_spill] sm:$0xff] (%p2962_p6), %v8918_v11 }
 0x6b0   : >> { %6941 = vmatmul.mubr.msk.f32.gmra.mxu1 %vm449_vm2, %v8642_v46  ;;  %v8970_v46 = vld [vmem:[%s9345_s7 + $0x58] sm:$0xff] (%p2962_p6) }
 0x6b1   : >> { %6943 = vmatprep.mubr.msk.f32.mxu1 %vm7574_vm10, %v7573_v25 }
 0x6b4   : >> { %6944 = vmatmul.mubr.msk.f32.gmra.mxu1 %vm449_vm2, %v8645_v7  ;;  %vm4210_vm2 = vcmp.eq.s32.totalorder (%p2962_p6), %v8395_v40, %v8266_v5  ;;  %v8913_v40 = vld [vmem:[%s9345_s7 + $0x20] sm:$0xff] (%p2962_p6) }
 0x6b5   : > { %9377 = vst [vmem:[#allocation25_spill] sm:$0xff] (%p2962_p6), %v8913_v40  ;;  %v8929_v54 = vsel (%p2962_p6), %vm4210_vm2, 1.0, %v7553_v1 }
 0x6dd   : >> { %v3954_v33 = vpop.f32.mrf.mxu0 }
 0x6df   : >> { %v6914_v34 = vpop.f32.mrf.mxu0 }
 0x6e1   : >> { %v3959_v35 = vpop.f32.mrf.mxu0 }
 0x6e3   : >> { %v6917_v36 = vpop.f32.mrf.mxu0 }
 0x6e5   : >> { %v3964_v37 = vpop.f32.mrf.mxu0 }
 0x6e7   : >> { %v6920_v38 = vpop.f32.mrf.mxu0 }
 0x6e9   : >> { %v3969_v39 = vpop.f32.mrf.mxu0 }
 0x6eb   : >> { %v6923_v49 = vpop.f32.mrf.mxu0 }
 0x6ed   : >> { %v3974_v50 = vpop.f32.mrf.mxu0 }
 0x6ef   : >> { %v6926_v51 = vpop.f32.mrf.mxu0 }
 0x750   : >> { %v3849_v61 = vpop.f32.mrf.mxu1 }
 0x751   : >> { %v3955_v62 = vadd.f32 %v3954_v33, %v3849_v61 }
 0x752   : >> { %v6895_v63 = vpop.f32.mrf.mxu1 }
 0x753   : >> { %6251 = vst.msk [vmem:[%s8844_s18 + $0x28] sm:$0xff] %vm505_vm4, %v3955_v62 }
 0x754   : >> { %v3854_v25 = vpop.f32.mrf.mxu1 }
 0x755   : >> { %v3960_v0 = vadd.f32 %v3959_v35, %v3854_v25 }
 0x756   : >> { %v6898_v3 = vpop.f32.mrf.mxu1 }
 0x757   : >> { %6252 = vst.msk [vmem:[%s8844_s18 + $0x30] sm:$0xff] %vm505_vm4, %v3960_v0 }
 0x758   : >> { %v3859_v22 = vpop.f32.mrf.mxu1  ;;  %v4173_v52 = vpop.f32.mrf.mxu0 }
 0x759   : >> { %v3965_v23 = vadd.f32 %v3964_v37, %v3859_v22 }
 0x75a   : >> { %v6901_v24 = vpop.f32.mrf.mxu1  ;;  %v6952_v26 = vpop.f32.mrf.mxu0 }
 0x75b   : >> { %6253 = vst.msk [vmem:[%s8844_s18 + $0x38] sm:$0xff] %vm505_vm4, %v3965_v23 }
 0x75c   : >> { %v3864_v27 = vpop.f32.mrf.mxu1  ;;  %v4178_v28 = vpop.f32.mrf.mxu0 }
 0x75d   : >> { %v3970_v29 = vadd.f32 %v3969_v39, %v3864_v27 }
 0x75e   : >> { %v6904_v30 = vpop.f32.mrf.mxu1  ;;  %v6955_v31 = vpop.f32.mrf.mxu0 }
 0x75f   : >> { %6254 = vst.msk [vmem:[%s8844_s18 + $0x40] sm:$0xff] %vm505_vm4, %v3970_v29  ;;  %v4206_v30 = vadd.s32 (%p2962_p6), 48, %v7808_v2  ;;  %v4207_v31 = vadd.s32 (%p2962_p6), 56, %v7808_v2 }
 0x760   : >> { %v3869_v32 = vpop.f32.mrf.mxu1  ;;  %v4183_v33 = vpop.f32.mrf.mxu0 }
 0x761   : >> { %v3975_v34 = vadd.f32 %v3974_v50, %v3869_v32  ;;  %v8874_v32 = vld [vmem:[#allocation15] ss:$0 sm:$0xff] (%p2962_p6)  ;;  %vm4214_vm15 = vcmp.eq.s32.totalorder (%p2962_p6), %v4206_v30, %v8266_v5  ;;  %vm4215_vm1 = vcmp.eq.s32.totalorder (%p2962_p6), %v4207_v31, %v8266_v5  ;;  %vm4233_vm3 = vcmp.eq.s32.totalorder (%p2962_p6), %v4206_v30, %v8279_v6 }
 0x762   : >> { %v6907_v35 = vpop.f32.mrf.mxu1  ;;  %v6958_v36 = vpop.f32.mrf.mxu0  ;;  %9372 = vst [vmem:[#allocation20_spill] sm:$0xff] (%p2962_p6), %v8874_v32  ;;  %v8951_v60 = vsel (%p2962_p6), %vm4214_vm15, 1.0, %v7553_v1  ;;  %v8954_v41 = vsel (%p2962_p6), %vm4215_vm1, 1.0, %v7553_v1  ;;  %vm4234_vm8 = vcmp.eq.s32.totalorder (%p2962_p6), %v4207_v31, %v8279_v6 }
 0x763   : >> { %6255 = vst.msk [vmem:[%s8844_s18 + $0x48] sm:$0x3] %vm510_vm5, %v3975_v34  ;;  %v8996_v12 = vsel (%p2962_p6), %vm4234_vm8, 1.0, %v7553_v1  ;;  %v9036_v34 = vld [vmem:[%s9345_s7 + $0xb0] sm:$0xff] (%p2962_p6)  ;;  %v9041_v35 = vld [vmem:[%s9345_s7 + $0xb8] sm:$0xff] (%p2962_p6)  ;;  %v9046_v36 = vld [vmem:[%s9345_s7 + $0xc0] sm:$0xff] (%p2962_p6) }
 0x764   : >> { %v4075_v37 = vpop.f32.mrf.mxu1  ;;  %v4188_v38 = vpop.f32.mrf.mxu0  ;;  %9388 = vst [vmem:[#allocation36_spill] sm:$0xff] (%p2962_p6), %v9036_v34  ;;  %9389 = vst [vmem:[#allocation37_spill] sm:$0xff] (%p2962_p6), %v9041_v35 }
 0x765   : >> { %v4174_v49 = vadd.f32 %v4173_v52, %v4075_v37  ;;  %9390 = vst [vmem:[#allocation38_spill] sm:$0xff] (%p2962_p6), %v9046_v36  ;;  %v9051_v37 = vld [vmem:[%s9345_s7 + $0xc8] sm:$0xff] (%p2962_p6) }
 0x766   : >> { %v6933_v51 = vpop.f32.mrf.mxu1  ;;  %v6961_v61 = vpop.f32.mrf.mxu0  ;;  %9391 = vst [vmem:[#allocation39_spill] sm:$0xff] (%p2962_p6), %v9051_v37 }
 0x767   : >> { %6268 = vst.msk [vmem:[%s8844_s18 + $0x50] sm:$0xff] %vm505_vm4, %v4174_v49 }
 0x768   : >> { %v4080_v39 = vpop.f32.mrf.mxu1  ;;  %v4193_v62 = vpop.f32.mrf.mxu0 }
 0x769   : >> { %v4179_v63 = vadd.f32 %v4178_v28, %v4080_v39  ;;  %v4205_v28 = vadd.s32 (%p2962_p6), 40, %v7808_v2  ;;  %v8892_v2 = vld [vmem:[%s9345_s7 + $0x8] sm:$0xff] (%p2962_p6) }
 0x76a   : >> { %v6936_v25 = vpop.f32.mrf.mxu1  ;;  %v6964_v0 = vpop.f32.mrf.mxu0  ;;  %9374 = vst [vmem:[#allocation22_spill] sm:$0xff] (%p2962_p6), %v8892_v2 }
 0x76b   : >> { %6269 = vst.msk [vmem:[%s8844_s18 + $0x58] sm:$0xff] %vm505_vm4, %v4179_v63  ;;  %vm4213_vm14 = vcmp.eq.s32.totalorder (%p2962_p6), %v4205_v28, %v8266_v5  ;;  %vm4232_vm0 = vcmp.eq.s32.totalorder (%p2962_p6), %v4205_v28, %v8279_v6  ;;  %v8993_v6 = vsel (%p2962_p6), %vm4233_vm3, 1.0, %v7553_v1 }
 0x76c   : >> { %v4085_v50 = vpop.f32.mrf.mxu1  ;;  %v8948_v59 = vsel (%p2962_p6), %vm4213_vm14, 1.0, %v7553_v1  ;;  %v8975_v7 = vsel (%p2962_p6), %vm4232_vm0, 1.0, %v7553_v1 }
 0x76d   : >> { %v4184_v3 = vadd.f32 %v4183_v33, %v4085_v50  ;;  %v8879_v33 = vld [vmem:[%s9345_s7] sm:$0xff] (%p2962_p6) }
 0x76e   : >> { %v6939_v22 = vpop.f32.mrf.mxu1  ;;  %9373 = vst [vmem:[#allocation21_spill] sm:$0xff] (%p2962_p6), %v8879_v33 }
 0x76f   : >> { %6270 = vst.msk [vmem:[%s8844_s18 + $0x60] sm:$0xff] %vm505_vm4, %v4184_v3 }
 0x770   : >> { %v4090_v23 = vpop.f32.mrf.mxu1 }
 0x771   : >> { %v4189_v52 = vadd.f32 %v4188_v38, %v4090_v23  ;;  %v9056_v38 = vld [vmem:[%s9345_s7 + $0xd0] sm:$0xff] (%p2962_p6) }
 0x772   : >> { %v6942_v24 = vpop.f32.mrf.mxu1  ;;  %9392 = vst [vmem:[#allocation40_spill] sm:$0xff] (%p2962_p6), %v9056_v38 }
 0x773   : >> { %6271 = vst.msk [vmem:[%s8844_s18 + $0x68] sm:$0xff] %vm505_vm4, %v4189_v52  ;;  %2964 = sbr.rel (!%p2962_p6) target bundleno = 1333 (0x535), region = 217 }
 0x774   : >> { %v4095_v26 = vpop.f32.mrf.mxu1 }
 0x775   : >> { %v4194_v27 = vadd.f32 %v4193_v62, %v4095_v26 }
 0x776   : >> { %v6945_v29 = vpop.f32.mrf.mxu1 }
 0x777   : >> { %6272 = vst.msk [vmem:[%s8844_s18 + $0x70] sm:$0x3] %vm510_vm5, %v4194_v27  ;;  %vm4211_vm5 = vcmp.eq.s32.totalorder (%p2962_p6), %v8604_v53, %v8266_v5  ;;  %v8923_v53 = vld [vmem:[%s9345_s7 + $0x30] sm:$0xff] (%p2962_p6)  ;;  %v8926_v5 = vsel (%p2962_p6), %vm4209_vm12, 1.0, %v7553_v1 }
 0x778   : > { %v8932_v55 = vsel %vm4211_vm5, 1.0, %v7553_v1  ;;  %v9016_v1 = vld [vmem:[%s9345_s7 + $0x90] sm:$0xff] }
 0x779   : > { %9386 = vst [vmem:[#allocation34_spill] sm:$0xff] %v9016_v1 }
 0x77a LB: >> { %v9393_v42 = vld [vmem:[#allocation27_spill] sm:$0xff]  ;;  %v9394_v32 = vld [vmem:[#allocation20_spill] sm:$0xff]  ;;  %v9395_v40 = vld [vmem:[#allocation25_spill] sm:$0xff]  ;;  %s4289_s13 = smul.u32 40, %s7542_s25  ;;  %s7578_s21 = smov 3   ;;  %vm5315_vm9 = vcmask 261120   ;;  %s7542_s25 = sphi %s9058_s25, %s4288_s25  }
 0x77b   : >> { %v9396_v38 = vld [vmem:[#allocation40_spill] sm:$0xff]  ;;  %v9397_v37 = vld [vmem:[#allocation39_spill] sm:$0xff]  ;;  %v9398_v36 = vld [vmem:[#allocation38_spill] sm:$0xff]  ;;  %5272 = vrot.lane.b32.xlu0 %v9394_v32, %s7578_s21  ;;  %s7579_s19 = smov 6   ;;  %s7580_s26 = smov 9   ;;  %vm5577_vm10 = vcmask 23552  }
 0x77c   : >> { %v9399_v35 = vld [vmem:[#allocation37_spill] sm:$0xff]  ;;  %v9400_v34 = vld [vmem:[#allocation36_spill] sm:$0xff]  ;;  %v9402_v20 = vld [vmem:[#allocation23_spill] sm:$0xff]  ;;  %s9075_s18 = scalar_lea.vmem [#allocation4], %s4289_s13  ;;  %5586 = vrot.lane.b32.xlu1 %v9394_v32, %s7579_s19  ;;  %s7581_s27 = smov 125  }
 0x77d   : >> { %v9401_v33 = vld [vmem:[#allocation21_spill] sm:$0xff]  ;;  %v9403_v19 = vld [vmem:[#allocation35_spill] sm:$0xff]  ;;  %v9405_v15 = vld [vmem:[#allocation32_spill] sm:$0xff]  ;;  %6977 = vmatprep.subr.mxu1 %v9402_v20  ;;  %s7582_s28 = smov 119   ;;  %s7583_s12 = smov 122  }
 0x77e   : >> { %v9404_v16 = vld [vmem:[#allocation33_spill] sm:$0xff]  ;;  %v9406_v14 = vld [vmem:[#allocation31_spill] sm:$0xff]  ;;  %v9408_v11 = vld [vmem:[#allocation26_spill] sm:$0xff]  ;;  %6978 = vmatpush3.msra.mxu1 %v9402_v20  ;;  %s6404_s20 = sshll.u32 %s7542_s25, 7  ;;  %s4288_s25 = sadd.s32 1, %s7542_s25  }
 0x77f   : >> { %v9407_v13 = vld [vmem:[#allocation29_spill] sm:$0xff]  ;;  %v9409_v9 = vld [vmem:[#allocation30_spill] sm:$0xff]  ;;  %v9410_v8 = vld [vmem:[#allocation28_spill] sm:$0xff]  ;;  %6965 = vmatprep.subr.mxu0 %v9408_v11  ;;  %5613 = vrot.lane.b32.xlu0 %v9394_v32, %s7580_s26  ;;  %s9298_s29 = scalar_lea.vmem %s8271_s22, %s6404_s20  ;;  %p4285_p4 = scmp.ge.s32.totalorder %s4288_s25, 32  }
 0x780   : >> { %v9411_v4 = vld [vmem:[#allocation24_spill] sm:$0xff]  ;;  %v9412_v2 = vld [vmem:[#allocation22_spill] sm:$0xff]  ;;  %6966 = vmatpush3.msra.mxu0 %v9408_v11  ;;  %v4292_v51 = vld [vmem:[%s9075_s18 + $0x8] sm:$0xff] }
 0x781   : >> { %v9413_v1 = vld [vmem:[#allocation34_spill] sm:$0xff]  ;;  %6967 = vmatprep.subr.mxu0 %v9395_v40  ;;  %6979 = vmatprep.subr.mxu1 %v9412_v2  ;;  %v4293_v61 = vld [vmem:[%s9075_s18 + $0x10] sm:$0xff]  ;;  %v4303_v62 = vrot.slane %v4292_v51, 1  ;;  %v4294_v25 = vld [vmem:[%s9075_s18 + $0x18] sm:$0xff]  ;;  %v4499_v24 = vrot.slane %v4292_v51, 2 }
 0x782   : >> { %6968 = vmatpush3.msra.mxu0 %v9395_v40  ;;  %6980 = vmatpush3.msra.mxu1 %v9412_v2  ;;  %v4291_v49 = vld [vmem:[%s9075_s18] sm:$0xff]  ;;  %v4305_v63 = vrot.slane %v4293_v61, 1  ;;  %v4307_v50 = vrot.slane %v4294_v25, 1  ;;  %v4501_v29 = vrot.slane %v4293_v61, 2  ;;  %v4503_v30 = vrot.slane %v4294_v25, 2  ;;  %v6321_v31 = vld [vmem:[%s9075_s18 + $0x28] sm:$0xff] }
 0x783   : >> { %6969 = vmatprep.subr.mxu0 %v9411_v4  ;;  %6981 = vmatprep.subr.mxu1 %v9401_v33  ;;  %v4302_v39 = vrot.slane %v4291_v49, 1  ;;  %v4295_v0 = vld [vmem:[%s9075_s18 + $0x20] sm:$0x3]  ;;  %v4498_v52 = vrot.slane %v4291_v49, 2 }
 0x784   : >> { %6970 = vmatpush3.msra.mxu0 %v9411_v4  ;;  %6982 = vmatpush3.msra.mxu1 %v9401_v33  ;;  %v4309_v3 = vrot.slane %v4295_v0, 1  ;;  %v4306_v23 = vsel %vm1815_vm6, %v4303_v62, %v4305_v63  ;;  %v4308_v26 = vsel %vm1815_vm6, %v4305_v63, %v4307_v50  ;;  %v4714_v63 = vrot.slane %v6321_v31, 1 }
 0x785   : >> { %6983 = vmatprep.mubr.msk.f32.mxu1 %vm505_vm4, %v4291_v49  ;;  %6989 = vmatprep.subr.mxu0 %v8945_v58  ;;  %v4304_v22 = vsel %vm1815_vm6, %v4302_v39, %v4303_v62  ;;  %v4500_v28 = vsel %vm1970_vm7, %v4498_v52, %v4499_v24  ;;  %v4502_v49 = vsel %vm1970_vm7, %v4499_v24, %v4501_v29  ;;  %v6323_v62 = vld [vmem:[%s9075_s18 + $0x38] sm:$0xff]  ;;  %v6325_v52 = vld [vmem:[%s9075_s18 + $0x48] sm:$0x3] }
 0x786   : >> { %6984 = vmatmul.mubr.msk.f32.vlgmr.msra.gmra.mxu1 %vm505_vm4, %v4292_v51  ;;  %7001 = vmatprep.subr.mxu1 %v8970_v46  ;;  %v4310_v27 = vsel %vm1815_vm6, %v4307_v50, %v4309_v3  ;;  %v6322_v51 = vld [vmem:[%s9075_s18 + $0x30] sm:$0xff]  ;;  %v4504_v39 = vsel %vm1970_vm7, %v4501_v29, %v4503_v30  ;;  %v4717_v50 = vrot.slane %v6323_v62, 1  ;;  %v6324_v3 = vld [vmem:[%s9075_s18 + $0x40] sm:$0xff]  ;;  %v4823_v24 = vrot.slane %v6323_v62, 2 }
 0x787   : >> { %6986 = vmatprep.mubr.msk.f32.mxu1 %vm505_vm4, %v4293_v61  ;;  %7002 = vmatpush3.msra.mxu1 %v8970_v46  ;;  %v4505_v61 = vrot.slane %v4295_v0, 2 }
 0x788   : >> { %6971 = vmatprep.mubr.msk.f32.mxu0 %vm505_vm4, %v4304_v22  ;;  %7003 = vmatprep.subr.mxu1 %v8965_v43  ;;  %v4820_v22 = vrot.slane %v6321_v31, 2 }
 0x789   : >> { %6972 = vmatmul.mubr.msk.f32.vlgmr.msra.gmra.mxu0 %vm505_vm4, %v4306_v23  ;;  %7004 = vmatpush3.msra.mxu1 %v8965_v43  ;;  %v4506_v0 = vsel %vm1970_vm7, %v4503_v30, %v4505_v61  ;;  %v4821_v23 = vrot.slane %v6322_v51, 2  ;;  %v4827_v61 = vrot.slane %v6325_v52, 2 }
 0x78a   : >> { %6990 = vmatpush3.msra.mxu0 %v8945_v58  ;;  %6974 = vmatprep.mubr.msk.f32.mxu0 %vm505_vm4, %v4308_v26 }
 0x78b   : >> { %6991 = vmatprep.subr.mxu0 %v8940_v57  ;;  %6987 = vmatmul.mubr.msk.f32.gmra.mxu1 %vm505_vm4, %v4294_v25  ;;  %v4715_v25 = vrot.slane %v6322_v51, 1  ;;  %v4822_v30 = vsel %vm1970_vm7, %v4820_v22, %v4821_v23 }
 0x78c   : >> { %6992 = vmatpush3.msra.mxu0 %v8940_v57  ;;  %7005 = vmatprep.subr.mxu1 %v9393_v42 }
 0x78d   : >> { %6975 = vmatmul.mubr.msk.f32.gmra.mxu0 %vm505_vm4, %v4310_v27  ;;  %6993 = vmatprep.subr.mxu0 %v8923_v53  ;;  %v4716_v26 = vsel %vm1815_vm6, %v4714_v63, %v4715_v25  ;;  %v4719_v27 = vrot.slane %v6324_v3, 1  ;;  %v4718_v29 = vsel %vm1815_vm6, %v4715_v25, %v4717_v50  ;;  %v6339_v63 = vld [vmem:[%s9075_s18 + $0x58] sm:$0xff] }
 0x78e   : >> { %6994 = vmatpush3.msra.mxu0 %v8923_v53  ;;  %6995 = vmatprep.mubr.msk.f32.mxu0 %vm505_vm4, %v4500_v28  ;;  %v4721_v28 = vrot.slane %v6325_v52, 1  ;;  %v5037_v22 = vrot.slane %v6339_v63, 1 }
 0x78f   : >> { %7013 = vmatprep.subr.mxu0 %v9409_v9  ;;  %7006 = vmatpush3.msra.mxu1 %v9393_v42 }
 0x790   : >> { %7007 = vmatprep.mubr.msk.f32.mxu1 %vm505_vm4, %v6321_v31  ;;  %7025 = vmatprep.subr.mxu1 %v9404_v16  ;;  %v4825_v31 = vrot.slane %v6324_v3, 2 }
 0x791   : >> { %6996 = vmatmul.mubr.msk.f32.vlgmr.msra.gmra.mxu0 %vm505_vm4, %v4502_v49  ;;  %7008 = vmatmul.mubr.msk.f32.vlgmr.msra.gmra.mxu1 %vm505_vm4, %v6322_v51  ;;  %v4824_v49 = vsel %vm1970_vm7, %v4821_v23, %v4823_v24  ;;  %v4720_v51 = vsel %vm1815_vm6, %v4717_v50, %v4719_v27  ;;  %v6341_v23 = vld [vmem:[%s9075_s18 + $0x68] sm:$0xff] }
 0x792   : >> { %7014 = vmatpush3.msra.mxu0 %v9409_v9  ;;  %6998 = vmatprep.mubr.msk.f32.mxu0 %vm505_vm4, %v4504_v39  ;;  %v4722_v39 = vsel %vm1815_vm6, %v4719_v27, %v4721_v28  ;;  %v4826_v25 = vsel %vm1970_vm7, %v4823_v24, %v4825_v31  ;;  %v4828_v50 = vsel %vm1970_vm7, %v4825_v31, %v4827_v61  ;;  %v6342_v24 = vld [vmem:[%s9075_s18 + $0x70] sm:$0x3]  ;;  %v5143_v28 = vrot.slane %v6339_v63, 2 }
 0x793   : >> { %7015 = vmatprep.subr.mxu0 %v9407_v13  ;;  %7010 = vmatprep.mubr.msk.f32.mxu1 %vm505_vm4, %v6323_v62  ;;  %v6338_v62 = vld [vmem:[%s9075_s18 + $0x50] sm:$0xff]  ;;  %v5043_v31 = vrot.slane %v6342_v24, 1 }
 0x794   : >> { %7016 = vmatpush3.msra.mxu0 %v9407_v13  ;;  %7026 = vmatpush3.msra.mxu1 %v9404_v16 }
 0x795   : >> { %6999 = vmatmul.mubr.msk.f32.gmra.mxu0 %vm505_vm4, %v4506_v0  ;;  %7011 = vmatmul.mubr.msk.f32.gmra.mxu1 %vm505_vm4, %v6324_v3  ;;  %v6340_v0 = vld [vmem:[%s9075_s18 + $0x60] sm:$0xff]  ;;  %v5036_v3 = vrot.slane %v6338_v62, 1 }
 0x796   : >> { %7017 = vmatprep.subr.mxu0 %v9410_v8  ;;  %7027 = vmatprep.subr.mxu1 %v9405_v15  ;;  %v5039_v52 = vrot.slane %v6340_v0, 1 }
 0x797   : >> { %7018 = vmatpush3.msra.mxu0 %v9410_v8  ;;  %7019 = vmatprep.mubr.msk.f32.mxu0 %vm505_vm4, %v4716_v26  ;;  %v5041_v26 = vrot.slane %v6341_v23, 1  ;;  %v5038_v27 = vsel %vm1815_vm6, %v5036_v3, %v5037_v22 }
 0x798   : >> { %7028 = vmatpush3.msra.mxu1 %v9405_v15  ;;  %7037 = vmatprep.subr.mxu0 %v9026_v47 }
 0x799   : >> { %7020 = vmatmul.mubr.msk.f32.vlgmr.msra.gmra.mxu0 %vm505_vm4, %v4718_v29  ;;  %7029 = vmatprep.subr.mxu1 %v9406_v14  ;;  %v5142_v29 = vrot.slane %v6338_v62, 2 }
 0x79a   : >> { %7030 = vmatpush3.msra.mxu1 %v9406_v14  ;;  %7031 = vmatprep.mubr.msk.f32.mxu1 %vm505_vm4, %v4822_v30  ;;  %v5040_v30 = vsel %vm1815_vm6, %v5037_v22, %v5039_v52 }
 0x79b   : >> { %7038 = vmatpush3.msra.mxu0 %v9026_v47  ;;  %7032 = vmatmul.mubr.msk.f32.vlgmr.msra.gmra.mxu1 %vm505_vm4, %v4824_v49  ;;  %v5042_v49 = vsel %vm1815_vm6, %v5039_v52, %v5041_v26  ;;  %v5144_v61 = vsel %vm1970_vm7, %v5142_v29, %v5143_v28 }
 0x79c   : >> { %7022 = vmatprep.mubr.msk.f32.mxu0 %vm505_vm4, %v4720_v51  ;;  %7039 = vmatprep.subr.mxu0 %v9403_v19  ;;  %v5145_v51 = vrot.slane %v6340_v0, 2 }
 0x79d   : >> { %7023 = vmatmul.mubr.msk.f32.gmra.mxu0 %vm505_vm4, %v4722_v39  ;;  %7049 = vmatprep.subr.mxu1 %v9399_v35  ;;  %v5147_v39 = vrot.slane %v6341_v23, 2 }
 0x79e   : >> { %7040 = vmatpush3.msra.mxu0 %v9403_v19  ;;  %7034 = vmatprep.mubr.msk.f32.mxu1 %vm505_vm4, %v4826_v25  ;;  %v5149_v25 = vrot.slane %v6342_v24, 2 }
 0x79f   : >> { %7050 = vmatpush3.msra.mxu1 %v9399_v35  ;;  %7041 = vmatprep.subr.mxu0 %v9413_v1 }
 0x7a0   : >> { %7035 = vmatmul.mubr.msk.f32.gmra.mxu1 %vm505_vm4, %v4828_v50  ;;  %7051 = vmatprep.subr.mxu1 %v9400_v34  ;;  %v5150_v50 = vsel %vm1970_vm7, %v5147_v39, %v5149_v25 }
 0x7a1   : >> { %7042 = vmatpush3.msra.mxu0 %v9413_v1  ;;  %7043 = vmatprep.mubr.msk.f32.mxu0 %vm505_vm4, %v6338_v62  ;;  %v5044_v62 = vsel %vm1815_vm6, %v5041_v26, %v5043_v31 }
 0x7a2   : >> { %7052 = vmatpush3.msra.mxu1 %v9400_v34  ;;  %7044 = vmatmul.mubr.msk.f32.vlgmr.msra.gmra.mxu0 %vm505_vm4, %v6339_v63  ;;  %v5146_v63 = vsel %vm1970_vm7, %v5143_v28, %v5145_v51 }
 0x7a3   : >> { %7053 = vmatprep.subr.mxu1 %v9031_v48  ;;  %7061 = vmatprep.subr.mxu0 %v9396_v38 }
 0x7a4   : >> { %7054 = vmatpush3.msra.mxu1 %v9031_v48  ;;  %7055 = vmatprep.mubr.msk.f32.mxu1 %vm505_vm4, %v5038_v27 }
 0x7a5   : >> { %7062 = vmatpush3.msra.mxu0 %v9396_v38  ;;  %7056 = vmatmul.mubr.msk.f32.vlgmr.msra.gmra.mxu1 %vm505_vm4, %v5040_v30 }
 0x7a6   : >> { %7046 = vmatprep.mubr.msk.f32.mxu0 %vm505_vm4, %v6340_v0  ;;  %7063 = vmatprep.subr.mxu0 %v9397_v37  ;;  %v5148_v0 = vsel %vm1970_vm7, %v5145_v51, %v5147_v39 }
 0x7a7   : >> { %7047 = vmatmul.mubr.msk.f32.gmra.mxu0 %vm505_vm4, %v6341_v23  ;;  %7058 = vmatprep.mubr.msk.f32.mxu1 %vm505_vm4, %v5042_v49 }
 0x7a8   : >> { %7064 = vmatpush3.msra.mxu0 %v9397_v37  ;;  %7067 = vmatprep.mubr.msk.f32.mxu0 %vm505_vm4, %v5144_v61 }
 0x7a9   : >> { %7059 = vmatmul.mubr.msk.f32.gmra.mxu1 %vm505_vm4, %v5044_v62  ;;  %7065 = vmatprep.subr.mxu0 %v9398_v36 }
 0x7aa   : >> { %7066 = vmatpush3.msra.mxu0 %v9398_v36  ;;  %7081 = vmatprep.mubr.msk.f32.mxu1 %vm5315_vm9, %v8307_v17 }
 0x7ab   : >> { %7068 = vmatmul.mubr.msk.f32.vlgmr.msra.gmra.mxu0 %vm505_vm4, %v5146_v63 }
 0x7ac   : >> { %7070 = vmatprep.mubr.msk.f32.mxu0 %vm505_vm4, %v5148_v0 }
 0x7af   : >> { %7071 = vmatmul.mubr.msk.f32.gmra.mxu0 %vm505_vm4, %v5150_v50 }
 0x7b0   : >> { %7101 = vmatprep.mubr.msk.f32.mxu0 %vm5315_vm9, %v8908_v21 }
 0x846   : >> { %v6985_v3 = vpop.f32.mrf.mxu1 }
 0x848   : >> { %v4478_v22 = vpop.f32.mrf.mxu1 }
 0x849   : >> { %v6973_v23 = vpop.f32.mrf.mxu0 }
 0x84a   : >> { %v4484_v63 = vadd.f32 %v6985_v3, %v6973_v23 }
 0x84b   : >> { %v4385_v52 = vpop.f32.mrf.mxu0  ;;  %v6988_v24 = vpop.f32.mrf.mxu1 }
 0x84c   : >> { %v4479_v0 = vadd.f32 %v4478_v22, %v4385_v52 }
 0x84d   : >> { %v6976_v26 = vpop.f32.mrf.mxu0  ;;  %v4488_v29 = vpop.f32.mrf.mxu1 }
 0x84e   : >> { %v4494_v4 = vadd.f32 %v6988_v24, %v6976_v26 }
 0x84f   : >> { %v4395_v27 = vpop.f32.mrf.mxu0 }
 0x850   : >> { %v4489_v9 = vadd.f32 %v4488_v29, %v4395_v27 }
 0x851   : >> { %v6997_v28 = vpop.f32.mrf.mxu0  ;;  %v7009_v30 = vpop.f32.mrf.mxu1 }
 0x852   : >> { %v4601_v50 = vadd.f32 %v6997_v28, %v4484_v63 }
 0x853   : >> { %v4581_v31 = vpop.f32.mrf.mxu0  ;;  %v4690_v49 = vpop.f32.mrf.mxu1 }
 0x854   : >> { %v4600_v8 = vadd.f32 %v4581_v31, %v4479_v0  ;;  %v4710_v14 = vadd.f32 %v7009_v30, %v4601_v50 }
 0x855   : >> { %v7000_v51 = vpop.f32.mrf.mxu0  ;;  %v7012_v61 = vpop.f32.mrf.mxu1 }
 0x856   : >> { %v4603_v15 = vadd.f32 %v7000_v51, %v4494_v4  ;;  %v4709_v20 = vadd.f32 %v4690_v49, %v4600_v8 }
 0x857   : >> { %v4591_v39 = vpop.f32.mrf.mxu0  ;;  %v4700_v62 = vpop.f32.mrf.mxu1 }
 0x858   : >> { %v4602_v16 = vadd.f32 %v4591_v39, %v4489_v9  ;;  %v4712_v35 = vadd.f32 %v7012_v61, %v4603_v15 }
 0x859   : >> { %v7021_v25 = vpop.f32.mrf.mxu0 }
 0x85a   : >> { %v4817_v33 = vadd.f32 %v7021_v25, %v4710_v14  ;;  %v4711_v22 = vadd.f32 %v4700_v62, %v4602_v16 }
 0x85b   : >> { %v4797_v1 = vpop.f32.mrf.mxu0  ;;  %v7033_v2 = vpop.f32.mrf.mxu1 }
 0x85c   : >> { %v4816_v36 = vadd.f32 %v4797_v1, %v4709_v20  ;;  %v4923_v52 = vadd.f32 %v7033_v2, %v4817_v33  ;;  %v5273_v20 = vpop.permute.xlu0 %5272 }
 0x85d   : >> { %v7024_v11 = vpop.f32.mrf.mxu0  ;;  %v4903_v13 = vpop.f32.mrf.mxu1 }
 0x85e   : >> { %v4819_v28 = vadd.f32 %v7024_v11, %v4712_v35  ;;  %v4922_v27 = vadd.f32 %v4903_v13, %v4816_v36  ;;  %v9198_v35 = vpop.permute.xlu1 %5586 }
 0x85f   : >> { %v4807_v19 = vpop.f32.mrf.mxu0 }
 0x860   : >> { %v7036_v34 = vpop.f32.mrf.mxu1  ;;  %v4818_v24 = vadd.f32 %v4807_v19, %v4711_v22  ;;  %v5614_v25 = vpop.permute.xlu0 %5613 }
 0x861   : >> { %v4925_v4 = vadd.f32 %v7036_v34, %v4819_v28 }
 0x862   : >> { %v4913_v3 = vpop.f32.mrf.mxu1  ;;  %v7045_v23 = vpop.f32.mrf.mxu0 }
 0x863   : >> { %v5032_v29 = vadd.f32 %v7045_v23, %v4923_v52  ;;  %v4924_v51 = vadd.f32 %v4913_v3, %v4818_v24 }
 0x864   : >> { %v5012_v63 = vpop.f32.mrf.mxu0 }
 0x865   : >> { %v7057_v26 = vpop.f32.mrf.mxu1  ;;  %v5031_v9 = vadd.f32 %v5012_v63, %v4922_v27 }
 0x866   : >> { %v5139_v49 = vadd.f32 %v7057_v26, %v5032_v29 }
 0x867   : >> { %v7048_v31 = vpop.f32.mrf.mxu0  ;;  %v5119_v30 = vpop.f32.mrf.mxu1 }
 0x868   : >> { %v5034_v15 = vadd.f32 %v7048_v31, %v4925_v4  ;;  %v5138_v16 = vadd.f32 %v5119_v30, %v5031_v9 }
 0x869   : >> { %v5022_v8 = vpop.f32.mrf.mxu0  ;;  %v7060_v14 = vpop.f32.mrf.mxu1 }
 0x86a   : >> { %v5033_v1 = vadd.f32 %v5022_v8, %v4924_v51  ;;  %v5141_v19 = vadd.f32 %v7060_v14, %v5034_v15 }
 0x86b   : >> { %v7069_v61 = vpop.f32.mrf.mxu0  ;;  %v5129_v33 = vpop.f32.mrf.mxu1 }
 0x86c   : >> { %v5245_v2 = vadd.f32 %v7069_v61, %v5139_v49  ;;  %v5140_v34 = vadd.f32 %v5129_v33, %v5033_v1 }
 0x86d   : >> { %v5225_v11 = vpop.f32.mrf.mxu0 }
 0x86e   : >> { %v9200_v13 = vadd.f32 %v5225_v11, %v5138_v16  ;;  %v5276_v36 = vadd.f32 %v5273_v20, %v5245_v2  ;;  %v5249_v62 = vadd.f32 %v9394_v32, %v5245_v2  ;;  %v9207_v22 = vadd.f32 %v9198_v35, %v5245_v2 }
 0x86f   : >> { %v7072_v39 = vpop.f32.mrf.mxu0  ;;  %v9212_v29 = vadd.f32 %v5614_v25, %v5245_v2 }
 0x870   : >> { %v5247_v0 = vadd.f32 %v7072_v39, %v5141_v19  ;;  %v5280_v50 = vmax.f32 %v5276_v36, 0.0  ;;  %v5275_v3 = vadd.f32 %v5273_v20, %v9200_v13  ;;  %v5248_v23 = vadd.f32 %v9394_v32, %v9200_v13 }
 0x871   : >> { %v5235_v52 = vpop.f32.mrf.mxu0  ;;  %v5253_v28 = vmax.f32 %v5249_v62, 0.0 }
 0x872   : >> { %v9209_v63 = vadd.f32 %v5235_v52, %v5140_v34  ;;  %v5278_v24 = vadd.f32 %v5273_v20, %v5247_v0  ;;  %v5251_v26 = vadd.f32 %v9394_v32, %v5247_v0  ;;  %v5284_v27 = vmin.f32 %v5280_v50, 1.0 }
 0x873   : >> { %v5257_v31 = vmin.f32 %v5253_v28, 1.0  ;;  %v5279_v30 = vmax.f32 %v5275_v3, 0.0  ;;  %v5252_v4 = vmax.f32 %v5248_v23, 0.0  ;;  %v5619_v50 = vadd.f32 %v5614_v25, %v5247_v0 }
 0x874   : >> { %v5282_v9 = vmax.f32 %v5278_v24, 0.0  ;;  %v5255_v51 = vmax.f32 %v5251_v26, 0.0  ;;  %v5277_v8 = vadd.f32 %v5273_v20, %v9209_v63  ;;  %v5250_v14 = vadd.f32 %v9394_v32, %v9209_v63 }
 0x875   : >> { %v5288_v49 = vsub.f32 %v5276_v36, %v5284_v27  ;;  %v5261_v15 = vsub.f32 %v5249_v62, %v5257_v31  ;;  %v5283_v1 = vmin.f32 %v5279_v30, 1.0  ;;  %v5256_v61 = vmin.f32 %v5252_v4, 1.0 }
 0x876   : >> { %v5286_v16 = vmin.f32 %v5282_v9, 1.0  ;;  %v5259_v33 = vmin.f32 %v5255_v51, 1.0  ;;  %v5281_v11 = vmax.f32 %v5277_v8, 0.0  ;;  %v5254_v19 = vmax.f32 %v5250_v14, 0.0 }
 0x877   : >> { %v5292_v2 = vmul.f32 0.01, %v5288_v49  ;;  %v5287_v34 = vsub.f32 %v5275_v3, %v5283_v1  ;;  %v5260_v39 = vsub.f32 %v5248_v23, %v5256_v61  ;;  %v5265_v40 = vmul.f32 0.01, %v5261_v15 }
 0x878   : >> { %v5290_v52 = vsub.f32 %v5278_v24, %v5286_v16  ;;  %v5263_v28 = vsub.f32 %v5251_v26, %v5259_v33  ;;  %v5285_v37 = vmin.f32 %v5281_v11, 1.0  ;;  %v5258_v38 = vmin.f32 %v5254_v19, 1.0 }
 0x879   : >> { %v5296_v20 = vadd.f32 %v5292_v2, %v5284_v27  ;;  %v5621_v32 = vmax.f32 %v9212_v29, 0.0  ;;  %v5616_v36 = vadd.f32 %v5614_v25, %v9200_v13  ;;  %v5291_v51 = vmul.f32 0.01, %v5287_v34 }
 0x87a   : >> { %v5294_v62 = vmul.f32 0.01, %v5290_v52  ;;  %v5267_v30 = vmul.f32 0.01, %v5263_v28  ;;  %v5289_v4 = vsub.f32 %v5277_v8, %v5285_v37  ;;  %v5262_v9 = vsub.f32 %v5250_v14, %v5258_v38 }
 0x87b   : >> { %v5264_v42 = vmul.f32 0.01, %v5260_v39  ;;  %v5623_v49 = vmax.f32 %v5619_v50, 0.0  ;;  %v5618_v3 = vadd.f32 %v5614_v25, %v9209_v63  ;;  %v5625_v15 = vmin.f32 %v5621_v32, 1.0 }
 0x87c   : >> { %v5298_v23 = vadd.f32 %v5294_v62, %v5286_v16  ;;  %v5271_v24 = vadd.f32 %v5267_v30, %v5259_v33  ;;  %v5293_v26 = vmul.f32 0.01, %v5289_v4  ;;  %v5266_v11 = vmul.f32 0.01, %v5262_v9 }
 0x87d   : >> { %v5627_v19 = vmin.f32 %v5623_v49, 1.0  ;;  %v5622_v27 = vmax.f32 %v5618_v3, 0.0  ;;  %v5620_v2 = vmax.f32 %v5616_v36, 0.0  ;;  %v5592_v14 = vadd.f32 %v9198_v35, %v5247_v0 }
 0x87e   : >> { %5309 = vrot.lane.b32.xlu1 %v5298_v23, %s7581_s27  ;;  %7093 = vmatprep.subr.mxu0 %v5271_v24  ;;  %v5297_v52 = vadd.f32 %v5293_v26, %v5285_v37  ;;  %v5270_v8 = vadd.f32 %v5266_v11, %v5258_v38  ;;  %v5594_v34 = vmax.f32 %v9207_v22, 0.0  ;;  %v5269_v25 = vadd.f32 %v5265_v40, %v5257_v31 }
 0x87f   : >> { %7094 = vmatpush3.msra.mxu0 %v5271_v24  ;;  %v5631_v16 = vsub.f32 %v5619_v50, %v5627_v19  ;;  %v5626_v33 = vmin.f32 %v5622_v27, 1.0  ;;  %v5624_v39 = vmin.f32 %v5620_v2, 1.0  ;;  %v5629_v32 = vsub.f32 %v9212_v29, %v5625_v15 }
 0x880   : >> { %5307 = vrot.lane.b32.xlu0 %v5297_v52, %s7581_s27  ;;  %7095 = vmatprep.subr.mxu0 %v5270_v8  ;;  %v5596_v28 = vmax.f32 %v5592_v14, 0.0  ;;  %v5591_v62 = vadd.f32 %v9198_v35, %v9209_v63  ;;  %v5589_v37 = vadd.f32 %v9198_v35, %v9200_v13  ;;  %v5295_v38 = vadd.f32 %v5291_v51, %v5283_v1 }
 0x881   : >> { %7096 = vmatpush3.msra.mxu0 %v5270_v8  ;;  %v5268_v0 = vadd.f32 %v5264_v42, %v5256_v61  ;;  %v5635_v30 = vmul.f32 0.01, %v5631_v16  ;;  %v5630_v40 = vsub.f32 %v5618_v3, %v5626_v33  ;;  %v5628_v31 = vsub.f32 %v5616_v36, %v5624_v39 }
 0x882   : >> { %5305 = vrot.lane.b32.xlu1 %v5296_v20, %s7581_s27  ;;  %7097 = vmatprep.subr.mxu0 %v5269_v25  ;;  %v5600_v50 = vmin.f32 %v5596_v28, 1.0  ;;  %v5595_v4 = vmax.f32 %v5591_v62, 0.0  ;;  %v5593_v9 = vmax.f32 %v5589_v37, 0.0  ;;  %v5598_v49 = vmin.f32 %v5594_v34, 1.0 }
 0x883   : >> { %7098 = vmatpush3.msra.mxu0 %v5269_v25  ;;  %v5634_v29 = vmul.f32 0.01, %v5630_v40  ;;  %v5639_v63 = vadd.f32 %v5635_v30, %v5627_v19  ;;  %v5633_v35 = vmul.f32 0.01, %v5629_v32  ;;  %v5632_v61 = vmul.f32 0.01, %v5628_v31 }
 0x884   : >> { %5303 = vrot.lane.b32.xlu0 %v5295_v38, %s7581_s27  ;;  %7099 = vmatprep.subr.mxu0 %v5268_v0  ;;  %v5604_v13 = vsub.f32 %v5592_v14, %v5600_v50  ;;  %v5599_v1 = vmin.f32 %v5595_v4, 1.0  ;;  %v5597_v36 = vmin.f32 %v5593_v9, 1.0  ;;  %v5602_v23 = vsub.f32 %v9207_v22, %v5598_v49 }
 0x885   : >> { %7100 = vmatpush3.msra.mxu0 %v5268_v0  ;;  %v5638_v42 = vadd.f32 %v5634_v29, %v5626_v33  ;;  %v5637_v51 = vadd.f32 %v5633_v35, %v5625_v15  ;;  %v5636_v24 = vadd.f32 %v5632_v61, %v5624_v39 }
 0x886   : >> { %5650 = vrot.lane.b32.xlu1 %v5639_v63, %s7582_s28  ;;  %v5603_v20 = vsub.f32 %v5591_v62, %v5599_v1  ;;  %v5608_v3 = vmul.f32 0.01, %v5604_v13  ;;  %7102 = vmatmul.mubr.msk.f32.vlgmr.msra.gmra.mxu0 %vm5315_vm9, %v8926_v5  ;;  %v5601_v11 = vsub.f32 %v5589_v37, %v5597_v36  ;;  %v5606_v27 = vmul.f32 0.01, %v5602_v23 }
 0x887   : >> { %7104 = vmatprep.mubr.msk.f32.mxu0 %vm5315_vm9, %v8929_v54 }
 0x888   : >> { %5648 = vrot.lane.b32.xlu0 %v5638_v42, %s7582_s28  ;;  %v5607_v26 = vmul.f32 0.01, %v5603_v20  ;;  %v5612_v19 = vadd.f32 %v5608_v3, %v5600_v50  ;;  %v5605_v15 = vmul.f32 0.01, %v5601_v11  ;;  %v5610_v2 = vadd.f32 %v5606_v27, %v5598_v49 }
 0x88a   : >> { %5646 = vrot.lane.b32.xlu1 %v5637_v51, %s7582_s28  ;;  %7105 = vmatmul.mubr.msk.f32.gmra.mxu0 %vm5315_vm9, %v8932_v55  ;;  %v5611_v22 = vadd.f32 %v5607_v26, %v5599_v1  ;;  %v5609_v52 = vadd.f32 %v5605_v15, %v5597_v36 }
 0x88b   : >> { %7107 = vmatprep.mubr.msk.f32.mxu0 %vm5315_vm9, %v8935_v56 }
 0x88c   : >> { %5644 = vrot.lane.b32.xlu0 %v5636_v24, %s7582_s28 }
 0x88e   : >> { %5771 = vrot.lane.b32.xlu1 %v5612_v19, %s7583_s12  ;;  %7108 = vmatmul.mubr.msk.f32.gmra.mxu0 %vm5315_vm9, %v8948_v59 }
 0x88f   : >> { %7110 = vmatprep.mubr.msk.f32.mxu0 %vm5315_vm9, %v8951_v60 }
 0x890   : >> { %5769 = vrot.lane.b32.xlu0 %v5611_v22, %s7583_s12 }
 0x892   : >> { %5767 = vrot.lane.b32.xlu1 %v5610_v2, %s7583_s12  ;;  %7111 = vmatmul.mubr.msk.f32.gmra.mxu0 %vm5315_vm9, %v8954_v41 }
 0x893   : >> { %7141 = vmatprep.mubr.msk.f32.mxu0 %vm5315_vm9, %v8908_v21 }
 0x894   : >> { %5765 = vrot.lane.b32.xlu0 %v5609_v52, %s7583_s12 }
 0x8f0   : >> { %v5310_v8 = vpop.permute.xlu1 %5309 }
 0x8f1   : >> { %7073 = vmatprep.subr.mxu1 %v5310_v8 }
 0x8f2   : >> { %7074 = vmatpush3.msra.mxu1 %v5310_v8  ;;  %v5308_v14 = vpop.permute.xlu0 %5307 }
 0x8f3   : >> { %7075 = vmatprep.subr.mxu1 %v5308_v14 }
 0x8f4   : >> { %v5306_v34 = vpop.permute.xlu1 %5305  ;;  %7076 = vmatpush3.msra.mxu1 %v5308_v14 }
 0x8f5   : >> { %7077 = vmatprep.subr.mxu1 %v5306_v34 }
 0x8f6   : >> { %7078 = vmatpush3.msra.mxu1 %v5306_v34  ;;  %v5304_v25 = vpop.permute.xlu0 %5303 }
 0x8f7   : >> { %7079 = vmatprep.subr.mxu1 %v5304_v25 }
 0x8f8   : >> { %v5651_v16 = vpop.permute.xlu1 %5650  ;;  %7080 = vmatpush3.msra.mxu1 %v5304_v25 }
 0x8f9   : >> { %7082 = vmatmul.mubr.msk.f32.vlgmr.msra.gmra.mxu1 %vm5315_vm9, %v8310_v18  ;;  %7113 = vmatprep.subr.mxu1 %v5651_v16 }
 0x8fa   : >> { %7114 = vmatpush3.msra.mxu1 %v5651_v16  ;;  %v5649_v33 = vpop.permute.xlu0 %5648  ;;  %7084 = vmatprep.mubr.msk.f32.mxu1 %vm5315_vm9, %v8420_v10 }
 0x8fb   : >> { %7115 = vmatprep.subr.mxu1 %v5649_v33 }
 0x8fc   : >> { %v5647_v39 = vpop.permute.xlu1 %5646  ;;  %7116 = vmatpush3.msra.mxu1 %v5649_v33 }
 0x8fd   : >> { %7085 = vmatmul.mubr.msk.f32.gmra.mxu1 %vm5315_vm9, %v8636_v44  ;;  %7117 = vmatprep.subr.mxu1 %v5647_v39 }
 0x8fe   : >> { %7118 = vmatpush3.msra.mxu1 %v5647_v39  ;;  %v5645_v32 = vpop.permute.xlu0 %5644  ;;  %7087 = vmatprep.mubr.msk.f32.mxu1 %vm5315_vm9, %v8639_v45 }
 0x8ff   : >> { %7119 = vmatprep.subr.mxu1 %v5645_v32 }
 0x900   : >> { %v5772_v28 = vpop.permute.xlu1 %5771  ;;  %7120 = vmatpush3.msra.mxu1 %v5645_v32 }
 0x901   : >> { %7088 = vmatmul.mubr.msk.f32.gmra.mxu1 %vm5315_vm9, %v8975_v7  ;;  %7133 = vmatprep.subr.mxu0 %v5772_v28 }
 0x902   : >> { %7153 = vmatprep.subr.mxu1 %v5772_v28  ;;  %v5770_v62 = vpop.permute.xlu0 %5769  ;;  %7134 = vmatpush3.msra.mxu0 %v5772_v28 }
 0x903   : >> { %7135 = vmatprep.subr.mxu0 %v5770_v62  ;;  %7090 = vmatprep.mubr.msk.f32.mxu1 %vm5315_vm9, %v8993_v6 }
 0x904   : >> { %v5768_v37 = vpop.permute.xlu1 %5767  ;;  %7136 = vmatpush3.msra.mxu0 %v5770_v62 }
 0x905   : >> { %7091 = vmatmul.mubr.msk.f32.gmra.mxu1 %vm5315_vm9, %v8996_v12  ;;  %7137 = vmatprep.subr.mxu0 %v5768_v37 }
 0x906   : >> { %v5766_v38 = vpop.permute.xlu0 %5765  ;;  %7138 = vmatpush3.msra.mxu0 %v5768_v37  ;;  %7121 = vmatprep.mubr.msk.f32.mxu1 %vm5315_vm9, %v8307_v17 }
 0x907   : >> { %7139 = vmatprep.subr.mxu0 %v5766_v38 }
 0x908   : >> { %7140 = vmatpush3.msra.mxu0 %v5766_v38 }
 0x909   : >> { %7122 = vmatmul.mubr.msk.f32.vlgmr.msra.gmra.mxu1 %vm5315_vm9, %v8310_v18  ;;  %7142 = vmatmul.mubr.msk.f32.vlgmr.msra.gmra.mxu0 %vm5315_vm9, %v8926_v5 }
 0x90a   : >> { %7157 = vmatpush3.msra.mxu1 %v5772_v28  ;;  %7124 = vmatprep.mubr.msk.f32.mxu1 %vm5315_vm9, %v8420_v10 }
 0x90b   : >> { %7154 = vmatprep.subr.mxu1 %v5770_v62  ;;  %7144 = vmatprep.mubr.msk.f32.mxu0 %vm5315_vm9, %v8929_v54 }
 0x90c   : >> { %7158 = vmatpush3.msra.mxu1 %v5770_v62 }
 0x90d   : >> { %7155 = vmatprep.subr.mxu1 %v5768_v37  ;;  %7125 = vmatmul.mubr.msk.f32.gmra.mxu1 %vm5315_vm9, %v8636_v44 }
 0x90e   : >> { %7159 = vmatpush3.msra.mxu1 %v5768_v37  ;;  %7145 = vmatmul.mubr.msk.f32.gmra.mxu0 %vm5315_vm9, %v8932_v55 }
 0x90f   : >> { %7156 = vmatprep.subr.mxu1 %v5766_v38  ;;  %7127 = vmatprep.mubr.msk.f32.mxu1 %vm5315_vm9, %v8639_v45 }
 0x910   : >> { %7160 = vmatpush3.msra.mxu1 %v5766_v38  ;;  %7147 = vmatprep.mubr.msk.f32.mxu0 %vm5315_vm9, %v8935_v56 }
 0x911   : >> { %7128 = vmatmul.mubr.msk.f32.gmra.mxu1 %vm5315_vm9, %v8975_v7 }
 0x912   : >> { %7148 = vmatmul.mubr.msk.f32.gmra.mxu0 %vm5315_vm9, %v8948_v59  ;;  %7130 = vmatprep.mubr.msk.f32.mxu1 %vm5315_vm9, %v8993_v6 }
 0x915   : >> { %7131 = vmatmul.mubr.msk.f32.gmra.mxu1 %vm5315_vm9, %v8996_v12 }
 0x916   : >> { %7150 = vmatprep.mubr.msk.f32.mxu1 %vm5315_vm9, %v8951_v60 }
 0x919   : >> { %7151 = vmatmul.mubr.msk.f32.vlgmr.msra.gmra.mxu1 %vm5315_vm9, %v8954_v41 }
 0x946   : >> { %v7103_v0 = vpop.f32.mrf.mxu0 }
 0x948   : >> { %v5535_v30 = vpop.f32.mrf.mxu0 }
 0x94a   : >> { %v7106_v40 = vpop.f32.mrf.mxu0 }
 0x94c   : >> { %v5545_v31 = vpop.f32.mrf.mxu0 }
 0x94e   : >> { %v7109_v4 = vpop.f32.mrf.mxu0 }
 0x950   : >> { %v5555_v35 = vpop.f32.mrf.mxu0 }
 0x952   : >> { %v7112_v20 = vpop.f32.mrf.mxu0 }
 0x954   : >> { %v5565_v24 = vpop.f32.mrf.mxu0 }
 0x9b9   : >> { %v7083_v50 = vpop.f32.mrf.mxu1 }
 0x9ba   : >> { %v5541_v9 = vadd.f32 %v7103_v0, %v7083_v50 }
 0x9bb   : >> { %v5406_v29 = vpop.f32.mrf.mxu1 }
 0x9bc   : >> { %5579 = vst.msk [vmem:[%s9298_s29 + $0x8] sm:$0xff] %vm5577_vm10, %v5541_v9  ;;  %v5536_v49 = vadd.f32 %v5535_v30, %v5406_v29 }
 0x9bd   : >> { %v7086_v63 = vpop.f32.mrf.mxu1 }
 0x9be   : >> { %5578 = vst.msk [vmem:[%s9298_s29] sm:$0xff] %vm5577_vm10, %v5536_v49  ;;  %v5551_v13 = vadd.f32 %v7106_v40, %v7086_v63 }
 0x9bf   : >> { %v5416_v1 = vpop.f32.mrf.mxu1 }
 0x9c0   : >> { %5581 = vst.msk [vmem:[%s9298_s29 + $0x18] sm:$0xff] %vm5577_vm10, %v5551_v13  ;;  %v5546_v42 = vadd.f32 %v5545_v31, %v5416_v1 }
 0x9c1   : >> { %v7089_v61 = vpop.f32.mrf.mxu1 }
 0x9c2   : >> { %5580 = vst.msk [vmem:[%s9298_s29 + $0x10] sm:$0xff] %vm5577_vm10, %v5546_v42  ;;  %v5561_v36 = vadd.f32 %v7109_v4, %v7089_v61 }
 0x9c3   : >> { %v5426_v51 = vpop.f32.mrf.mxu1 }
 0x9c4   : >> { %5583 = vst.msk [vmem:[%s9298_s29 + $0x28] sm:$0xff] %vm5577_vm10, %v5561_v36  ;;  %v5556_v3 = vadd.f32 %v5555_v35, %v5426_v51 }
 0x9c5   : >> { %v7092_v23 = vpop.f32.mrf.mxu1 }
 0x9c6   : >> { %5582 = vst.msk [vmem:[%s9298_s29 + $0x20] sm:$0xff] %vm5577_vm10, %v5556_v3  ;;  %v5571_v26 = vadd.f32 %v7112_v20, %v7092_v23 }
 0x9c7   : >> { %v5436_v11 = vpop.f32.mrf.mxu1 }
 0x9c8   : >> { %5585 = vst.msk [vmem:[%s9298_s29 + $0x38] sm:$0xff] %vm5577_vm10, %v5571_v26  ;;  %v5566_v19 = vadd.f32 %v5565_v24, %v5436_v11 }
 0x9c9   : >> { %v7123_v27 = vpop.f32.mrf.mxu1  ;;  %v7143_v22 = vpop.f32.mrf.mxu0 }
 0x9ca   : >> { %5584 = vst.msk [vmem:[%s9298_s29 + $0x30] sm:$0xff] %vm5577_vm10, %v5566_v19  ;;  %v5849_v15 = vadd.f32 %v7143_v22, %v7123_v27 }
 0x9cb   : >> { %v5722_v2 = vpop.f32.mrf.mxu1  ;;  %v5843_v52 = vpop.f32.mrf.mxu0 }
 0x9cc   : >> { %6392 = vst.msk [vmem:[%s9298_s29 + $0x48] sm:$0xff] %vm5577_vm10, %v5849_v15  ;;  %v5844_v8 = vadd.f32 %v5843_v52, %v5722_v2 }
 0x9cd   : >> { %v7126_v14 = vpop.f32.mrf.mxu1 }
 0x9ce   : >> { %6391 = vst.msk [vmem:[%s9298_s29 + $0x40] sm:$0xff] %vm5577_vm10, %v5844_v8  ;;  %v7146_v34 = vpop.f32.mrf.mxu0 }
 0x9cf   : >> { %v5859_v25 = vadd.f32 %v7146_v34, %v7126_v14  ;;  %v5732_v16 = vpop.f32.mrf.mxu1 }
 0x9d0   : >> { %v5853_v33 = vpop.f32.mrf.mxu0 }
 0x9d1   : >> { %6394 = vst.msk [vmem:[%s9298_s29 + $0x58] sm:$0xff] %vm5577_vm10, %v5859_v25  ;;  %v5854_v39 = vadd.f32 %v5853_v33, %v5732_v16  ;;  %v7129_v32 = vpop.f32.mrf.mxu1 }
 0x9d2   : >> { %v7149_v28 = vpop.f32.mrf.mxu0 }
 0x9d3   : >> { %6393 = vst.msk [vmem:[%s9298_s29 + $0x50] sm:$0xff] %vm5577_vm10, %v5854_v39  ;;  %v5869_v62 = vadd.f32 %v7149_v28, %v7129_v32  ;;  %v5742_v37 = vpop.f32.mrf.mxu1 }
 0x9d4   : >> { %v5863_v38 = vpop.f32.mrf.mxu0 }
 0x9d5   : >> { %6396 = vst.msk [vmem:[%s9298_s29 + $0x68] sm:$0xff] %vm5577_vm10, %v5869_v62  ;;  %v5864_v0 = vadd.f32 %v5863_v38, %v5742_v37  ;;  %v7132_v30 = vpop.f32.mrf.mxu1 }
 0x9d7   : >> { %6395 = vst.msk [vmem:[%s9298_s29 + $0x60] sm:$0xff] %vm5577_vm10, %v5864_v0  ;;  %v5752_v40 = vpop.f32.mrf.mxu1 }
 0x9d9   : >> { %v7152_v31 = vpop.f32.mrf.mxu1 }
 0x9da   : >> { %v5879_v50 = vadd.f32 %v7152_v31, %v7132_v30  ;;  %4287 = sbr.rel (!%p4285_p4) target bundleno = 1914 (0x77a), region = 228 }
 0x9db   : >> { %v5873_v4 = vpop.f32.mrf.mxu1 }
 0x9dc   : >> { %6398 = vst.msk [vmem:[%s9298_s29 + $0x78] sm:$0xff] %vm5577_vm10, %v5879_v50  ;;  %v5874_v9 = vadd.f32 %v5873_v4, %v5752_v40 }
 0x9de   : >> { %6397 = vst.msk [vmem:[%s9298_s29 + $0x70] sm:$0xff] %vm5577_vm10, %v5874_v9 }
 0x9df PF: > { %s23_s30 = sadd.s32 1, %s7526_s30  }
 0x9e0   : > { %p20_p7 = scmp.ge.s32.totalorder %s23_s30, 4  }
 0x9e2   :  { %22 = sbr.rel (!%p20_p7) target bundleno = 4 (0x4), region = 239 }
 0x9e7   :  { %5914 = vsyncpa [#allocation6], 1 }
 0x9e8   :  { %5916 = vsyncpa [#allocation6 + $0x1], 1 }
 0x9e9   :  { %5917 = vsyncpa [#allocation8], 1 }
 0x9ea   :  { %5918 = vsyncpa [#allocation11], 1 }
 0x9eb   :  { %5919 = vsyncpa [#allocation14], 1 }

</bundles_post_ra>
